<compile_context>
chip_gen: v5e
topology: v5e:2x2
jax: 0.10.0
libtpu: 0.0.40
codegen_flags: <defaults>
</compile_context>

<pallas_src>
import functools
import math

import jax
import jax.numpy as jnp
import numpy as np
from jax.experimental import pallas as pl
from jax.experimental.pallas import tpu as pltpu

LN_EPS = 1e-12  # HF ViTConfig default layer_norm_eps
_SQRT_2_OVER_PI = 0.7978845608028654
_NEG_BIG = -1e30


def _round_up(x, m):
    return (x + m - 1) // m * m


def _pad_to(a, shape):
    return jnp.pad(a, [(0, t - s) for s, t in zip(a.shape, shape)])


def _gelu_tanh(z):
    return 0.5 * z * (1.0 + jnp.tanh(_SQRT_2_OVER_PI * z * (1.0 + 0.044715 * z * z)))


def _layernorm_masked(x, gamma, beta, h_real):
    """LayerNorm over the first h_real lanes.  Pad lanes of x are exactly zero
    (invariant maintained by zero-padded weights/biases), gamma/beta pad lanes
    are zero, so the output pad lanes stay zero."""
    _, hp = x.shape
    inv_h = 1.0 / h_real
    mu = jnp.sum(x, axis=-1, keepdims=True) * inv_h
    d = x - mu
    lane = jax.lax.broadcasted_iota(jnp.int32, (1, hp), 1)
    mask = (lane < h_real).astype(jnp.float32)
    var = jnp.sum(d * d * mask, axis=-1, keepdims=True) * inv_h
    return d * jax.lax.rsqrt(var + LN_EPS) * gamma + beta


# --------------------------------- kernel -----------------------------------
def vit_encoder_kernel(x_ref, vec_ref, wqkv_ref, wo_ref, w1_ref, w2_ref, y_ref,
                       *, num_heads, head_dim, hd_pad, h_real, h_pad, f_pad,
                       s_real, bb):
    layer = pl.program_id(1)

    # Output block is layer-resident but not HBM-preloaded -> seed it from the
    # (fetched once per batch block) input on the first layer.
    @pl.when(layer == 0)
    def _():
        y_ref[...] = x_ref[...]

    A = num_heads * hd_pad                 # per-projection width (head-slotted)
    vecs = vec_ref[0]                      # (8, vec_pad) f32, packed small vectors
    ln1_g = vecs[0:1, :h_pad]
    ln1_b = vecs[1:2, :h_pad]
    bqkv = vecs[2:3, :3 * A]
    bo = vecs[3:4, :h_pad]
    ln2_g = vecs[4:5, :h_pad]
    ln2_b = vecs[5:6, :h_pad]
    b1 = vecs[6:7, :f_pad]
    b2 = vecs[7:8, :h_pad]

    wqkv = wqkv_ref[0]                     # (h_pad, 3A)  bf16
    wo = wo_ref[0]                         # (A, h_pad)   bf16
    w1 = w1_ref[0]                         # (h_pad, f_pad) bf16
    w2 = w2_ref[0]                         # (f_pad, h_pad) bf16

    s_pad = y_ref.shape[1]
    scale = 1.0 / math.sqrt(head_dim)
    bf16 = jnp.bfloat16

    # Mask padded key positions (only materialized when S was padded).  The
    # module's default attention_mask is all-False => no user masking.
    if s_pad != s_real:
        key_ok = jax.lax.broadcasted_iota(jnp.int32, (1, s_pad), 1) < s_real
    else:
        key_ok = None

    def one_element(b, carry):
        x = y_ref[b]                                        # (s_pad, h_pad) f32

        # ---- LayerNormBefore ------------------------------------------------
        h1 = _layernorm_masked(x, ln1_g, ln1_b, h_real)

        # ---- fused QKV projection (bf16 MXU, f32 accumulation) --------------
        qkv = jnp.dot(h1.astype(bf16), wqkv,
                      preferred_element_type=jnp.float32) + bqkv

        # ---- per-head attention on 128-lane-aligned slices (no relayouts) ---
        ctx_heads = []
        for hh in range(num_heads):
            lo = hh * hd_pad
            q_h = qkv[:, lo:lo + hd_pad].astype(bf16)
            k_h = qkv[:, A + lo:A + lo + hd_pad].astype(bf16)
            v_h = qkv[:, 2 * A + lo:2 * A + lo + hd_pad].astype(bf16)
            s_h = jax.lax.dot_general(q_h, k_h, (((1,), (1,)), ((), ())),
                                      preferred_element_type=jnp.float32) * scale
            if key_ok is not None:
                s_h = jnp.where(key_ok, s_h, _NEG_BIG)
            s_h = s_h - jnp.max(s_h, axis=-1, keepdims=True)
            p_h = jnp.exp(s_h)
            p_h = p_h * pl.reciprocal(jnp.sum(p_h, axis=-1, keepdims=True),
                                      approx=True)
            ctx_heads.append(jnp.dot(p_h.astype(bf16), v_h,
                                     preferred_element_type=jnp.float32))
        ctx = jnp.concatenate(ctx_heads, axis=1)            # (s_pad, A), aligned

        # ---- output projection + residual (dropout = eval identity) ---------
        attn = jnp.dot(ctx.astype(bf16), wo,
                       preferred_element_type=jnp.float32) + bo
        res1 = attn + x

        # ---- LayerNormAfter --------------------------------------------------
        h2 = _layernorm_masked(res1, ln2_g, ln2_b, h_real)

        # ---- ParallelMLP: h->4h, bias_gelu (tanh), 4h->h ---------------------
        z = jnp.dot(h2.astype(bf16), w1,
                    preferred_element_type=jnp.float32) + b1
        # gelu -> bf16 cast fused into the operand of the W2 matmul.
        mlp = jnp.dot(_gelu_tanh(z).astype(bf16), w2,
                      preferred_element_type=jnp.float32) + b2

        y_ref[b] = mlp + res1
        return carry

    jax.lax.fori_loop(0, bb, one_element, 0)


# ----------------------------- param preparation ----------------------------
def _prepare_stacked_params(layer_params, hidden, ffn, num_heads):
    """Pad into the head-slotted, lane-aligned layout; bf16 matmul weights;
    pack small f32 vectors into one (8, vec_pad) slab per layer; stack over L."""
    head_dim = hidden // num_heads
    hd_pad = _round_up(max(head_dim, 128), 128)
    h_pad = _round_up(max(hidden, 128), 128)
    f_pad = _round_up(max(ffn, 128), 128)
    A = num_heads * hd_pad
    vec_pad = max(h_pad, f_pad, 3 * A)

    def head_cols(w):   # (H,H) -> (h_pad, A): head h in cols [h*hd_pad, ...)
        w = w.reshape(hidden, num_heads, head_dim)
        w = jnp.pad(w, ((0, h_pad - hidden), (0, 0), (0, hd_pad - head_dim)))
        return w.reshape(h_pad, A)

    def head_bias(b):   # (1,H) -> (1, A)
        b = b.reshape(num_heads, head_dim)
        b = jnp.pad(b, ((0, 0), (0, hd_pad - head_dim)))
        return b.reshape(1, A)

    def head_rows(w):   # wo: (H,H) -> (A, h_pad): head h in rows [h*hd_pad, ...)
        w = w.reshape(num_heads, head_dim, hidden)
        w = jnp.pad(w, ((0, 0), (0, hd_pad - head_dim), (0, h_pad - hidden)))
        return w.reshape(A, h_pad)

    def vrow(v):
        return _pad_to(v.reshape(1, -1), (1, vec_pad))

    def pad_layer(p):
        bqkv = jnp.concatenate(
            [head_bias(p["bq"]), head_bias(p["bk"]), head_bias(p["bv"])], axis=1)
        vecs = jnp.concatenate(
            [vrow(p["ln1_g"]), vrow(p["ln1_b"]), vrow(bqkv), vrow(p["bo"]),
             vrow(p["ln2_g"]), vrow(p["ln2_b"]), vrow(p["b1"]), vrow(p["b2"])],
            axis=0).astype(jnp.float32)
        return dict(
            vecs=vecs,
            wqkv=jnp.concatenate(
                [head_cols(p["wq"]), head_cols(p["wk"]), head_cols(p["wv"])],
                axis=1).astype(jnp.bfloat16),
            wo=head_rows(p["wo"]).astype(jnp.bfloat16),
            w1=_pad_to(p["w1"], (h_pad, f_pad)).astype(jnp.bfloat16),
            w2=_pad_to(p["w2"], (f_pad, h_pad)).astype(jnp.bfloat16),
        )

    padded = [pad_layer(p) for p in layer_params]
    stacked = {k: jnp.stack([pp[k] for pp in padded], axis=0)
               for k in ("vecs", "wqkv", "wo", "w1", "w2")}
    dims = dict(head_dim=head_dim, hd_pad=hd_pad, h_pad=h_pad, f_pad=f_pad,
                A=A, vec_pad=vec_pad)
    return stacked, dims


# --------------------------------- wrapper ----------------------------------
def _tpu_kind():
    try:
        return jax.devices()[0].device_kind.lower()
    except Exception:
        return ""


def _vmem_capacity_bytes(kind):
    if "v7" in kind:
        return 48 << 20           # v7x: 64 MiB per TensorCore, leave headroom
    if any(t in kind for t in ("v5 lite", "v5e", "v5litepod", "v6")):
        return 100 << 20          # v5e / v6e: 128 MiB physical
    return 64 << 20               # conservative default


def vit_encoder(x, layer_params, num_heads):
    B, S, H = x.shape
    assert H % num_heads == 0
    ffn = layer_params[0]["w1"].shape[1]
    L = len(layer_params)

    stacked, d = _prepare_stacked_params(layer_params, H, ffn, num_heads)
    h_pad, f_pad, hd_pad = d["h_pad"], d["f_pad"], d["hd_pad"]
    A, vec_pad, head_dim = d["A"], d["vec_pad"], d["head_dim"]
    s_pad = _round_up(S, 8)                 # padded keys are masked in softmax

    x_pad = _pad_to(x.astype(jnp.float32), (B, s_pad, h_pad))

    kind = _tpu_kind()
    cap = _vmem_capacity_bytes(kind)

    # ---- generation-aware VMEM budget and batch-block size ------------------
    # bf16 weights + packed f32 vectors streamed per layer (double-buffered).
    per_layer_stream = (2 * (h_pad * 3 * A + A * h_pad + h_pad * f_pad
                             + f_pad * h_pad) + 4 * 8 * vec_pad)
    # per-element intermediates (only one element live inside the fori_loop).
    interm = (6 * s_pad * 3 * A            # qkv f32 + bf16 q/k/v slices
              + 6 * s_pad * A              # ctx f32 + bf16
              + 12 * s_pad * s_pad         # live score/prob tiles
              + 10 * s_pad * f_pad         # z f32, gelu f32/bf16
              + 24 * s_pad * h_pad)        # h1/res1/h2/attn/out f32
    per_elem_act = 4 * s_pad * h_pad * 4   # in (2x) + out (2x) buffered blocks

    budget = cap - (4 << 20)
    avail = budget - 2 * per_layer_stream - interm
    bb = int(max(1, min(B, avail // per_elem_act)))
    while B % bb:
        bb -= 1
    if "v7" in kind and B >= 2 and B // bb < 2:
        # Keep both v7x TensorCores busy on the "parallel" batch axis.
        bb = max(1, B // 2)
        while B % bb:
            bb -= 1

    vmem_bytes = 2 * per_layer_stream + bb * per_elem_act + interm + (4 << 20)
    vmem_bytes = int(min(cap, max(vmem_bytes, 24 << 20)))
    # TODO(synk): for ViT-L/H-sized layers on v7x (double-buffered weights +
    # slab > 64 MiB) add a K-tiling path that streams w1/w2 slices via a third
    # grid axis or pltpu.emit_pipeline instead of whole-layer weight blocks.

    grid = (B // bb, L)
    act_spec = pl.BlockSpec((bb, s_pad, h_pad), lambda b, l: (b, 0, 0))
    vec_spec = pl.BlockSpec((1, 8, vec_pad), lambda b, l: (l, 0, 0))
    wqkv_spec = pl.BlockSpec((1, h_pad, 3 * A), lambda b, l: (l, 0, 0))
    wo_spec = pl.BlockSpec((1, A, h_pad), lambda b, l: (l, 0, 0))
    w1_spec = pl.BlockSpec((1, h_pad, f_pad), lambda b, l: (l, 0, 0))
    w2_spec = pl.BlockSpec((1, f_pad, h_pad), lambda b, l: (l, 0, 0))

    kernel = functools.partial(
        vit_encoder_kernel, num_heads=num_heads, head_dim=head_dim,
        hd_pad=hd_pad, h_real=H, h_pad=h_pad, f_pad=f_pad, s_real=S, bb=bb)

    out = pl.pallas_call(
        kernel,
        out_shape=jax.ShapeDtypeStruct((B, s_pad, h_pad), jnp.float32),
        grid=grid,
        in_specs=[act_spec, vec_spec, wqkv_spec, wo_spec, w1_spec, w2_spec],
        out_specs=act_spec,
        compiler_params=pltpu.CompilerParams(
            dimension_semantics=("parallel", "arbitrary"),
            vmem_limit_bytes=vmem_bytes),
    )(x_pad, stacked["vecs"], stacked["wqkv"], stacked["wo"],
      stacked["w1"], stacked["w2"])

    return out[:, :S, :H]


# ---------------------------- pure-JAX reference ----------------------------
def _bf16_dot(a, b):
    return jnp.dot(a.astype(jnp.bfloat16), b.astype(jnp.bfloat16),
                   preferred_element_type=jnp.float32)


def _ln_ref(x, g, b):
    mu = jnp.mean(x, axis=-1, keepdims=True)
    var = jnp.mean((x - mu) ** 2, axis=-1, keepdims=True)
    return (x - mu) * jax.lax.rsqrt(var + LN_EPS) * g + b


def _ref_layer(x, p, num_heads):
    B, S, H = x.shape
    hd = H // num_heads
    bf16 = jnp.bfloat16
    h = _ln_ref(x, p["ln1_g"][0], p["ln1_b"][0])
    q = _bf16_dot(h, p["wq"]) + p["bq"][0]
    k = _bf16_dot(h, p["wk"]) + p["bk"][0]
    v = _bf16_dot(h, p["wv"]) + p["bv"][0]
    q = q.reshape(B, S, num_heads, hd).transpose(0, 2, 1, 3)
    k = k.reshape(B, S, num_heads, hd).transpose(0, 2, 1, 3)
    v = v.reshape(B, S, num_heads, hd).transpose(0, 2, 1, 3)
    s = jnp.einsum("bhqd,bhkd->bhqk", q.astype(bf16), k.astype(bf16),
                   preferred_element_type=jnp.float32) / math.sqrt(hd)
    pr = jax.nn.softmax(s, axis=-1)
    ctx = jnp.einsum("bhqk,bhkd->bhqd", pr.astype(bf16), v.astype(bf16),
                     preferred_element_type=jnp.float32)
    ctx = ctx.transpose(0, 2, 1, 3).reshape(B, S, H)
    attn = _bf16_dot(ctx, p["wo"]) + p["bo"][0]
    res1 = attn + x
    h2 = _ln_ref(res1, p["ln2_g"][0], p["ln2_b"][0])
    z = _bf16_dot(h2, p["w1"]) + p["b1"][0]
    g = _gelu_tanh(z)
    return _bf16_dot(g, p["w2"]) + p["b2"][0] + res1


def _ref_encoder(x, layer_params, num_heads):
    for p in layer_params:
        x = _ref_layer(x, p, num_heads)
    return x


# -------------------------------- params ------------------------------------
def make_layer_params(key, hidden, ffn, std=0.02):
    ks = jax.random.split(key, 14)
    n = jax.random.normal
    return {
        "ln1_g": 1.0 + 0.1 * n(ks[0], (1, hidden), jnp.float32),
        "ln1_b": 0.1 * n(ks[1], (1, hidden), jnp.float32),
        "wq": std * n(ks[2], (hidden, hidden), jnp.float32),
        "bq": std * n(ks[3], (1, hidden), jnp.float32),
        "wk": std * n(ks[4], (hidden, hidden), jnp.float32),
        "bk": std * n(ks[5], (1, hidden), jnp.float32),
        "wv": std * n(ks[6], (hidden, hidden), jnp.float32),
        "bv": std * n(ks[7], (1, hidden), jnp.float32),
        "wo": std * n(ks[8], (hidden, hidden), jnp.float32),
        "bo": std * n(ks[9], (1, hidden), jnp.float32),
        "ln2_g": 1.0 + 0.1 * n(ks[10], (1, hidden), jnp.float32),
        "ln2_b": 0.1 * n(ks[11], (1, hidden), jnp.float32),
        "w1": std * n(ks[12], (hidden, ffn), jnp.float32),
        "b1": jnp.zeros((1, ffn), jnp.float32),
        "w2": std * n(ks[13], (ffn, hidden), jnp.float32),
        "b2": jnp.zeros((1, hidden), jnp.float32),
    }


# -------------------------------- main --------------------------------------
if __name__ == "__main__":
    # TODO(synk): dropout layers are treated as eval-mode identity (no RNG drop);
    # tensor-parallel process groups collapse to a single device.
    master = jax.random.PRNGKey(0)

    def run_case(B, S, HIDDEN, NUM_HEADS, FFN, NUM_LAYERS, key):
        k_x, *k_layers = jax.random.split(key, 1 + NUM_LAYERS)
        x = jax.random.normal(k_x, (B, S, HIDDEN), jnp.float32)
        params = [make_layer_params(k, HIDDEN, FFN) for k in k_layers]
        out = jax.block_until_ready(vit_encoder(x, params, NUM_HEADS))
        ref = _ref_encoder(x, params, NUM_HEADS)
        # bf16 matmuls + approx reciprocal -> relaxed tolerance.
        np.testing.assert_allclose(np.asarray(out), np.asarray(ref),
                                   rtol=2e-2, atol=2e-2)

    # sublane-aligned sequence length
    run_case(B=2, S=8, HIDDEN=32, NUM_HEADS=4, FFN=128, NUM_LAYERS=2,
             key=jax.random.fold_in(master, 0))
    # unaligned sequence length (exercises S padding + key masking)
    run_case(B=2, S=10, HIDDEN=32, NUM_HEADS=4, FFN=128, NUM_LAYERS=2,
             key=jax.random.fold_in(master, 1))

    print("KERNEL_OK")
</pallas_src>

<mosaic_0001>
module attributes {stable_mosaic.version = 11 : i64} {
  func.func @vit_encoder_kernel(%arg0: i32, %arg1: i32, %arg2: memref<2x8x128xf32, #tpu.memory_space<vmem>>, %arg3: memref<1x8x1536xf32, #tpu.memory_space<vmem>>, %arg4: memref<1x128x1536xbf16, #tpu.memory_space<vmem>>, %arg5: memref<1x512x128xbf16, #tpu.memory_space<vmem>>, %arg6: memref<1x128x128xbf16, #tpu.memory_space<vmem>>, %arg7: memref<1x128x128xbf16, #tpu.memory_space<vmem>>, %arg8: memref<2x8x128xf32, #tpu.memory_space<vmem>>) attributes {dimension_semantics = [#tpu.dimension_semantics<parallel>, #tpu.dimension_semantics<arbitrary>], iteration_bounds = array<i64: 1, 2>, scalar_prefetch = 0 : i64, scratch_operands = 0 : i64, tpu.core_type = #tpu.core_type<tc>, window_params = [{transform_indices = @transform_0, window_bounds = array<i64: 2, 8, 128>}, {transform_indices = @transform_1, window_bounds = array<i64: 1, 8, 1536>}, {transform_indices = @transform_2, window_bounds = array<i64: 1, 128, 1536>}, {transform_indices = @transform_3, window_bounds = array<i64: 1, 512, 128>}, {transform_indices = @transform_4, window_bounds = array<i64: 1, 128, 128>}, {transform_indices = @transform_5, window_bounds = array<i64: 1, 128, 128>}, {transform_indices = @transform_6, window_bounds = array<i64: 2, 8, 128>}]} {
    %c0_i32 = arith.constant 0 : i32
    %0 = arith.cmpi eq, %arg1, %c0_i32 : i32
    %1 = arith.extui %0 : i1 to i32
    %c0_i32_0 = arith.constant 0 : i32
    %2 = arith.cmpi ne, %1, %c0_i32_0 : i32
    scf.if %2 {
      %c0_17 = arith.constant 0 : index
      %c0_18 = arith.constant 0 : index
      %c0_19 = arith.constant 0 : index
      %22 = vector.load %arg2[%c0_17, %c0_18, %c0_19] : memref<2x8x128xf32, #tpu.memory_space<vmem>>, vector<2x8x128xf32>
      %c0_20 = arith.constant 0 : index
      %c0_21 = arith.constant 0 : index
      %c0_22 = arith.constant 0 : index
      %23 = vector.load %arg8[%c0_20, %c0_21, %c0_22] : memref<2x8x128xf32, #tpu.memory_space<vmem>>, vector<2x8x128xf32>
      tpu.vector_store %arg8[%c0_20, %c0_21, %c0_22], %22 {strides = array<i32>} : memref<2x8x128xf32, #tpu.memory_space<vmem>>, vector<2x8x128xf32>,
    } else {
    }
    %c0 = arith.constant 0 : index
    %c0_1 = arith.constant 0 : index
    %c0_2 = arith.constant 0 : index
    %3 = vector.load %arg3[%c0, %c0_1, %c0_2] : memref<1x8x1536xf32, #tpu.memory_space<vmem>>, vector<1x8x1536xf32>
    %4 = vector.shape_cast %3 : vector<1x8x1536xf32> to vector<8x1536xf32>
    %5 = vector.extract_strided_slice %4 {offsets = [0, 0], sizes = [1, 128], strides = [1, 1]} : vector<8x1536xf32> to vector<1x128xf32>
    %6 = vector.extract_strided_slice %4 {offsets = [1, 0], sizes = [1, 128], strides = [1, 1]} : vector<8x1536xf32> to vector<1x128xf32>
    %7 = vector.extract_strided_slice %4 {offsets = [2, 0], sizes = [1, 1536], strides = [1, 1]} : vector<8x1536xf32> to vector<1x1536xf32>
    %8 = vector.extract_strided_slice %4 {offsets = [3, 0], sizes = [1, 128], strides = [1, 1]} : vector<8x1536xf32> to vector<1x128xf32>
    %9 = vector.extract_strided_slice %4 {offsets = [4, 0], sizes = [1, 128], strides = [1, 1]} : vector<8x1536xf32> to vector<1x128xf32>
    %10 = vector.extract_strided_slice %4 {offsets = [5, 0], sizes = [1, 128], strides = [1, 1]} : vector<8x1536xf32> to vector<1x128xf32>
    %11 = vector.extract_strided_slice %4 {offsets = [6, 0], sizes = [1, 128], strides = [1, 1]} : vector<8x1536xf32> to vector<1x128xf32>
    %12 = vector.extract_strided_slice %4 {offsets = [7, 0], sizes = [1, 128], strides = [1, 1]} : vector<8x1536xf32> to vector<1x128xf32>
    %c0_3 = arith.constant 0 : index
    %c0_4 = arith.constant 0 : index
    %c0_5 = arith.constant 0 : index
    %13 = vector.load %arg4[%c0_3, %c0_4, %c0_5] : memref<1x128x1536xbf16, #tpu.memory_space<vmem>>, vector<1x128x1536xbf16>
    %14 = vector.shape_cast %13 : vector<1x128x1536xbf16> to vector<128x1536xbf16>
    %c0_6 = arith.constant 0 : index
    %c0_7 = arith.constant 0 : index
    %c0_8 = arith.constant 0 : index
    %15 = vector.load %arg5[%c0_6, %c0_7, %c0_8] : memref<1x512x128xbf16, #tpu.memory_space<vmem>>, vector<1x512x128xbf16>
    %16 = vector.shape_cast %15 : vector<1x512x128xbf16> to vector<512x128xbf16>
    %c0_9 = arith.constant 0 : index
    %c0_10 = arith.constant 0 : index
    %c0_11 = arith.constant 0 : index
    %17 = vector.load %arg6[%c0_9, %c0_10, %c0_11] : memref<1x128x128xbf16, #tpu.memory_space<vmem>>, vector<1x128x128xbf16>
    %18 = vector.shape_cast %17 : vector<1x128x128xbf16> to vector<128x128xbf16>
    %c0_12 = arith.constant 0 : index
    %c0_13 = arith.constant 0 : index
    %c0_14 = arith.constant 0 : index
    %19 = vector.load %arg7[%c0_12, %c0_13, %c0_14] : memref<1x128x128xbf16, #tpu.memory_space<vmem>>, vector<1x128x128xbf16>
    %20 = vector.shape_cast %19 : vector<1x128x128xbf16> to vector<128x128xbf16>
    %c0_i32_15 = arith.constant 0 : i32
    %c2_i32 = arith.constant 2 : i32
    %21 = arith.addi %c0_i32_15, %c2_i32 : i32
    %c1_i32 = arith.constant 1 : i32
    scf.for %arg9 = %c0_i32_15 to %21 step %c1_i32  : i32 {
      %22 = arith.index_cast %arg9 : i32 to index
      %c0_17 = arith.constant 0 : index
      %c0_18 = arith.constant 0 : index
      %23 = vector.load %arg8[%22, %c0_17, %c0_18] : memref<2x8x128xf32, #tpu.memory_space<vmem>>, vector<1x8x128xf32>
      %24 = vector.shape_cast %23 : vector<1x8x128xf32> to vector<8x128xf32>
      %cst = arith.constant dense<0.000000e+00> : vector<8xf32>
      %25 = vector.multi_reduction <add>, %24, %cst [1] : vector<8x128xf32> to vector<8xf32>
      %26 = vector.shape_cast %25 : vector<8xf32> to vector<8x1xf32>
      %cst_19 = arith.constant 3.125000e-02 : f32
      %27 = vector.broadcast %cst_19 : f32 to vector<8x1xf32>
      %28 = arith.mulf %26, %27 : vector<8x1xf32>
      %29 = vector.broadcast %28 : vector<8x1xf32> to vector<8x128xf32>
      %30 = arith.subf %24, %29 : vector<8x128xf32>
      %31 = tpu.iota {dimensions = array<i32: 1>} : vector<1x128xi32>
      %c32_i32 = arith.constant 32 : i32
      %32 = vector.broadcast %c32_i32 : i32 to vector<1x128xi32>
      %33 = arith.cmpi slt, %31, %32 : vector<1x128xi32>
      %34 = arith.extui %33 : vector<1x128xi1> to vector<1x128xi32>
      %35 = arith.sitofp %34 : vector<1x128xi32> to vector<1x128xf32>
      %36 = arith.mulf %30, %30 : vector<8x128xf32>
      %37 = vector.broadcast %35 : vector<1x128xf32> to vector<8x128xf32>
      %38 = arith.mulf %36, %37 : vector<8x128xf32>
      %cst_20 = arith.constant dense<0.000000e+00> : vector<8xf32>
      %39 = vector.multi_reduction <add>, %38, %cst_20 [1] : vector<8x128xf32> to vector<8xf32>
      %40 = vector.shape_cast %39 : vector<8xf32> to vector<8x1xf32>
      %cst_21 = arith.constant 3.125000e-02 : f32
      %41 = vector.broadcast %cst_21 : f32 to vector<8x1xf32>
      %42 = arith.mulf %40, %41 : vector<8x1xf32>
      %cst_22 = arith.constant 9.99999996E-13 : f32
      %43 = vector.broadcast %cst_22 : f32 to vector<8x1xf32>
      %44 = arith.addf %42, %43 : vector<8x1xf32>
      %45 = math.rsqrt %44 : vector<8x1xf32>
      %46 = vector.broadcast %45 : vector<8x1xf32> to vector<8x128xf32>
      %47 = arith.mulf %30, %46 : vector<8x128xf32>
      %48 = vector.broadcast %5 : vector<1x128xf32> to vector<8x128xf32>
      %49 = arith.mulf %47, %48 : vector<8x128xf32>
      %50 = vector.broadcast %6 : vector<1x128xf32> to vector<8x128xf32>
      %51 = arith.addf %49, %50 : vector<8x128xf32>
      %52 = arith.truncf %51 : vector<8x128xf32> to vector<8x128xbf16>
      %cst_23 = arith.constant dense<0.000000e+00> : vector<8x1536xf32>
      %53 = tpu.matmul %52, %14, %cst_23 {dimension_numbers = #tpu.dot_dimension_numbers<[1], [0], [0], [1], [0, 0, 1, 1], [], []>} : vector<8x128xbf16>, vector<128x1536xbf16>, vector<8x1536xf32> -> vector<8x1536xf32>
      %54 = vector.broadcast %7 : vector<1x1536xf32> to vector<8x1536xf32>
      %55 = arith.addf %53, %54 : vector<8x1536xf32>
      %56 = vector.extract_strided_slice %55 {offsets = [0, 0], sizes = [8, 128], strides = [1, 1]} : vector<8x1536xf32> to vector<8x128xf32>
      %57 = arith.truncf %56 : vector<8x128xf32> to vector<8x128xbf16>
      %58 = vector.extract_strided_slice %55 {offsets = [0, 512], sizes = [8, 128], strides = [1, 1]} : vector<8x1536xf32> to vector<8x128xf32>
      %59 = arith.truncf %58 : vector<8x128xf32> to vector<8x128xbf16>
      %60 = vector.extract_strided_slice %55 {offsets = [0, 1024], sizes = [8, 128], strides = [1, 1]} : vector<8x1536xf32> to vector<8x128xf32>
      %61 = arith.truncf %60 : vector<8x128xf32> to vector<8x128xbf16>
      %cst_24 = arith.constant dense<0.000000e+00> : vector<8x8xf32>
      %62 = tpu.matmul %57, %59, %cst_24 {dimension_numbers = #tpu.dot_dimension_numbers<[1], [1], [0], [0], [0, 0, 1, 0], [], []>} : vector<8x128xbf16>, vector<8x128xbf16>, vector<8x8xf32> -> vector<8x8xf32>
      %cst_25 = arith.constant 0.353553385 : f32
      %63 = vector.broadcast %cst_25 : f32 to vector<8x8xf32>
      %64 = arith.mulf %62, %63 : vector<8x8xf32>
      %cst_26 = arith.constant dense<0xFF800000> : vector<8xf32>
      %65 = vector.multi_reduction <maximumf>, %64, %cst_26 [1] : vector<8x8xf32> to vector<8xf32>
      %66 = vector.shape_cast %65 : vector<8xf32> to vector<8x1xf32>
      %67 = vector.broadcast %66 : vector<8x1xf32> to vector<8x8xf32>
      %68 = arith.subf %64, %67 : vector<8x8xf32>
      %69 = math.exp %68 : vector<8x8xf32>
      %cst_27 = arith.constant dense<0.000000e+00> : vector<8xf32>
      %70 = vector.multi_reduction <add>, %69, %cst_27 [1] : vector<8x8xf32> to vector<8xf32>
      %71 = vector.shape_cast %70 : vector<8xf32> to vector<8x1xf32>
      %72 = tpu.reciprocal %71 {approx = true} : vector<8x1xf32> -> vector<8x1xf32>
      %73 = vector.broadcast %72 : vector<8x1xf32> to vector<8x8xf32>
      %74 = arith.mulf %69, %73 : vector<8x8xf32>
      %75 = arith.truncf %74 : vector<8x8xf32> to vector<8x8xbf16>
      %cst_28 = arith.constant dense<0.000000e+00> : vector<8x128xf32>
      %76 = tpu.matmul %75, %61, %cst_28 {dimension_numbers = #tpu.dot_dimension_numbers<[1], [0], [0], [1], [0, 0, 1, 1], [], []>} : vector<8x8xbf16>, vector<8x128xbf16>, vector<8x128xf32> -> vector<8x128xf32>
      %77 = vector.extract_strided_slice %55 {offsets = [0, 128], sizes = [8, 128], strides = [1, 1]} : vector<8x1536xf32> to vector<8x128xf32>
      %78 = arith.truncf %77 : vector<8x128xf32> to vector<8x128xbf16>
      %79 = vector.extract_strided_slice %55 {offsets = [0, 640], sizes = [8, 128], strides = [1, 1]} : vector<8x1536xf32> to vector<8x128xf32>
      %80 = arith.truncf %79 : vector<8x128xf32> to vector<8x128xbf16>
      %81 = vector.extract_strided_slice %55 {offsets = [0, 1152], sizes = [8, 128], strides = [1, 1]} : vector<8x1536xf32> to vector<8x128xf32>
      %82 = arith.truncf %81 : vector<8x128xf32> to vector<8x128xbf16>
      %cst_29 = arith.constant dense<0.000000e+00> : vector<8x8xf32>
      %83 = tpu.matmul %78, %80, %cst_29 {dimension_numbers = #tpu.dot_dimension_numbers<[1], [1], [0], [0], [0, 0, 1, 0], [], []>} : vector<8x128xbf16>, vector<8x128xbf16>, vector<8x8xf32> -> vector<8x8xf32>
      %cst_30 = arith.constant 0.353553385 : f32
      %84 = vector.broadcast %cst_30 : f32 to vector<8x8xf32>
      %85 = arith.mulf %83, %84 : vector<8x8xf32>
      %cst_31 = arith.constant dense<0xFF800000> : vector<8xf32>
      %86 = vector.multi_reduction <maximumf>, %85, %cst_31 [1] : vector<8x8xf32> to vector<8xf32>
      %87 = vector.shape_cast %86 : vector<8xf32> to vector<8x1xf32>
      %88 = vector.broadcast %87 : vector<8x1xf32> to vector<8x8xf32>
      %89 = arith.subf %85, %88 : vector<8x8xf32>
      %90 = math.exp %89 : vector<8x8xf32>
      %cst_32 = arith.constant dense<0.000000e+00> : vector<8xf32>
      %91 = vector.multi_reduction <add>, %90, %cst_32 [1] : vector<8x8xf32> to vector<8xf32>
      %92 = vector.shape_cast %91 : vector<8xf32> to vector<8x1xf32>
      %93 = tpu.reciprocal %92 {approx = true} : vector<8x1xf32> -> vector<8x1xf32>
      %94 = vector.broadcast %93 : vector<8x1xf32> to vector<8x8xf32>
      %95 = arith.mulf %90, %94 : vector<8x8xf32>
      %96 = arith.truncf %95 : vector<8x8xf32> to vector<8x8xbf16>
      %cst_33 = arith.constant dense<0.000000e+00> : vector<8x128xf32>
      %97 = tpu.matmul %96, %82, %cst_33 {dimension_numbers = #tpu.dot_dimension_numbers<[1], [0], [0], [1], [0, 0, 1, 1], [], []>} : vector<8x8xbf16>, vector<8x128xbf16>, vector<8x128xf32> -> vector<8x128xf32>
      %98 = vector.extract_strided_slice %55 {offsets = [0, 256], sizes = [8, 128], strides = [1, 1]} : vector<8x1536xf32> to vector<8x128xf32>
      %99 = arith.truncf %98 : vector<8x128xf32> to vector<8x128xbf16>
      %100 = vector.extract_strided_slice %55 {offsets = [0, 768], sizes = [8, 128], strides = [1, 1]} : vector<8x1536xf32> to vector<8x128xf32>
      %101 = arith.truncf %100 : vector<8x128xf32> to vector<8x128xbf16>
      %102 = vector.extract_strided_slice %55 {offsets = [0, 1280], sizes = [8, 128], strides = [1, 1]} : vector<8x1536xf32> to vector<8x128xf32>
      %103 = arith.truncf %102 : vector<8x128xf32> to vector<8x128xbf16>
      %cst_34 = arith.constant dense<0.000000e+00> : vector<8x8xf32>
      %104 = tpu.matmul %99, %101, %cst_34 {dimension_numbers = #tpu.dot_dimension_numbers<[1], [1], [0], [0], [0, 0, 1, 0], [], []>} : vector<8x128xbf16>, vector<8x128xbf16>, vector<8x8xf32> -> vector<8x8xf32>
      %cst_35 = arith.constant 0.353553385 : f32
      %105 = vector.broadcast %cst_35 : f32 to vector<8x8xf32>
      %106 = arith.mulf %104, %105 : vector<8x8xf32>
      %cst_36 = arith.constant dense<0xFF800000> : vector<8xf32>
      %107 = vector.multi_reduction <maximumf>, %106, %cst_36 [1] : vector<8x8xf32> to vector<8xf32>
      %108 = vector.shape_cast %107 : vector<8xf32> to vector<8x1xf32>
      %109 = vector.broadcast %108 : vector<8x1xf32> to vector<8x8xf32>
      %110 = arith.subf %106, %109 : vector<8x8xf32>
      %111 = math.exp %110 : vector<8x8xf32>
      %cst_37 = arith.constant dense<0.000000e+00> : vector<8xf32>
      %112 = vector.multi_reduction <add>, %111, %cst_37 [1] : vector<8x8xf32> to vector<8xf32>
      %113 = vector.shape_cast %112 : vector<8xf32> to vector<8x1xf32>
      %114 = tpu.reciprocal %113 {approx = true} : vector<8x1xf32> -> vector<8x1xf32>
      %115 = vector.broadcast %114 : vector<8x1xf32> to vector<8x8xf32>
      %116 = arith.mulf %111, %115 : vector<8x8xf32>
      %117 = arith.truncf %116 : vector<8x8xf32> to vector<8x8xbf16>
      %cst_38 = arith.constant dense<0.000000e+00> : vector<8x128xf32>
      %118 = tpu.matmul %117, %103, %cst_38 {dimension_numbers = #tpu.dot_dimension_numbers<[1], [0], [0], [1], [0, 0, 1, 1], [], []>} : vector<8x8xbf16>, vector<8x128xbf16>, vector<8x128xf32> -> vector<8x128xf32>
      %119 = vector.extract_strided_slice %55 {offsets = [0, 384], sizes = [8, 128], strides = [1, 1]} : vector<8x1536xf32> to vector<8x128xf32>
      %120 = arith.truncf %119 : vector<8x128xf32> to vector<8x128xbf16>
      %121 = vector.extract_strided_slice %55 {offsets = [0, 896], sizes = [8, 128], strides = [1, 1]} : vector<8x1536xf32> to vector<8x128xf32>
      %122 = arith.truncf %121 : vector<8x128xf32> to vector<8x128xbf16>
      %123 = vector.extract_strided_slice %55 {offsets = [0, 1408], sizes = [8, 128], strides = [1, 1]} : vector<8x1536xf32> to vector<8x128xf32>
      %124 = arith.truncf %123 : vector<8x128xf32> to vector<8x128xbf16>
      %cst_39 = arith.constant dense<0.000000e+00> : vector<8x8xf32>
      %125 = tpu.matmul %120, %122, %cst_39 {dimension_numbers = #tpu.dot_dimension_numbers<[1], [1], [0], [0], [0, 0, 1, 0], [], []>} : vector<8x128xbf16>, vector<8x128xbf16>, vector<8x8xf32> -> vector<8x8xf32>
      %cst_40 = arith.constant 0.353553385 : f32
      %126 = vector.broadcast %cst_40 : f32 to vector<8x8xf32>
      %127 = arith.mulf %125, %126 : vector<8x8xf32>
      %cst_41 = arith.constant dense<0xFF800000> : vector<8xf32>
      %128 = vector.multi_reduction <maximumf>, %127, %cst_41 [1] : vector<8x8xf32> to vector<8xf32>
      %129 = vector.shape_cast %128 : vector<8xf32> to vector<8x1xf32>
      %130 = vector.broadcast %129 : vector<8x1xf32> to vector<8x8xf32>
      %131 = arith.subf %127, %130 : vector<8x8xf32>
      %132 = math.exp %131 : vector<8x8xf32>
      %cst_42 = arith.constant dense<0.000000e+00> : vector<8xf32>
      %133 = vector.multi_reduction <add>, %132, %cst_42 [1] : vector<8x8xf32> to vector<8xf32>
      %134 = vector.shape_cast %133 : vector<8xf32> to vector<8x1xf32>
      %135 = tpu.reciprocal %134 {approx = true} : vector<8x1xf32> -> vector<8x1xf32>
      %136 = vector.broadcast %135 : vector<8x1xf32> to vector<8x8xf32>
      %137 = arith.mulf %132, %136 : vector<8x8xf32>
      %138 = arith.truncf %137 : vector<8x8xf32> to vector<8x8xbf16>
      %cst_43 = arith.constant dense<0.000000e+00> : vector<8x128xf32>
      %139 = tpu.matmul %138, %124, %cst_43 {dimension_numbers = #tpu.dot_dimension_numbers<[1], [0], [0], [1], [0, 0, 1, 1], [], []>} : vector<8x8xbf16>, vector<8x128xbf16>, vector<8x128xf32> -> vector<8x128xf32>
      %140 = tpu.concatenate %76, %97, %118, %139 in 1 : vector<8x128xf32>, vector<8x128xf32>, vector<8x128xf32>, vector<8x128xf32> -> vector<8x512xf32>
      %141 = arith.truncf %140 : vector<8x512xf32> to vector<8x512xbf16>
      %cst_44 = arith.constant dense<0.000000e+00> : vector<8x128xf32>
      %142 = tpu.matmul %141, %16, %cst_44 {dimension_numbers = #tpu.dot_dimension_numbers<[1], [0], [0], [1], [0, 0, 1, 1], [], []>} : vector<8x512xbf16>, vector<512x128xbf16>, vector<8x128xf32> -> vector<8x128xf32>
      %143 = vector.broadcast %8 : vector<1x128xf32> to vector<8x128xf32>
      %144 = arith.addf %142, %143 : vector<8x128xf32>
      %145 = arith.addf %144, %24 : vector<8x128xf32>
      %cst_45 = arith.constant dense<0.000000e+00> : vector<8xf32>
      %146 = vector.multi_reduction <add>, %145, %cst_45 [1] : vector<8x128xf32> to vector<8xf32>
      %147 = vector.shape_cast %146 : vector<8xf32> to vector<8x1xf32>
      %cst_46 = arith.constant 3.125000e-02 : f32
      %148 = vector.broadcast %cst_46 : f32 to vector<8x1xf32>
      %149 = arith.mulf %147, %148 : vector<8x1xf32>
      %150 = vector.broadcast %149 : vector<8x1xf32> to vector<8x128xf32>
      %151 = arith.subf %145, %150 : vector<8x128xf32>
      %152 = tpu.iota {dimensions = array<i32: 1>} : vector<1x128xi32>
      %c32_i32_47 = arith.constant 32 : i32
      %153 = vector.broadcast %c32_i32_47 : i32 to vector<1x128xi32>
      %154 = arith.cmpi slt, %152, %153 : vector<1x128xi32>
      %155 = arith.extui %154 : vector<1x128xi1> to vector<1x128xi32>
      %156 = arith.sitofp %155 : vector<1x128xi32> to vector<1x128xf32>
      %157 = arith.mulf %151, %151 : vector<8x128xf32>
      %158 = vector.broadcast %156 : vector<1x128xf32> to vector<8x128xf32>
      %159 = arith.mulf %157, %158 : vector<8x128xf32>
      %cst_48 = arith.constant dense<0.000000e+00> : vector<8xf32>
      %160 = vector.multi_reduction <add>, %159, %cst_48 [1] : vector<8x128xf32> to vector<8xf32>
      %161 = vector.shape_cast %160 : vector<8xf32> to vector<8x1xf32>
      %cst_49 = arith.constant 3.125000e-02 : f32
      %162 = vector.broadcast %cst_49 : f32 to vector<8x1xf32>
      %163 = arith.mulf %161, %162 : vector<8x1xf32>
      %cst_50 = arith.constant 9.99999996E-13 : f32
      %164 = vector.broadcast %cst_50 : f32 to vector<8x1xf32>
      %165 = arith.addf %163, %164 : vector<8x1xf32>
      %166 = math.rsqrt %165 : vector<8x1xf32>
      %167 = vector.broadcast %166 : vector<8x1xf32> to vector<8x128xf32>
      %168 = arith.mulf %151, %167 : vector<8x128xf32>
      %169 = vector.broadcast %9 : vector<1x128xf32> to vector<8x128xf32>
      %170 = arith.mulf %168, %169 : vector<8x128xf32>
      %171 = vector.broadcast %10 : vector<1x128xf32> to vector<8x128xf32>
      %172 = arith.addf %170, %171 : vector<8x128xf32>
      %173 = arith.truncf %172 : vector<8x128xf32> to vector<8x128xbf16>
      %cst_51 = arith.constant dense<0.000000e+00> : vector<8x128xf32>
      %174 = tpu.matmul %173, %18, %cst_51 {dimension_numbers = #tpu.dot_dimension_numbers<[1], [0], [0], [1], [0, 0, 1, 1], [], []>} : vector<8x128xbf16>, vector<128x128xbf16>, vector<8x128xf32> -> vector<8x128xf32>
      %175 = vector.broadcast %11 : vector<1x128xf32> to vector<8x128xf32>
      %176 = arith.addf %174, %175 : vector<8x128xf32>
      %cst_52 = arith.constant 5.000000e-01 : f32
      %177 = vector.broadcast %cst_52 : f32 to vector<8x128xf32>
      %178 = arith.mulf %177, %176 : vector<8x128xf32>
      %cst_53 = arith.constant 0.797884583 : f32
      %179 = vector.broadcast %cst_53 : f32 to vector<8x128xf32>
      %180 = arith.mulf %179, %176 : vector<8x128xf32>
      %cst_54 = arith.constant 4.471500e-02 : f32
      %181 = vector.broadcast %cst_54 : f32 to vector<8x128xf32>
      %182 = arith.mulf %181, %176 : vector<8x128xf32>
      %183 = arith.mulf %182, %176 : vector<8x128xf32>
      %cst_55 = arith.constant 1.000000e+00 : f32
      %184 = vector.broadcast %cst_55 : f32 to vector<8x128xf32>
      %185 = arith.addf %184, %183 : vector<8x128xf32>
      %186 = arith.mulf %180, %185 : vector<8x128xf32>
      %187 = math.tanh %186 : vector<8x128xf32>
      %cst_56 = arith.constant 1.000000e+00 : f32
      %188 = vector.broadcast %cst_56 : f32 to vector<8x128xf32>
      %189 = arith.addf %188, %187 : vector<8x128xf32>
      %190 = arith.mulf %178, %189 : vector<8x128xf32>
      %191 = arith.truncf %190 : vector<8x128xf32> to vector<8x128xbf16>
      %cst_57 = arith.constant dense<0.000000e+00> : vector<8x128xf32>
      %192 = tpu.matmul %191, %20, %cst_57 {dimension_numbers = #tpu.dot_dimension_numbers<[1], [0], [0], [1], [0, 0, 1, 1], [], []>} : vector<8x128xbf16>, vector<128x128xbf16>, vector<8x128xf32> -> vector<8x128xf32>
      %193 = vector.broadcast %12 : vector<1x128xf32> to vector<8x128xf32>
      %194 = arith.addf %192, %193 : vector<8x128xf32>
      %195 = arith.addf %194, %145 : vector<8x128xf32>
      %196 = arith.index_cast %arg9 : i32 to index
      %c0_58 = arith.constant 0 : index
      %c0_59 = arith.constant 0 : index
      %197 = vector.load %arg8[%196, %c0_58, %c0_59] : memref<2x8x128xf32, #tpu.memory_space<vmem>>, vector<1x8x128xf32>
      %198 = vector.shape_cast %197 : vector<1x8x128xf32> to vector<8x128xf32>
      %199 = vector.shape_cast %195 : vector<8x128xf32> to vector<1x8x128xf32>
      tpu.vector_store %arg8[%196, %c0_58, %c0_59], %199 {strides = array<i32>} : memref<2x8x128xf32, #tpu.memory_space<vmem>>, vector<1x8x128xf32>,
    }
    %c2_i32_16 = arith.constant 2 : i32
    return
  }
  func.func @transform_0(%arg0: i32, %arg1: i32) -> (i32, i32, i32) {
    %c0_i32 = arith.constant 0 : i32
    %c0_i32_0 = arith.constant 0 : i32
    %c0_i32_1 = arith.constant 0 : i32
    return %arg0, %c0_i32, %c0_i32_0 : i32, i32, i32
  }
  func.func @transform_1(%arg0: i32, %arg1: i32) -> (i32, i32, i32) {
    %c0_i32 = arith.constant 0 : i32
    %c0_i32_0 = arith.constant 0 : i32
    %c0_i32_1 = arith.constant 0 : i32
    return %arg1, %c0_i32, %c0_i32_0 : i32, i32, i32
  }
  func.func @transform_2(%arg0: i32, %arg1: i32) -> (i32, i32, i32) {
    %c0_i32 = arith.constant 0 : i32
    %c0_i32_0 = arith.constant 0 : i32
    %c0_i32_1 = arith.constant 0 : i32
    return %arg1, %c0_i32, %c0_i32_0 : i32, i32, i32
  }
  func.func @transform_3(%arg0: i32, %arg1: i32) -> (i32, i32, i32) {
    %c0_i32 = arith.constant 0 : i32
    %c0_i32_0 = arith.constant 0 : i32
    %c0_i32_1 = arith.constant 0 : i32
    return %arg1, %c0_i32, %c0_i32_0 : i32, i32, i32
  }
  func.func @transform_4(%arg0: i32, %arg1: i32) -> (i32, i32, i32) {
    %c0_i32 = arith.constant 0 : i32
    %c0_i32_0 = arith.constant 0 : i32
    %c0_i32_1 = arith.constant 0 : i32
    return %arg1, %c0_i32, %c0_i32_0 : i32, i32, i32
  }
  func.func @transform_5(%arg0: i32, %arg1: i32) -> (i32, i32, i32) {
    %c0_i32 = arith.constant 0 : i32
    %c0_i32_0 = arith.constant 0 : i32
    %c0_i32_1 = arith.constant 0 : i32
    return %arg1, %c0_i32, %c0_i32_0 : i32, i32, i32
  }
  func.func @transform_6(%arg0: i32, %arg1: i32) -> (i32, i32, i32) {
    %c0_i32 = arith.constant 0 : i32
    %c0_i32_0 = arith.constant 0 : i32
    %c0_i32_1 = arith.constant 0 : i32
    return %arg0, %c0_i32, %c0_i32_0 : i32, i32, i32
  }
}

</mosaic_0001>

<bundles_post_ra>
// kernel: tpu_custom_call.1
= control target key start
LH: loop header
LB: loop body
LE: loop exit
PB: predicated region body
PF: predicated region fallthrough
CT: control target
= control target key end

     0   :  { %s4830_s0 = inlined_call_operand.hbm [shape: f32[2,8,128], index: 0, kind: input, shape index: {}]   ;;  %s4831_s1 = inlined_call_operand.hbm [shape: f32[2,8,1536], index: 1, kind: input, shape index: {}]   ;;  %s4832_s2 = inlined_call_operand.hbm [shape: bf16[2,128,1536], index: 2, kind: input, shape index: {}]   ;;  %s4833_s3 = inlined_call_operand.hbm [shape: bf16[2,512,128], index: 3, kind: input, shape index: {}]   ;;  %s4834_s4 = inlined_call_operand.hbm [shape: bf16[2,128,128], index: 4, kind: input, shape index: {}]   ;;  %s4835_s5 = inlined_call_operand.hbm [shape: bf16[2,128,128], index: 5, kind: input, shape index: {}]   ;;  %s4836_s6 = inlined_call_operand.hbm [shape: f32[2,8,128], index: 6, kind: output, shape index: {}]  }
   0x1   :  { %4844 = sst [smem:[#allocation286_spill]] %s4830_s0 }
   0x2   :  { %4845 = sst [smem:[#allocation287_spill]] %s4831_s1 }
   0x3   :  { %4846 = sst [smem:[#allocation288_spill]] %s4833_s3 }
   0x4   :  { %11 = vsyncpa [#allocation3], 0 }
   0x5   :  { %12 = vsyncpa [#allocation6], 0 }
   0x6   :  { %14 = vsyncpa [#allocation6 + $0x1], 0 }
   0x7   :  { %15 = vsyncpa [#allocation9], 0 }
   0x8   :  { %17 = vsyncpa [#allocation9 + $0x1], 0 }
   0x9   :  { %18 = vsyncpa [#allocation12], 0 }
   0xa   :  { %20 = vsyncpa [#allocation12 + $0x1], 0 }
   0xb   :  { %21 = vsyncpa [#allocation4], 0  ;;  %s3375_s21 = smov 0   ;;  %s3377_s22 = smov 0  }
   0xc   :  { %s3379_s23 = smov 0   ;;  %s3381_s24 = smov 0  }
   0xd   :  { %s3383_s25 = smov 0   ;;  %s3385_s26 = smov 0  }
   0xe LB: > { %4847 = sst [smem:[#allocation19_spill]] %s3311_s23  ;;  %s36_s27 = sadd.s32 1, %s3319_s25  ;;  %s3323_s26 = sphi %s3385_s26, %s27_s26   ;;  %s3319_s25 = sphi %s3383_s25, %s5392_s25   ;;  %s3315_s24 = sphi %s3381_s24, %s5391_s24   ;;  %s3311_s23 = sphi %s3379_s23, %s5387_s23   ;;  %s3307_s22 = sphi %s3377_s22, %s5390_s22   ;;  %s3303_s21 = sphi %s3375_s21, %s5389_s21  }
   0xf   : > { %s72_s28 = sadd.s32 1, %s3311_s23  ;;  %p37_p0 = scmp.ge.s32.totalorder %s36_s27, 2 }
  0x10   : > { %p79_p1 = scmp.ne.s32.totalorder %s3311_s23, %s3307_s22  ;;  %p80_p2 = scmp.eq.s32.totalorder %s3323_s26, 0 }
  0x11   : > { %s5394_s27 = smov (%p37_p0, %s36_s27), 0  ;;  %p2952_p4 = scmp.lt.s32.totalorder %s3323_s26, 2 }
  0x12   : > { %4848 = sst [smem:[#allocation20_spill]] %s5394_s27  ;;  %p81_p3 = por %p80_p2, %p79_p1 }
  0x13   : > { %s69_s29 = ssub.s32 %s3319_s25, %s5394_s27  ;;  %s256_s30 = sand.u32 1, %s3323_s26  }
  0x14   : > { %p70_p5 = scmp.eq.s32.totalorder %s69_s29, 0  ;;  %s3417_s7 = sand.u32 1, %s3311_s23  }
  0x15   : > { %s2908_s8 = smul.u32 96, %s3319_s25  ;;  %s4850_s1 = sld [smem:[#allocation287_spill]] }
  0x16   : > { %s3421_s9 = scalar_select %p70_p5, %s3311_s23, %s72_s28  }
  0x17   : > { %s2907_s10 = smul.u32 96, %s3417_s7  ;;  %p3427_p6 = pnand %p2952_p4, %p81_p3 }
  0x18   : > { %4849 = sst [smem:[#allocation21_spill]] %s3421_s9  ;;  %s3431_s18 = scalar_lea.sflag [#allocation6], %s256_s30 }
  0x19   : > { %s260_s16 = scalar_lea.vmem [#allocation5], %s2907_s10  ;;  %s2159_s19 = sshll.u32 %s3417_s7, 8 }
  0x1a   : > { %s269_s17 = sshll.u32 %s260_s16, 4  ;;  %s2760_s20 = sshll.u32 %s3319_s25, 8  ;;  %s270_s17 = int_to_ptr.vmem [resolvable:$true] %s269_s17 }
  0x1b   : > { %s265_s13 = scalar_lea.hbm %s4850_s1, %s2908_s8  ;;  %s4852_s3 = sld [smem:[#allocation288_spill]] }
  0x1c   : > { %s267_s14 = sshll.u32 %s265_s13, 4  ;;  %s302_s11 = scalar_lea.vmem [#allocation8], %s2159_s19  ;;  %s268_s14 = int_to_ptr.hbm [resolvable:$true] %s267_s14 }
  0x1d   : > { %2938 = dma.hbm_to_vmem [thread:$0]  (!%p3427_p6), %s268_s14, 1536, %s270_s17, %s3431_s18  }
  0x1e   : > { %s310_s12 = sshll.u32 %s302_s11, 4  ;;  %s3441_s13 = scalar_lea.sflag [#allocation9], %s256_s30  ;;  %s311_s12 = int_to_ptr.vmem [resolvable:$true] %s310_s12 }
  0x1f   : > { %s4837_s16 = smov 64   ;;  %s4839_s1 = smov 4  }
  0x20   : > { %s3450_s14 = sadd.s32 4294967295, %s3323_s26   ;;  %p85_p7 = scmp.ne.s32.totalorder %s3307_s22, %s3303_s21 }
  0x21   : > { %s307_s8 = scalar_lea.hbm %s4852_s3, %s2760_s20  ;;  %p86_p8 = scmp.eq.s32.totalorder %s3450_s14, 0 }
  0x22   : > { %s308_s10 = sshll.u32 %s307_s8, 4  ;;  %p2154_p9 = scmp.ge.s32.totalorder %s3323_s26, 1  ;;  %s309_s10 = int_to_ptr.hbm [resolvable:$true] %s308_s10 }
  0x23   : > { %2944 = dma.hbm_to_vmem [thread:$0]  (!%p3427_p6), %s309_s10, 4096, %s311_s12, %s3441_s13, %s4837_s16, %s4837_s16, %s4839_s1  }
  0x24   : > { %p226_p10 = scmp.lt.s32.totalorder %s3323_s26, 3  ;;  %p3459_p11 = por %p86_p8, %p85_p7 }
  0x25   : > { %s4854_s0 = sld [smem:[#allocation286_spill]]  ;;  %s3331_s21 = smov [#allocation2]  }
  0x26   : > { %p3466_p12 = pnand %p2154_p9, %p226_p10  ;;  %s242_s29 = sshll.u32 %s3331_s21, 4  ;;  %s243_s29 = int_to_ptr.vmem [resolvable:$true] %s242_s29 }
  0x27   : > { %s2909_s8 = smul.u32 768, %s3417_s7  ;;  %s3332_s11 = smov 128  }
  0x28   : > { %p2931_p13 = pneg %p3466_p12  ;;  %s2910_s10 = smul.u32 768, %s3319_s25 }
  0x29   : > { %s3333_s12 = smov 8   ;;  %s280_s1 = scalar_lea.vmem [#allocation7], %s2909_s8 }
  0x2a   : > { %p2932_p0 = pnand %p2931_p13, %p86_p8  ;;  %s285_s16 = scalar_lea.hbm %s4832_s2, %s2910_s10 }
  0x2b   : > { %s240_s20 = sshll.u32 %s4854_s0, 4  ;;  %s288_s21 = sshll.u32 %s280_s1, 4  ;;  %s241_s20 = int_to_ptr.hbm [resolvable:$true] %s240_s20  ;;  %s289_s21 = int_to_ptr.vmem [resolvable:$true] %s288_s21 }
  0x2c   : > { %2934 = dma.hbm_to_vmem [thread:$0]  (!%p2932_p0), %s241_s20, 256, %s243_s29, [#allocation3], %s3332_s11, %s3332_s11, %s3333_s12  }
  0x2d   : > { %s286_s0 = sshll.u32 %s285_s16, 4  ;;  %s3334_s3 = smov 768   ;;  %s287_s0 = int_to_ptr.hbm [resolvable:$true] %s286_s0 }
  0x2e   : > { %s3335_s27 = smov 48   ;;  %s2162_s9 = sshll.u32 %s3417_s7, 6 }
  0x2f   : > { %2941 = dma.hbm_to_vmem [thread:$0]  (!%p3427_p6), %s287_s0, 12288, %s289_s21, %s3431_s18, %s3334_s3, %s3334_s3, %s3335_s27  }
  0x30   : > { %s2761_s23 = sshll.u32 %s3319_s25, 6  ;;  %s324_s8 = scalar_lea.vmem [#allocation10], %s2162_s9 }
  0x31   : > { %s329_s11 = scalar_lea.hbm %s4834_s4, %s2761_s23  ;;  %s332_s12 = sshll.u32 %s324_s8, 4  ;;  %s333_s12 = int_to_ptr.vmem [resolvable:$true] %s332_s12 }
  0x32   : > { %s330_s10 = sshll.u32 %s329_s11, 4  ;;  %s4856_s1 = smov 4   ;;  %s331_s10 = int_to_ptr.hbm [resolvable:$true] %s330_s10 }
  0x33   : > { %s4857_s16 = smov 64   ;;  %s351_s3 = scalar_lea.hbm %s4835_s5, %s2761_s23 }
  0x34   : > { %2947 = dma.hbm_to_vmem [thread:$0]  (!%p3427_p6), %s331_s10, 1024, %s333_s12, %s3441_s13, %s4857_s16, %s4857_s16, %s4856_s1  }
  0x35   : > { %s346_s27 = scalar_lea.vmem [#allocation11], %s2162_s9  ;;  %s352_s19 = sshll.u32 %s351_s3, 4  ;;  %s353_s19 = int_to_ptr.hbm [resolvable:$true] %s352_s19 }
  0x36   : > { %s354_s18 = sshll.u32 %s346_s27, 4  ;;  %s343_s21 = scalar_lea.sflag [#allocation12], %s3417_s7  ;;  %s355_s18 = int_to_ptr.vmem [resolvable:$true] %s354_s18 }
  0x37   : > { %2950 = dma.hbm_to_vmem [thread:$0]  (!%p3427_p6), %s353_s19, 1024, %s355_s18, %s343_s21, %s4857_s16, %s4857_s16, %s4856_s1  }
  0x38   : > { %366 = sbr.rel (%p3466_p12) target bundleno = 2031 (0x7ef), region = 44 }
  0x3d   : > { %3282 = dma.done.wait (%p86_p8), [#allocation3], 256  }
  0x3e   : > { %3284 = vsyncadd (%p86_p8), [#allocation3], 4294967040  ;;  %s373_s23 = sand.u32 1, %s3450_s14   ;;  %s375_s9 = sand.u32 1, %s3307_s22  }
  0x3f   : > { %s2911_s7 = smul.u32 96, %s375_s9  ;;  %s374_s15 = scalar_lea.sflag [#allocation6], %s373_s23 }
  0x41   : > { %s3510_s13 = scalar_lea.vmem [#allocation5], %s2911_s7 }
  0x42   : > { %3286 = dma.done.wait (%p3459_p11), %s374_s15, 13824  }
  0x43   : > { %3288 = vsyncadd (%p3459_p11), %s374_s15, 4294953472  ;;  %s2912_s28 = smul.u32 768, %s375_s9  ;;  %s2170_s20 = sshll.u32 %s375_s9, 8 }
  0x44   : > { %s394_s11 = scalar_lea.sflag [#allocation9], %s373_s23  ;;  %s3518_s10 = scalar_lea.vmem [#allocation8], %s2170_s20 }
  0x45   : > { %s3516_s29 = scalar_lea.vmem [#allocation7], %s2912_s28 }
  0x46   : > { %3290 = dma.done.wait (%p3459_p11), %s394_s11, 5120  }
  0x47   : > { %3292 = vsyncadd (%p3459_p11), %s394_s11, 4294962176  ;;  %s2171_s8 = sshll.u32 %s375_s9, 6  ;;  %s414_s1 = scalar_lea.sflag [#allocation12], %s375_s9 }
  0x48   : > { %s3524_s12 = scalar_lea.vmem [#allocation10], %s2171_s8  ;;  %s3526_s16 = scalar_lea.vmem [#allocation11], %s2171_s8 }
  0x49   : > { %3294 = dma.done.wait (%p3459_p11), %s414_s1, 1024  }
  0x4a   : > { %3296 = vsyncadd (%p3459_p11), %s414_s1, 4294966272  ;;  %p2173_p1 = scmp.ne.s32.totalorder %s3315_s24, 0 }
  0x4c   : > { %468 = sbr.rel (%p2173_p1) target bundleno = 84 (0x54), region = 72 }
  0x51   : > { %v469_v0 = vld [vmem:[#allocation2] sm:$0xff]  ;;  %v470_v1 = vld [vmem:[#allocation2 + $0x8] sm:$0xff] }
  0x52   : > { %471 = vst [vmem:[#allocation13] sm:$0xff] %v469_v0 }
  0x53   : > { %472 = vst [vmem:[#allocation13 + $0x8] sm:$0xff] %v470_v1 }
  0x54 PF: > { %v3534_v2 = vld [vmem:[%s3510_s13] sm:$0xff]  ;;  %v3537_v3 = vld [vmem:[%s3510_s13 + $0x8] sm:$0xff]  ;;  %v3540_v4 = vld [vmem:[%s3510_s13 + $0x10] sm:$0xff]  ;;  %s4433_s24 = smov 0  }
  0x55   : > { %4858 = vst [vmem:[#allocation22_spill] sm:$0xff] %v3534_v2  ;;  %v3543_v5 = vld [vmem:[%s3510_s13 + $0x18] sm:$0xff]  ;;  %v3546_v6 = vld [vmem:[%s3510_s13 + $0x20] sm:$0xff]  ;;  %v3549_v7 = vld [vmem:[%s3510_s13 + $0x28] sm:$0xff] }
  0x56   : > { %4859 = vst [vmem:[#allocation23_spill] sm:$0xff] %v3537_v3  ;;  %v3552_v8 = vld [vmem:[%s3510_s13 + $0x30] sm:$0xff]  ;;  %v3555_v9 = vld [vmem:[%s3510_s13 + $0x38] sm:$0xff]  ;;  %v3558_v10 = vld [vmem:[%s3510_s13 + $0x40] sm:$0xff] }
  0x57   : > { %4860 = vst [vmem:[#allocation24_spill] sm:$0xff] %v3540_v4  ;;  %v3561_v11 = vld [vmem:[%s3510_s13 + $0x48] sm:$0xff]  ;;  %v3564_v12 = vld [vmem:[%s3510_s13 + $0x50] sm:$0xff]  ;;  %v3567_v13 = vld [vmem:[%s3510_s13 + $0x58] sm:$0xff] }
  0x58   : > { %4861 = vst [vmem:[#allocation25_spill] sm:$0xff] %v3543_v5  ;;  %v3570_v14 = vld [vmem:[%s3516_s29 + $0x4] sm:$0xf]  ;;  %v3573_v15 = vld [vmem:[%s3516_s29] sm:$0xf] }
  0x59   : > { %4862 = vst [vmem:[#allocation26_spill] sm:$0xff] %v3546_v6  ;;  %v3576_v16 = vld [vmem:[%s3516_s29 + $0xc] sm:$0xf]  ;;  %v3579_v17 = vld [vmem:[%s3516_s29 + $0x8] sm:$0xf] }
  0x5a   : > { %4863 = vst [vmem:[#allocation27_spill] sm:$0xff] %v3549_v7  ;;  %v3582_v18 = vld [vmem:[%s3516_s29 + $0x14] sm:$0xf]  ;;  %v3585_v19 = vld [vmem:[%s3516_s29 + $0x10] sm:$0xf] }
  0x5b   : > { %4864 = vst [vmem:[#allocation28_spill] sm:$0xff] %v3552_v8  ;;  %v3588_v20 = vld [vmem:[%s3516_s29 + $0x1c] sm:$0xf]  ;;  %v3591_v21 = vld [vmem:[%s3516_s29 + $0x18] sm:$0xf] }
  0x5c   : > { %4865 = vst [vmem:[#allocation29_spill] sm:$0xff] %v3555_v9  ;;  %v3594_v22 = vld [vmem:[%s3516_s29 + $0x24] sm:$0xf]  ;;  %v3597_v23 = vld [vmem:[%s3516_s29 + $0x20] sm:$0xf] }
  0x5d   : > { %4866 = vst [vmem:[#allocation30_spill] sm:$0xff] %v3558_v10  ;;  %v3600_v24 = vld [vmem:[%s3516_s29 + $0x2c] sm:$0xf]  ;;  %v3603_v25 = vld [vmem:[%s3516_s29 + $0x28] sm:$0xf] }
  0x5e   : > { %4867 = vst [vmem:[#allocation31_spill] sm:$0xff] %v3561_v11  ;;  %v3606_v26 = vld [vmem:[%s3516_s29 + $0x30] sm:$0xf0]  ;;  %v3609_v27 = vld [vmem:[%s3516_s29 + $0x2c] sm:$0xf0] }
  0x5f   : > { %4868 = vst [vmem:[#allocation32_spill] sm:$0xff] %v3564_v12  ;;  %v3612_v28 = vld [vmem:[%s3516_s29 + $0x38] sm:$0xf0]  ;;  %v3615_v29 = vld [vmem:[%s3516_s29 + $0x34] sm:$0xf0] }
  0x60   : > { %4869 = vst [vmem:[#allocation33_spill] sm:$0xff] %v3567_v13  ;;  %v3618_v30 = vld [vmem:[%s3516_s29 + $0x40] sm:$0xf0]  ;;  %v3621_v31 = vld [vmem:[%s3516_s29 + $0x3c] sm:$0xf0] }
  0x61   : > { %4870 = vst [vmem:[#allocation34_spill] sm:$0xff] %v3570_v14  ;;  %v3624_v32 = vld [vmem:[%s3516_s29 + $0x48] sm:$0xf0]  ;;  %v3627_v33 = vld [vmem:[%s3516_s29 + $0x44] sm:$0xf0] }
  0x62   : > { %4871 = vst [vmem:[#allocation35_spill] sm:$0xff] %v3573_v15  ;;  %v3630_v34 = vld [vmem:[%s3516_s29 + $0x50] sm:$0xf0]  ;;  %v3633_v35 = vld [vmem:[%s3516_s29 + $0x4c] sm:$0xf0] }
  0x63   : > { %4872 = vst [vmem:[#allocation36_spill] sm:$0xff] %v3576_v16  ;;  %v3636_v36 = vld [vmem:[%s3516_s29 + $0x58] sm:$0xf0]  ;;  %v3639_v37 = vld [vmem:[%s3516_s29 + $0x54] sm:$0xf0] }
  0x64   : > { %4873 = vst [vmem:[#allocation37_spill] sm:$0xff] %v3579_v17  ;;  %v3642_v38 = vld [vmem:[%s3516_s29 + $0x64] sm:$0xf]  ;;  %v3645_v39 = vld [vmem:[%s3516_s29 + $0x60] sm:$0xf] }
  0x65   : > { %4874 = vst [vmem:[#allocation38_spill] sm:$0xff] %v3582_v18  ;;  %v3648_v40 = vld [vmem:[%s3516_s29 + $0x6c] sm:$0xf]  ;;  %v3651_v41 = vld [vmem:[%s3516_s29 + $0x68] sm:$0xf] }
  0x66   : > { %4875 = vst [vmem:[#allocation39_spill] sm:$0xff] %v3585_v19  ;;  %v3654_v42 = vld [vmem:[%s3516_s29 + $0x74] sm:$0xf]  ;;  %v3657_v43 = vld [vmem:[%s3516_s29 + $0x70] sm:$0xf] }
  0x67   : > { %4876 = vst [vmem:[#allocation40_spill] sm:$0xff] %v3588_v20  ;;  %v3660_v44 = vld [vmem:[%s3516_s29 + $0x7c] sm:$0xf]  ;;  %v3663_v45 = vld [vmem:[%s3516_s29 + $0x78] sm:$0xf] }
  0x68   : > { %4877 = vst [vmem:[#allocation41_spill] sm:$0xff] %v3591_v21  ;;  %v3666_v46 = vld [vmem:[%s3516_s29 + $0x84] sm:$0xf]  ;;  %v3669_v47 = vld [vmem:[%s3516_s29 + $0x80] sm:$0xf] }
  0x69   : > { %4878 = vst [vmem:[#allocation42_spill] sm:$0xff] %v3594_v22  ;;  %v3672_v48 = vld [vmem:[%s3516_s29 + $0x8c] sm:$0xf]  ;;  %v3675_v49 = vld [vmem:[%s3516_s29 + $0x88] sm:$0xf] }
  0x6a   : > { %4879 = vst [vmem:[#allocation43_spill] sm:$0xff] %v3597_v23  ;;  %v3678_v50 = vld [vmem:[%s3516_s29 + $0x90] sm:$0xf0]  ;;  %v3681_v51 = vld [vmem:[%s3516_s29 + $0x8c] sm:$0xf0] }
  0x6b   : > { %4880 = vst [vmem:[#allocation44_spill] sm:$0xff] %v3600_v24  ;;  %v3684_v52 = vld [vmem:[%s3516_s29 + $0x98] sm:$0xf0]  ;;  %v3687_v53 = vld [vmem:[%s3516_s29 + $0x94] sm:$0xf0] }
  0x6c   : > { %4881 = vst [vmem:[#allocation45_spill] sm:$0xff] %v3603_v25  ;;  %v3690_v54 = vld [vmem:[%s3516_s29 + $0xa0] sm:$0xf0]  ;;  %v3693_v55 = vld [vmem:[%s3516_s29 + $0x9c] sm:$0xf0] }
  0x6d   : > { %4882 = vst [vmem:[#allocation46_spill] sm:$0xff] %v3606_v26  ;;  %v3696_v56 = vld [vmem:[%s3516_s29 + $0xa8] sm:$0xf0]  ;;  %v3699_v57 = vld [vmem:[%s3516_s29 + $0xa4] sm:$0xf0] }
  0x6e   : > { %4883 = vst [vmem:[#allocation47_spill] sm:$0xff] %v3609_v27  ;;  %v3702_v58 = vld [vmem:[%s3516_s29 + $0xb0] sm:$0xf0]  ;;  %v3705_v59 = vld [vmem:[%s3516_s29 + $0xac] sm:$0xf0] }
  0x6f   : > { %4884 = vst [vmem:[#allocation48_spill] sm:$0xff] %v3612_v28  ;;  %v3708_v60 = vld [vmem:[%s3516_s29 + $0xb8] sm:$0xf0]  ;;  %v3711_v61 = vld [vmem:[%s3516_s29 + $0xb4] sm:$0xf0] }
  0x70   : > { %4885 = vst [vmem:[#allocation49_spill] sm:$0xff] %v3615_v29  ;;  %v3714_v62 = vld [vmem:[%s3516_s29 + $0xc4] sm:$0xf]  ;;  %v3717_v63 = vld [vmem:[%s3516_s29 + $0xc0] sm:$0xf] }
  0x71   : > { %4886 = vst [vmem:[#allocation50_spill] sm:$0xff] %v3618_v30  ;;  %v3720_v0 = vld [vmem:[%s3516_s29 + $0xcc] sm:$0xf]  ;;  %v3723_v1 = vld [vmem:[%s3516_s29 + $0xc8] sm:$0xf] }
  0x72   : > { %4887 = vst [vmem:[#allocation51_spill] sm:$0xff] %v3621_v31  ;;  %v3726_v5 = vld [vmem:[%s3516_s29 + $0xd4] sm:$0xf]  ;;  %v3729_v13 = vld [vmem:[%s3516_s29 + $0xd0] sm:$0xf] }
  0x73   : > { %4888 = vst [vmem:[#allocation52_spill] sm:$0xff] %v3624_v32  ;;  %v3732_v12 = vld [vmem:[%s3516_s29 + $0xdc] sm:$0xf]  ;;  %v3735_v3 = vld [vmem:[%s3516_s29 + $0xd8] sm:$0xf] }
  0x74   : > { %4889 = vst [vmem:[#allocation53_spill] sm:$0xff] %v3627_v33  ;;  %v3738_v11 = vld [vmem:[%s3516_s29 + $0xe4] sm:$0xf]  ;;  %v3741_v10 = vld [vmem:[%s3516_s29 + $0xe0] sm:$0xf] }
  0x75   : > { %4890 = vst [vmem:[#allocation54_spill] sm:$0xff] %v3630_v34  ;;  %v3744_v4 = vld [vmem:[%s3516_s29 + $0xec] sm:$0xf]  ;;  %v3747_v9 = vld [vmem:[%s3516_s29 + $0xe8] sm:$0xf] }
  0x76   : > { %4891 = vst [vmem:[#allocation55_spill] sm:$0xff] %v3633_v35  ;;  %v3750_v8 = vld [vmem:[%s3516_s29 + $0xf0] sm:$0xf0]  ;;  %v3753_v7 = vld [vmem:[%s3516_s29 + $0xec] sm:$0xf0] }
  0x77   : > { %4892 = vst [vmem:[#allocation56_spill] sm:$0xff] %v3636_v36  ;;  %v3756_v6 = vld [vmem:[%s3516_s29 + $0xf8] sm:$0xf0]  ;;  %v3759_v24 = vld [vmem:[%s3516_s29 + $0xf4] sm:$0xf0] }
  0x78   : > { %4893 = vst [vmem:[#allocation57_spill] sm:$0xff] %v3639_v37  ;;  %v3762_v36 = vld [vmem:[%s3516_s29 + $0x100] sm:$0xf0]  ;;  %v3765_v37 = vld [vmem:[%s3516_s29 + $0xfc] sm:$0xf0] }
  0x79   : > { %4894 = vst [vmem:[#allocation58_spill] sm:$0xff] %v3648_v40  ;;  %v3768_v25 = vld [vmem:[%s3516_s29 + $0x108] sm:$0xf0]  ;;  %v3771_v22 = vld [vmem:[%s3516_s29 + $0x104] sm:$0xf0] }
  0x7a   : > { %4895 = vst [vmem:[#allocation59_spill] sm:$0xff] %v3654_v42  ;;  %v3774_v34 = vld [vmem:[%s3516_s29 + $0x110] sm:$0xf0]  ;;  %v3777_v35 = vld [vmem:[%s3516_s29 + $0x10c] sm:$0xf0] }
  0x7b   : > { %4896 = vst [vmem:[#allocation60_spill] sm:$0xff] %v3657_v43  ;;  %v3780_v23 = vld [vmem:[%s3516_s29 + $0x118] sm:$0xf0]  ;;  %v3843_v2 = vld [vmem:[%s3516_s29 + $0x164] sm:$0xf0] }
  0x7c   : > { %4897 = vst [vmem:[#allocation61_spill] sm:$0xff] %v3660_v44  ;;  %v3846_v20 = vld [vmem:[%s3516_s29 + $0x170] sm:$0xf0]  ;;  %v3849_v32 = vld [vmem:[%s3516_s29 + $0x16c] sm:$0xf0] }
  0x7d   : > { %4898 = vst [vmem:[#allocation62_spill] sm:$0xff] %v3663_v45  ;;  %v3852_v33 = vld [vmem:[%s3516_s29 + $0x178] sm:$0xf0]  ;;  %v3855_v21 = vld [vmem:[%s3516_s29 + $0x174] sm:$0xf0] }
  0x7e   : > { %4899 = vst [vmem:[#allocation63_spill] sm:$0xff] %v3666_v46  ;;  %v3795_v46 = vld [vmem:[%s3516_s29 + $0x128] sm:$0xf]  ;;  %v3858_v18 = vld [vmem:[%s3516_s29 + $0x184] sm:$0xf] }
  0x7f   : > { %4900 = vst [vmem:[#allocation64_spill] sm:$0xff] %v3669_v47  ;;  %v3804_v47 = vld [vmem:[%s3516_s29 + $0x13c] sm:$0xf]  ;;  %v3861_v30 = vld [vmem:[%s3516_s29 + $0x180] sm:$0xf] }
  0x80   : > { %4901 = vst [vmem:[#allocation65_spill] sm:$0xff] %v3672_v48  ;;  %v3783_v48 = vld [vmem:[%s3516_s29 + $0x114] sm:$0xf0]  ;;  %v3864_v31 = vld [vmem:[%s3516_s29 + $0x18c] sm:$0xf] }
  0x81   : > { %4902 = vst [vmem:[#allocation66_spill] sm:$0xff] %v3675_v49  ;;  %v3792_v49 = vld [vmem:[%s3516_s29 + $0x12c] sm:$0xf]  ;;  %v3879_v19 = vld [vmem:[%s3516_s29 + $0x198] sm:$0xf] }
  0x82   : > { %4903 = vst [vmem:[#allocation67_spill] sm:$0xff] %v3684_v52  ;;  %v3882_v44 = vld [vmem:[%s3516_s29 + $0x1a4] sm:$0xf]  ;;  %v3891_v45 = vld [vmem:[%s3516_s29 + $0x1a8] sm:$0xf] }
  0x83   : > { %4904 = vst [vmem:[#allocation68_spill] sm:$0xff] %v3687_v53  ;;  %v3894_v42 = vld [vmem:[%s3516_s29 + $0x1b0] sm:$0xf0]  ;;  %v3915_v43 = vld [vmem:[%s3516_s29 + $0x1c4] sm:$0xf0] }
  0x84   : > { %4905 = vst [vmem:[#allocation69_spill] sm:$0xff] %v3690_v54  ;;  %v3897_v54 = vld [vmem:[%s3516_s29 + $0x1ac] sm:$0xf0]  ;;  %v4098_v16 = vld [vmem:[%s3516_s29 + $0x2c4] sm:$0xf] }
  0x85   : > { %4906 = vst [vmem:[#allocation70_spill] sm:$0xff] %v3693_v55  ;;  %v3900_v55 = vld [vmem:[%s3516_s29 + $0x1b8] sm:$0xf0]  ;;  %v4101_v28 = vld [vmem:[%s3516_s29 + $0x2c0] sm:$0xf] }
  0x86   : > { %4907 = vst [vmem:[#allocation71_spill] sm:$0xff] %v3696_v56  ;;  %v3885_v56 = vld [vmem:[%s3516_s29 + $0x1a0] sm:$0xf]  ;;  %v4104_v29 = vld [vmem:[%s3516_s29 + $0x2cc] sm:$0xf] }
  0x87   : > { %4908 = vst [vmem:[#allocation72_spill] sm:$0xff] %v3699_v57  ;;  %v3888_v57 = vld [vmem:[%s3516_s29 + $0x1ac] sm:$0xf]  ;;  %v4131_v17 = vld [vmem:[%s3516_s29 + $0x2e4] sm:$0xf0] }
  0x88   : > { %4909 = vst [vmem:[#allocation73_spill] sm:$0xff] %v3702_v58  ;;  %v3798_v58 = vld [vmem:[%s3516_s29 + $0x134] sm:$0xf]  ;;  %v4137_v26 = vld [vmem:[%s3516_s29 + $0x2ec] sm:$0xf0] }
  0x89   : > { %4910 = vst [vmem:[#allocation74_spill] sm:$0xff] %v3705_v59  ;;  %v3801_v59 = vld [vmem:[%s3516_s29 + $0x130] sm:$0xf]  ;;  %v4134_v14 = vld [vmem:[%s3516_s29 + $0x2f0] sm:$0xf0] }
  0x8a   : > { %4911 = vst [vmem:[#allocation75_spill] sm:$0xff] %v3708_v60  ;;  %v3786_v60 = vld [vmem:[%s3516_s29 + $0x124] sm:$0xf]  ;;  %v4140_v27 = vld [vmem:[%s3516_s29 + $0x2f8] sm:$0xf0] }
  0x8b   : > { %4912 = vst [vmem:[#allocation76_spill] sm:$0xff] %v3711_v61  ;;  %v3789_v61 = vld [vmem:[%s3516_s29 + $0x120] sm:$0xf]  ;;  %v4389_v15 = vld [vmem:[%s3526_s16] sm:$0xf0] }
  0x8c   : > { %4913 = vst [vmem:[#allocation77_spill] sm:$0xff] %v3720_v0  ;;  %v4398_v40 = vld [vmem:[%s3526_s16 + $0x10] sm:$0xf]  ;;  %v4407_v52 = vld [vmem:[%s3526_s16 + $0x18] sm:$0xf0] }
  0x8d   : > { %4914 = vst [vmem:[#allocation78_spill] sm:$0xff] %v3723_v1  ;;  %v4416_v53 = vld [vmem:[%s3526_s16 + $0x28] sm:$0xf] }
  0x8e   : > { %4915 = vst [vmem:[#allocation79_spill] sm:$0xff] %v3726_v5  ;;  %v3930_v5 = vld [vmem:[%s3516_s29 + $0x1e4] sm:$0xf] }
  0x8f   : > { %4916 = vst [vmem:[#allocation80_spill] sm:$0xff] %v3729_v13  ;;  %v3951_v13 = vld [vmem:[%s3516_s29 + $0x1f8] sm:$0xf] }
  0x90   : > { %4917 = vst [vmem:[#allocation81_spill] sm:$0xff] %v3732_v12  ;;  %v3918_v12 = vld [vmem:[%s3516_s29 + $0x1d0] sm:$0xf0] }
  0x91   : > { %4918 = vst [vmem:[#allocation82_spill] sm:$0xff] %v3735_v3  ;;  %v3927_v3 = vld [vmem:[%s3516_s29 + $0x1d4] sm:$0xf0] }
  0x92   : > { %4919 = vst [vmem:[#allocation83_spill] sm:$0xff] %v3738_v11  ;;  %v3819_v11 = vld [vmem:[%s3516_s29 + $0x148] sm:$0xf] }
  0x93   : > { %4920 = vst [vmem:[#allocation84_spill] sm:$0xff] %v3741_v10  ;;  %v3828_v10 = vld [vmem:[%s3516_s29 + $0x158] sm:$0xf0] }
  0x94   : > { %4921 = vst [vmem:[#allocation85_spill] sm:$0xff] %v3744_v4  ;;  %v3807_v4 = vld [vmem:[%s3516_s29 + $0x138] sm:$0xf] }
  0x95   : > { %4922 = vst [vmem:[#allocation86_spill] sm:$0xff] %v3747_v9  ;;  %v3816_v9 = vld [vmem:[%s3516_s29 + $0x14c] sm:$0xf] }
  0x96   : > { %4923 = vst [vmem:[#allocation87_spill] sm:$0xff] %v3750_v8 }
  0x97   : > { %4924 = vst [vmem:[#allocation88_spill] sm:$0xff] %v3753_v7 }
  0x98   : > { %4925 = vst [vmem:[#allocation89_spill] sm:$0xff] %v3756_v6 }
  0x99   : > { %4926 = vst [vmem:[#allocation90_spill] sm:$0xff] %v3762_v36  ;;  %v3933_v36 = vld [vmem:[%s3516_s29 + $0x1e0] sm:$0xf] }
  0x9a   : > { %4927 = vst [vmem:[#allocation91_spill] sm:$0xff] %v3765_v37  ;;  %v3936_v37 = vld [vmem:[%s3516_s29 + $0x1ec] sm:$0xf] }
  0x9b   : > { %4928 = vst [vmem:[#allocation92_spill] sm:$0xff] %v3768_v25  ;;  %v3921_v25 = vld [vmem:[%s3516_s29 + $0x1cc] sm:$0xf0] }
  0x9c   : > { %4929 = vst [vmem:[#allocation93_spill] sm:$0xff] %v3771_v22  ;;  %v3924_v22 = vld [vmem:[%s3516_s29 + $0x1d8] sm:$0xf0] }
  0x9d   : > { %4930 = vst [vmem:[#allocation94_spill] sm:$0xff] %v3774_v34  ;;  %v3822_v34 = vld [vmem:[%s3516_s29 + $0x150] sm:$0xf0] }
  0x9e   : > { %4931 = vst [vmem:[#allocation95_spill] sm:$0xff] %v3777_v35  ;;  %v3825_v35 = vld [vmem:[%s3516_s29 + $0x14c] sm:$0xf0] }
  0x9f   : > { %4932 = vst [vmem:[#allocation96_spill] sm:$0xff] %v3780_v23  ;;  %v3810_v23 = vld [vmem:[%s3516_s29 + $0x144] sm:$0xf] }
  0xa0   : > { %4933 = vst [vmem:[#allocation97_spill] sm:$0xff] %v3783_v48  ;;  %v3813_v48 = vld [vmem:[%s3516_s29 + $0x140] sm:$0xf] }
  0xa1   : > { %4934 = vst [vmem:[#allocation98_spill] sm:$0xff] %v3798_v58  ;;  %v3966_v58 = vld [vmem:[%s3516_s29 + $0x210] sm:$0xf0] }
  0xa2   : > { %4935 = vst [vmem:[#allocation99_spill] sm:$0xff] %v3801_v59  ;;  %v3987_v59 = vld [vmem:[%s3516_s29 + $0x224] sm:$0xf0] }
  0xa3   : > { %4936 = vst [vmem:[#allocation100_spill] sm:$0xff] %v3804_v47  ;;  %v3954_v47 = vld [vmem:[%s3516_s29 + $0x204] sm:$0xf] }
  0xa4   : > { %4937 = vst [vmem:[#allocation101_spill] sm:$0xff] %v3807_v4  ;;  %v3963_v4 = vld [vmem:[%s3516_s29 + $0x208] sm:$0xf] }
  0xa5   : > { %4938 = vst [vmem:[#allocation102_spill] sm:$0xff] %v3810_v23  ;;  %v3831_v23 = vld [vmem:[%s3516_s29 + $0x154] sm:$0xf0] }
  0xa6   : > { %4939 = vst [vmem:[#allocation103_spill] sm:$0xff] %v3813_v48  ;;  %v3834_v48 = vld [vmem:[%s3516_s29 + $0x160] sm:$0xf0] }
  0xa7   : > { %4940 = vst [vmem:[#allocation104_spill] sm:$0xff] %v3816_v9  ;;  %v3837_v9 = vld [vmem:[%s3516_s29 + $0x15c] sm:$0xf0] }
  0xa8   : > { %4941 = vst [vmem:[#allocation105_spill] sm:$0xff] %v3819_v11  ;;  %v3840_v11 = vld [vmem:[%s3516_s29 + $0x168] sm:$0xf0] }
  0xa9   : > { %4942 = vst [vmem:[#allocation106_spill] sm:$0xff] %v3828_v10 }
  0xaa   : > { %4943 = vst [vmem:[#allocation107_spill] sm:$0xff] %v3831_v23 }
  0xab   : > { %4944 = vst [vmem:[#allocation108_spill] sm:$0xff] %v3834_v48  ;;  %v3969_v48 = vld [vmem:[%s3516_s29 + $0x20c] sm:$0xf0] }
  0xac   : > { %4945 = vst [vmem:[#allocation109_spill] sm:$0xff] %v3837_v9  ;;  %v3972_v9 = vld [vmem:[%s3516_s29 + $0x218] sm:$0xf0] }
  0xad   : > { %4946 = vst [vmem:[#allocation110_spill] sm:$0xff] %v3840_v11  ;;  %v3957_v11 = vld [vmem:[%s3516_s29 + $0x200] sm:$0xf] }
  0xae   : > { %4947 = vst [vmem:[#allocation111_spill] sm:$0xff] %v3843_v2  ;;  %v3960_v2 = vld [vmem:[%s3516_s29 + $0x20c] sm:$0xf] }
  0xaf   : > { %4948 = vst [vmem:[#allocation112_spill] sm:$0xff] %v3846_v20  ;;  %v3867_v20 = vld [vmem:[%s3516_s29 + $0x188] sm:$0xf] }
  0xb0   : > { %4949 = vst [vmem:[#allocation113_spill] sm:$0xff] %v3849_v32  ;;  %v3870_v32 = vld [vmem:[%s3516_s29 + $0x194] sm:$0xf] }
  0xb1   : > { %4950 = vst [vmem:[#allocation114_spill] sm:$0xff] %v3852_v33  ;;  %v3873_v33 = vld [vmem:[%s3516_s29 + $0x190] sm:$0xf] }
  0xb2   : > { %4951 = vst [vmem:[#allocation115_spill] sm:$0xff] %v3855_v21  ;;  %v3876_v21 = vld [vmem:[%s3516_s29 + $0x19c] sm:$0xf] }
  0xb3   : > { %4952 = vst [vmem:[#allocation116_spill] sm:$0xff] %v3858_v18 }
  0xb4   : > { %4953 = vst [vmem:[#allocation117_spill] sm:$0xff] %v3867_v20 }
  0xb5   : > { %4954 = vst [vmem:[#allocation118_spill] sm:$0xff] %v3870_v32  ;;  %v4002_v32 = vld [vmem:[%s3516_s29 + $0x244] sm:$0xf] }
  0xb6   : > { %4955 = vst [vmem:[#allocation119_spill] sm:$0xff] %v3873_v33  ;;  %v4023_v33 = vld [vmem:[%s3516_s29 + $0x258] sm:$0xf] }
  0xb7   : > { %4956 = vst [vmem:[#allocation120_spill] sm:$0xff] %v3876_v21  ;;  %v3990_v21 = vld [vmem:[%s3516_s29 + $0x230] sm:$0xf0] }
  0xb8   : > { %4957 = vst [vmem:[#allocation121_spill] sm:$0xff] %v3879_v19  ;;  %v3999_v19 = vld [vmem:[%s3516_s29 + $0x234] sm:$0xf0] }
  0xb9   : > { %4958 = vst [vmem:[#allocation122_spill] sm:$0xff] %v3882_v44  ;;  %v3903_v44 = vld [vmem:[%s3516_s29 + $0x1b4] sm:$0xf0] }
  0xba   : > { %4959 = vst [vmem:[#allocation123_spill] sm:$0xff] %v3885_v56  ;;  %v3906_v56 = vld [vmem:[%s3516_s29 + $0x1c0] sm:$0xf0] }
  0xbb   : > { %4960 = vst [vmem:[#allocation124_spill] sm:$0xff] %v3888_v57  ;;  %v3909_v57 = vld [vmem:[%s3516_s29 + $0x1bc] sm:$0xf0] }
  0xbc   : > { %4961 = vst [vmem:[#allocation125_spill] sm:$0xff] %v3891_v45  ;;  %v3912_v45 = vld [vmem:[%s3516_s29 + $0x1c8] sm:$0xf0] }
  0xbd   : > { %4962 = vst [vmem:[#allocation126_spill] sm:$0xff] %v3906_v56  ;;  %v4005_v56 = vld [vmem:[%s3516_s29 + $0x240] sm:$0xf] }
  0xbe   : > { %4963 = vst [vmem:[#allocation127_spill] sm:$0xff] %v3909_v57  ;;  %v4008_v57 = vld [vmem:[%s3516_s29 + $0x24c] sm:$0xf] }
  0xbf   : > { %4964 = vst [vmem:[#allocation128_spill] sm:$0xff] %v3912_v45  ;;  %v3993_v45 = vld [vmem:[%s3516_s29 + $0x22c] sm:$0xf0] }
  0xc0   : > { %4965 = vst [vmem:[#allocation129_spill] sm:$0xff] %v3915_v43  ;;  %v3996_v43 = vld [vmem:[%s3516_s29 + $0x238] sm:$0xf0] }
  0xc1   : > { %4966 = vst [vmem:[#allocation130_spill] sm:$0xff] %v3918_v12  ;;  %v3939_v12 = vld [vmem:[%s3516_s29 + $0x1e8] sm:$0xf] }
  0xc2   : > { %4967 = vst [vmem:[#allocation131_spill] sm:$0xff] %v3921_v25  ;;  %v3942_v25 = vld [vmem:[%s3516_s29 + $0x1f4] sm:$0xf] }
  0xc3   : > { %4968 = vst [vmem:[#allocation132_spill] sm:$0xff] %v3924_v22  ;;  %v3945_v22 = vld [vmem:[%s3516_s29 + $0x1f0] sm:$0xf] }
  0xc4   : > { %4969 = vst [vmem:[#allocation133_spill] sm:$0xff] %v3927_v3  ;;  %v3948_v3 = vld [vmem:[%s3516_s29 + $0x1fc] sm:$0xf] }
  0xc5   : > { %4970 = vst [vmem:[#allocation134_spill] sm:$0xff] %v3930_v5 }
  0xc6   : > { %4971 = vst [vmem:[#allocation135_spill] sm:$0xff] %v3939_v12 }
  0xc7   : > { %4972 = vst [vmem:[#allocation136_spill] sm:$0xff] %v3942_v25  ;;  %v4038_v25 = vld [vmem:[%s3516_s29 + $0x270] sm:$0xf0] }
  0xc8   : > { %4973 = vst [vmem:[#allocation137_spill] sm:$0xff] %v3945_v22  ;;  %v4059_v22 = vld [vmem:[%s3516_s29 + $0x284] sm:$0xf0] }
  0xc9   : > { %4974 = vst [vmem:[#allocation138_spill] sm:$0xff] %v3948_v3  ;;  %v4026_v3 = vld [vmem:[%s3516_s29 + $0x264] sm:$0xf] }
  0xca   : > { %4975 = vst [vmem:[#allocation139_spill] sm:$0xff] %v3951_v13  ;;  %v4035_v13 = vld [vmem:[%s3516_s29 + $0x268] sm:$0xf] }
  0xcb   : > { %4976 = vst [vmem:[#allocation140_spill] sm:$0xff] %v3954_v47  ;;  %v3975_v47 = vld [vmem:[%s3516_s29 + $0x214] sm:$0xf0] }
  0xcc   : > { %4977 = vst [vmem:[#allocation141_spill] sm:$0xff] %v3957_v11  ;;  %v3978_v11 = vld [vmem:[%s3516_s29 + $0x220] sm:$0xf0] }
  0xcd   : > { %4978 = vst [vmem:[#allocation142_spill] sm:$0xff] %v3960_v2  ;;  %v3981_v2 = vld [vmem:[%s3516_s29 + $0x21c] sm:$0xf0] }
  0xce   : > { %4979 = vst [vmem:[#allocation143_spill] sm:$0xff] %v3963_v4  ;;  %v3984_v4 = vld [vmem:[%s3516_s29 + $0x228] sm:$0xf0] }
  0xcf   : > { %4980 = vst [vmem:[#allocation144_spill] sm:$0xff] %v3972_v9 }
  0xd0   : > { %4981 = vst [vmem:[#allocation145_spill] sm:$0xff] %v3978_v11  ;;  %v4041_v11 = vld [vmem:[%s3516_s29 + $0x26c] sm:$0xf0] }
  0xd1   : > { %4982 = vst [vmem:[#allocation146_spill] sm:$0xff] %v3981_v2  ;;  %v4044_v2 = vld [vmem:[%s3516_s29 + $0x278] sm:$0xf0] }
  0xd2   : > { %4983 = vst [vmem:[#allocation147_spill] sm:$0xff] %v3984_v4  ;;  %v4029_v4 = vld [vmem:[%s3516_s29 + $0x260] sm:$0xf] }
  0xd3   : > { %4984 = vst [vmem:[#allocation148_spill] sm:$0xff] %v3987_v59  ;;  %v4032_v59 = vld [vmem:[%s3516_s29 + $0x26c] sm:$0xf] }
  0xd4   : > { %4985 = vst [vmem:[#allocation149_spill] sm:$0xff] %v3990_v21  ;;  %v4011_v21 = vld [vmem:[%s3516_s29 + $0x248] sm:$0xf] }
  0xd5   : > { %4986 = vst [vmem:[#allocation150_spill] sm:$0xff] %v3993_v45  ;;  %v4014_v45 = vld [vmem:[%s3516_s29 + $0x254] sm:$0xf] }
  0xd6   : > { %4987 = vst [vmem:[#allocation151_spill] sm:$0xff] %v3996_v43  ;;  %v4017_v43 = vld [vmem:[%s3516_s29 + $0x250] sm:$0xf] }
  0xd7   : > { %4988 = vst [vmem:[#allocation152_spill] sm:$0xff] %v3999_v19  ;;  %v4020_v19 = vld [vmem:[%s3516_s29 + $0x25c] sm:$0xf] }
  0xd8   : > { %4989 = vst [vmem:[#allocation153_spill] sm:$0xff] %v4011_v21 }
  0xd9   : > { %4990 = vst [vmem:[#allocation154_spill] sm:$0xff] %v4014_v45  ;;  %v4068_v45 = vld [vmem:[%s3516_s29 + $0x298] sm:$0xf0] }
  0xda   : > { %4991 = vst [vmem:[#allocation155_spill] sm:$0xff] %v4017_v43  ;;  %v4095_v43 = vld [vmem:[%s3516_s29 + $0x2b8] sm:$0xf] }
  0xdb   : > { %4992 = vst [vmem:[#allocation156_spill] sm:$0xff] %v4020_v19  ;;  %v4062_v19 = vld [vmem:[%s3516_s29 + $0x290] sm:$0xf0] }
  0xdc   : > { %4993 = vst [vmem:[#allocation157_spill] sm:$0xff] %v4023_v33  ;;  %v4065_v33 = vld [vmem:[%s3516_s29 + $0x28c] sm:$0xf0] }
  0xdd   : > { %4994 = vst [vmem:[#allocation158_spill] sm:$0xff] %v4026_v3  ;;  %v4047_v3 = vld [vmem:[%s3516_s29 + $0x274] sm:$0xf0] }
  0xde   : > { %4995 = vst [vmem:[#allocation159_spill] sm:$0xff] %v4029_v4  ;;  %v4050_v4 = vld [vmem:[%s3516_s29 + $0x280] sm:$0xf0] }
  0xdf   : > { %4996 = vst [vmem:[#allocation160_spill] sm:$0xff] %v4032_v59  ;;  %v4053_v59 = vld [vmem:[%s3516_s29 + $0x27c] sm:$0xf0] }
  0xe0   : > { %4997 = vst [vmem:[#allocation161_spill] sm:$0xff] %v4035_v13  ;;  %v4056_v13 = vld [vmem:[%s3516_s29 + $0x288] sm:$0xf0] }
  0xe1   : > { %4998 = vst [vmem:[#allocation162_spill] sm:$0xff] %v4041_v11 }
  0xe2   : > { %4999 = vst [vmem:[#allocation163_spill] sm:$0xff] %v4044_v2 }
  0xe3   : > { %5000 = vst [vmem:[#allocation164_spill] sm:$0xff] %v4047_v3 }
  0xe4   : > { %5001 = vst [vmem:[#allocation165_spill] sm:$0xff] %v4050_v4  ;;  %v4071_v4 = vld [vmem:[%s3516_s29 + $0x294] sm:$0xf0] }
  0xe5   : > { %5002 = vst [vmem:[#allocation166_spill] sm:$0xff] %v4053_v59  ;;  %v4074_v59 = vld [vmem:[%s3516_s29 + $0x2a4] sm:$0xf] }
  0xe6   : > { %5003 = vst [vmem:[#allocation167_spill] sm:$0xff] %v4056_v13  ;;  %v4077_v13 = vld [vmem:[%s3516_s29 + $0x2a0] sm:$0xf] }
  0xe7   : > { %5004 = vst [vmem:[#allocation168_spill] sm:$0xff] %v4059_v22  ;;  %v4080_v22 = vld [vmem:[%s3516_s29 + $0x2ac] sm:$0xf] }
  0xe8   : > { %5005 = vst [vmem:[#allocation169_spill] sm:$0xff] %v4062_v19  ;;  %v4083_v19 = vld [vmem:[%s3516_s29 + $0x2a8] sm:$0xf] }
  0xe9   : > { %5006 = vst [vmem:[#allocation170_spill] sm:$0xff] %v4065_v33  ;;  %v4086_v33 = vld [vmem:[%s3516_s29 + $0x2b4] sm:$0xf] }
  0xea   : > { %5007 = vst [vmem:[#allocation171_spill] sm:$0xff] %v4068_v45  ;;  %v4089_v45 = vld [vmem:[%s3516_s29 + $0x2b0] sm:$0xf] }
  0xeb   : > { %5008 = vst [vmem:[#allocation172_spill] sm:$0xff] %v4071_v4  ;;  %v4092_v4 = vld [vmem:[%s3516_s29 + $0x2bc] sm:$0xf] }
  0xec   : > { %5009 = vst [vmem:[#allocation173_spill] sm:$0xff] %v4077_v13 }
  0xed   : > { %5010 = vst [vmem:[#allocation174_spill] sm:$0xff] %v4080_v22 }
  0xee   : > { %5011 = vst [vmem:[#allocation175_spill] sm:$0xff] %v4083_v19 }
  0xef   : > { %5012 = vst [vmem:[#allocation176_spill] sm:$0xff] %v4086_v33  ;;  %v4107_v33 = vld [vmem:[%s3516_s29 + $0x2c8] sm:$0xf] }
  0xf0   : > { %5013 = vst [vmem:[#allocation177_spill] sm:$0xff] %v4089_v45  ;;  %v4110_v45 = vld [vmem:[%s3516_s29 + $0x2d0] sm:$0xf0] }
  0xf1   : > { %5014 = vst [vmem:[#allocation178_spill] sm:$0xff] %v4092_v4  ;;  %v4113_v4 = vld [vmem:[%s3516_s29 + $0x2cc] sm:$0xf0] }
  0xf2   : > { %5015 = vst [vmem:[#allocation179_spill] sm:$0xff] %v4095_v43  ;;  %v4116_v43 = vld [vmem:[%s3516_s29 + $0x2d8] sm:$0xf0] }
  0xf3   : > { %5016 = vst [vmem:[#allocation180_spill] sm:$0xff] %v4098_v16  ;;  %v4119_v16 = vld [vmem:[%s3516_s29 + $0x2d4] sm:$0xf0] }
  0xf4   : > { %5017 = vst [vmem:[#allocation181_spill] sm:$0xff] %v4101_v28  ;;  %v4122_v28 = vld [vmem:[%s3516_s29 + $0x2e0] sm:$0xf0] }
  0xf5   : > { %5018 = vst [vmem:[#allocation182_spill] sm:$0xff] %v4104_v29  ;;  %v4125_v29 = vld [vmem:[%s3516_s29 + $0x2dc] sm:$0xf0] }
  0xf6   : > { %5019 = vst [vmem:[#allocation183_spill] sm:$0xff] %v4107_v33  ;;  %v4128_v33 = vld [vmem:[%s3516_s29 + $0x2e8] sm:$0xf0] }
  0xf7   : > { %5020 = vst [vmem:[#allocation184_spill] sm:$0xff] %v4113_v4 }
  0xf8   : > { %5021 = vst [vmem:[#allocation185_spill] sm:$0xff] %v4119_v16 }
  0xf9   : > { %5022 = vst [vmem:[#allocation186_spill] sm:$0xff] %v4122_v28  ;;  %v4143_v28 = vld [vmem:[%s3516_s29 + $0x2f4] sm:$0xf0] }
  0xfa   : > { %5023 = vst [vmem:[#allocation187_spill] sm:$0xff] %v4125_v29  ;;  %v4146_v29 = vld [vmem:[%s3518_s10] sm:$0xf] }
  0xfb   : > { %5024 = vst [vmem:[#allocation188_spill] sm:$0xff] %v4128_v33  ;;  %v4149_v33 = vld [vmem:[%s3518_s10] sm:$0xf0] }
  0xfc   : > { %5025 = vst [vmem:[#allocation189_spill] sm:$0xff] %v4131_v17  ;;  %v4152_v17 = vld [vmem:[%s3518_s10 + $0x8] sm:$0xf] }
  0xfd   : > { %5026 = vst [vmem:[#allocation190_spill] sm:$0xff] %v4134_v14  ;;  %v4155_v14 = vld [vmem:[%s3518_s10 + $0x8] sm:$0xf0] }
  0xfe   : > { %5027 = vst [vmem:[#allocation191_spill] sm:$0xff] %v4137_v26  ;;  %v4158_v26 = vld [vmem:[%s3518_s10 + $0x10] sm:$0xf] }
  0xff   : > { %5028 = vst [vmem:[#allocation192_spill] sm:$0xff] %v4140_v27  ;;  %v4161_v27 = vld [vmem:[%s3518_s10 + $0x10] sm:$0xf0] }
 0x100   : > { %5029 = vst [vmem:[#allocation193_spill] sm:$0xff] %v4143_v28  ;;  %v4164_v28 = vld [vmem:[%s3518_s10 + $0x18] sm:$0xf] }
 0x101   : > { %5030 = vst [vmem:[#allocation194_spill] sm:$0xff] %v4146_v29  ;;  %v4167_v29 = vld [vmem:[%s3518_s10 + $0x18] sm:$0xf0] }
 0x102   : > { %5031 = vst [vmem:[#allocation195_spill] sm:$0xff] %v4149_v33  ;;  %v4170_v33 = vld [vmem:[%s3518_s10 + $0x20] sm:$0xf] }
 0x103   : > { %5032 = vst [vmem:[#allocation196_spill] sm:$0xff] %v4152_v17  ;;  %v4173_v17 = vld [vmem:[%s3518_s10 + $0x20] sm:$0xf0] }
 0x104   : > { %5033 = vst [vmem:[#allocation197_spill] sm:$0xff] %v4155_v14  ;;  %v4176_v14 = vld [vmem:[%s3518_s10 + $0x28] sm:$0xf] }
 0x105   : > { %5034 = vst [vmem:[#allocation198_spill] sm:$0xff] %v4158_v26  ;;  %v4179_v26 = vld [vmem:[%s3518_s10 + $0x28] sm:$0xf0] }
 0x106   : > { %5035 = vst [vmem:[#allocation199_spill] sm:$0xff] %v4161_v27  ;;  %v4182_v27 = vld [vmem:[%s3518_s10 + $0x30] sm:$0xf] }
 0x107   : > { %5036 = vst [vmem:[#allocation200_spill] sm:$0xff] %v4164_v28  ;;  %v4185_v28 = vld [vmem:[%s3518_s10 + $0x30] sm:$0xf0] }
 0x108   : > { %5037 = vst [vmem:[#allocation201_spill] sm:$0xff] %v4167_v29  ;;  %v4188_v29 = vld [vmem:[%s3518_s10 + $0x38] sm:$0xf] }
 0x109   : > { %5038 = vst [vmem:[#allocation202_spill] sm:$0xff] %v4170_v33  ;;  %v4191_v33 = vld [vmem:[%s3518_s10 + $0x38] sm:$0xf0] }
 0x10a   : > { %5039 = vst [vmem:[#allocation203_spill] sm:$0xff] %v4173_v17  ;;  %v4194_v17 = vld [vmem:[%s3518_s10 + $0x40] sm:$0xf] }
 0x10b   : > { %5040 = vst [vmem:[#allocation204_spill] sm:$0xff] %v4176_v14  ;;  %v4197_v14 = vld [vmem:[%s3518_s10 + $0x40] sm:$0xf0] }
 0x10c   : > { %5041 = vst [vmem:[#allocation205_spill] sm:$0xff] %v4179_v26  ;;  %v4200_v26 = vld [vmem:[%s3518_s10 + $0x48] sm:$0xf] }
 0x10d   : > { %5042 = vst [vmem:[#allocation206_spill] sm:$0xff] %v4182_v27  ;;  %v4203_v27 = vld [vmem:[%s3518_s10 + $0x48] sm:$0xf0] }
 0x10e   : > { %5043 = vst [vmem:[#allocation207_spill] sm:$0xff] %v4185_v28  ;;  %v4206_v28 = vld [vmem:[%s3518_s10 + $0x50] sm:$0xf] }
 0x10f   : > { %5044 = vst [vmem:[#allocation208_spill] sm:$0xff] %v4188_v29  ;;  %v4209_v29 = vld [vmem:[%s3518_s10 + $0x50] sm:$0xf0] }
 0x110   : > { %5045 = vst [vmem:[#allocation209_spill] sm:$0xff] %v4191_v33  ;;  %v4212_v33 = vld [vmem:[%s3518_s10 + $0x58] sm:$0xf] }
 0x111   : > { %5046 = vst [vmem:[#allocation210_spill] sm:$0xff] %v4194_v17  ;;  %v4215_v17 = vld [vmem:[%s3518_s10 + $0x58] sm:$0xf0] }
 0x112   : > { %5047 = vst [vmem:[#allocation211_spill] sm:$0xff] %v4197_v14  ;;  %v4218_v14 = vld [vmem:[%s3518_s10 + $0x60] sm:$0xf] }
 0x113   : > { %5048 = vst [vmem:[#allocation212_spill] sm:$0xff] %v4200_v26  ;;  %v4221_v26 = vld [vmem:[%s3518_s10 + $0x60] sm:$0xf0] }
 0x114   : > { %5049 = vst [vmem:[#allocation213_spill] sm:$0xff] %v4203_v27  ;;  %v4224_v27 = vld [vmem:[%s3518_s10 + $0x68] sm:$0xf] }
 0x115   : > { %5050 = vst [vmem:[#allocation214_spill] sm:$0xff] %v4206_v28  ;;  %v4227_v28 = vld [vmem:[%s3518_s10 + $0x68] sm:$0xf0] }
 0x116   : > { %5051 = vst [vmem:[#allocation215_spill] sm:$0xff] %v4209_v29  ;;  %v4230_v29 = vld [vmem:[%s3518_s10 + $0x70] sm:$0xf] }
 0x117   : > { %5052 = vst [vmem:[#allocation216_spill] sm:$0xff] %v4212_v33  ;;  %v4233_v33 = vld [vmem:[%s3518_s10 + $0x70] sm:$0xf0] }
 0x118   : > { %5053 = vst [vmem:[#allocation217_spill] sm:$0xff] %v4215_v17  ;;  %v4236_v17 = vld [vmem:[%s3518_s10 + $0x78] sm:$0xf] }
 0x119   : > { %5054 = vst [vmem:[#allocation218_spill] sm:$0xff] %v4218_v14  ;;  %v4239_v14 = vld [vmem:[%s3518_s10 + $0x78] sm:$0xf0] }
 0x11a   : > { %5055 = vst [vmem:[#allocation219_spill] sm:$0xff] %v4221_v26  ;;  %v4242_v26 = vld [vmem:[%s3518_s10 + $0x80] sm:$0xf] }
 0x11b   : > { %5056 = vst [vmem:[#allocation220_spill] sm:$0xff] %v4224_v27  ;;  %v4245_v27 = vld [vmem:[%s3518_s10 + $0x80] sm:$0xf0] }
 0x11c   : > { %5057 = vst [vmem:[#allocation221_spill] sm:$0xff] %v4227_v28  ;;  %v4248_v28 = vld [vmem:[%s3518_s10 + $0x88] sm:$0xf] }
 0x11d   : > { %5058 = vst [vmem:[#allocation222_spill] sm:$0xff] %v4230_v29  ;;  %v4251_v29 = vld [vmem:[%s3518_s10 + $0x88] sm:$0xf0] }
 0x11e   : > { %5059 = vst [vmem:[#allocation223_spill] sm:$0xff] %v4233_v33  ;;  %v4254_v33 = vld [vmem:[%s3518_s10 + $0x90] sm:$0xf] }
 0x11f   : > { %5060 = vst [vmem:[#allocation224_spill] sm:$0xff] %v4236_v17  ;;  %v4257_v17 = vld [vmem:[%s3518_s10 + $0x90] sm:$0xf0] }
 0x120   : > { %5061 = vst [vmem:[#allocation225_spill] sm:$0xff] %v4239_v14  ;;  %v4260_v14 = vld [vmem:[%s3518_s10 + $0x98] sm:$0xf] }
 0x121   : > { %5062 = vst [vmem:[#allocation226_spill] sm:$0xff] %v4242_v26  ;;  %v4263_v26 = vld [vmem:[%s3518_s10 + $0x98] sm:$0xf0] }
 0x122   : > { %5063 = vst [vmem:[#allocation227_spill] sm:$0xff] %v4245_v27  ;;  %v4266_v27 = vld [vmem:[%s3518_s10 + $0xa0] sm:$0xf] }
 0x123   : > { %5064 = vst [vmem:[#allocation228_spill] sm:$0xff] %v4248_v28  ;;  %v4269_v28 = vld [vmem:[%s3518_s10 + $0xa0] sm:$0xf0] }
 0x124   : > { %5065 = vst [vmem:[#allocation229_spill] sm:$0xff] %v4251_v29  ;;  %v4272_v29 = vld [vmem:[%s3518_s10 + $0xa8] sm:$0xf] }
 0x125   : > { %5066 = vst [vmem:[#allocation230_spill] sm:$0xff] %v4254_v33  ;;  %v4275_v33 = vld [vmem:[%s3518_s10 + $0xa8] sm:$0xf0] }
 0x126   : > { %5067 = vst [vmem:[#allocation231_spill] sm:$0xff] %v4257_v17  ;;  %v4278_v17 = vld [vmem:[%s3518_s10 + $0xb0] sm:$0xf] }
 0x127   : > { %5068 = vst [vmem:[#allocation232_spill] sm:$0xff] %v4260_v14  ;;  %v4281_v14 = vld [vmem:[%s3518_s10 + $0xb0] sm:$0xf0] }
 0x128   : > { %5069 = vst [vmem:[#allocation233_spill] sm:$0xff] %v4263_v26  ;;  %v4284_v26 = vld [vmem:[%s3518_s10 + $0xb8] sm:$0xf] }
 0x129   : > { %5070 = vst [vmem:[#allocation234_spill] sm:$0xff] %v4266_v27  ;;  %v4287_v27 = vld [vmem:[%s3518_s10 + $0xb8] sm:$0xf0] }
 0x12a   : > { %5071 = vst [vmem:[#allocation235_spill] sm:$0xff] %v4269_v28  ;;  %v4290_v28 = vld [vmem:[%s3518_s10 + $0xc0] sm:$0xf] }
 0x12b   : > { %5072 = vst [vmem:[#allocation236_spill] sm:$0xff] %v4272_v29  ;;  %v4293_v29 = vld [vmem:[%s3518_s10 + $0xc0] sm:$0xf0] }
 0x12c   : > { %5073 = vst [vmem:[#allocation237_spill] sm:$0xff] %v4275_v33  ;;  %v4296_v33 = vld [vmem:[%s3518_s10 + $0xc8] sm:$0xf] }
 0x12d   : > { %5074 = vst [vmem:[#allocation238_spill] sm:$0xff] %v4278_v17  ;;  %v4299_v17 = vld [vmem:[%s3518_s10 + $0xc8] sm:$0xf0] }
 0x12e   : > { %5075 = vst [vmem:[#allocation239_spill] sm:$0xff] %v4281_v14  ;;  %v4302_v14 = vld [vmem:[%s3518_s10 + $0xd0] sm:$0xf] }
 0x12f   : > { %5076 = vst [vmem:[#allocation240_spill] sm:$0xff] %v4284_v26  ;;  %v4305_v26 = vld [vmem:[%s3518_s10 + $0xd0] sm:$0xf0] }
 0x130   : > { %5077 = vst [vmem:[#allocation241_spill] sm:$0xff] %v4287_v27  ;;  %v4308_v27 = vld [vmem:[%s3518_s10 + $0xd8] sm:$0xf] }
 0x131   : > { %5078 = vst [vmem:[#allocation242_spill] sm:$0xff] %v4290_v28  ;;  %v4311_v28 = vld [vmem:[%s3518_s10 + $0xd8] sm:$0xf0] }
 0x132   : > { %5079 = vst [vmem:[#allocation243_spill] sm:$0xff] %v4293_v29  ;;  %v4314_v29 = vld [vmem:[%s3518_s10 + $0xe0] sm:$0xf] }
 0x133   : > { %5080 = vst [vmem:[#allocation244_spill] sm:$0xff] %v4296_v33  ;;  %v4317_v33 = vld [vmem:[%s3518_s10 + $0xe0] sm:$0xf0] }
 0x134   : > { %5081 = vst [vmem:[#allocation245_spill] sm:$0xff] %v4299_v17  ;;  %v4320_v17 = vld [vmem:[%s3518_s10 + $0xe8] sm:$0xf] }
 0x135   : > { %5082 = vst [vmem:[#allocation246_spill] sm:$0xff] %v4302_v14  ;;  %v4323_v14 = vld [vmem:[%s3518_s10 + $0xe8] sm:$0xf0] }
 0x136   : > { %5083 = vst [vmem:[#allocation247_spill] sm:$0xff] %v4305_v26  ;;  %v4326_v26 = vld [vmem:[%s3518_s10 + $0xf0] sm:$0xf] }
 0x137   : > { %5084 = vst [vmem:[#allocation248_spill] sm:$0xff] %v4308_v27  ;;  %v4329_v27 = vld [vmem:[%s3518_s10 + $0xf0] sm:$0xf0] }
 0x138   : > { %5085 = vst [vmem:[#allocation249_spill] sm:$0xff] %v4311_v28  ;;  %v4332_v28 = vld [vmem:[%s3518_s10 + $0xf8] sm:$0xf] }
 0x139   : > { %5086 = vst [vmem:[#allocation250_spill] sm:$0xff] %v4314_v29  ;;  %v4335_v29 = vld [vmem:[%s3518_s10 + $0xf8] sm:$0xf0] }
 0x13a   : > { %5087 = vst [vmem:[#allocation251_spill] sm:$0xff] %v4317_v33  ;;  %v4338_v33 = vld [vmem:[%s3524_s12] sm:$0xf] }
 0x13b   : > { %5088 = vst [vmem:[#allocation252_spill] sm:$0xff] %v4320_v17  ;;  %v4341_v17 = vld [vmem:[%s3524_s12] sm:$0xf0] }
 0x13c   : > { %5089 = vst [vmem:[#allocation253_spill] sm:$0xff] %v4323_v14  ;;  %v4344_v14 = vld [vmem:[%s3524_s12 + $0x8] sm:$0xf] }
 0x13d   : > { %5090 = vst [vmem:[#allocation254_spill] sm:$0xff] %v4326_v26  ;;  %v4347_v26 = vld [vmem:[%s3524_s12 + $0x8] sm:$0xf0] }
 0x13e   : > { %5091 = vst [vmem:[#allocation255_spill] sm:$0xff] %v4329_v27  ;;  %v4350_v27 = vld [vmem:[%s3524_s12 + $0x10] sm:$0xf] }
 0x13f   : > { %5092 = vst [vmem:[#allocation256_spill] sm:$0xff] %v4332_v28  ;;  %v4353_v28 = vld [vmem:[%s3524_s12 + $0x10] sm:$0xf0] }
 0x140   : > { %5093 = vst [vmem:[#allocation257_spill] sm:$0xff] %v4335_v29  ;;  %v4356_v29 = vld [vmem:[%s3524_s12 + $0x18] sm:$0xf] }
 0x141   : > { %5094 = vst [vmem:[#allocation258_spill] sm:$0xff] %v4338_v33  ;;  %v4359_v33 = vld [vmem:[%s3524_s12 + $0x18] sm:$0xf0] }
 0x142   : > { %5095 = vst [vmem:[#allocation259_spill] sm:$0xff] %v4341_v17  ;;  %v4362_v17 = vld [vmem:[%s3524_s12 + $0x20] sm:$0xf] }
 0x143   : > { %5096 = vst [vmem:[#allocation260_spill] sm:$0xff] %v4344_v14  ;;  %v4365_v14 = vld [vmem:[%s3524_s12 + $0x20] sm:$0xf0] }
 0x144   : > { %5097 = vst [vmem:[#allocation261_spill] sm:$0xff] %v4347_v26  ;;  %v4368_v26 = vld [vmem:[%s3524_s12 + $0x28] sm:$0xf] }
 0x145   : > { %5098 = vst [vmem:[#allocation262_spill] sm:$0xff] %v4350_v27  ;;  %v4371_v27 = vld [vmem:[%s3524_s12 + $0x28] sm:$0xf0] }
 0x146   : > { %5099 = vst [vmem:[#allocation263_spill] sm:$0xff] %v4353_v28  ;;  %v4374_v28 = vld [vmem:[%s3524_s12 + $0x30] sm:$0xf] }
 0x147   : > { %5100 = vst [vmem:[#allocation264_spill] sm:$0xff] %v4356_v29  ;;  %v4377_v29 = vld [vmem:[%s3524_s12 + $0x30] sm:$0xf0] }
 0x148   : > { %5101 = vst [vmem:[#allocation265_spill] sm:$0xff] %v4359_v33  ;;  %v4380_v33 = vld [vmem:[%s3524_s12 + $0x38] sm:$0xf] }
 0x149   : > { %5102 = vst [vmem:[#allocation266_spill] sm:$0xff] %v4362_v17  ;;  %v4383_v17 = vld [vmem:[%s3524_s12 + $0x38] sm:$0xf0] }
 0x14a   : > { %5103 = vst [vmem:[#allocation267_spill] sm:$0xff] %v4365_v14  ;;  %v4386_v14 = vld [vmem:[%s3526_s16] sm:$0xf] }
 0x14b   : > { %5104 = vst [vmem:[#allocation268_spill] sm:$0xff] %v4368_v26  ;;  %v4392_v26 = vld [vmem:[%s3526_s16 + $0x8] sm:$0xf] }
 0x14c   : > { %5105 = vst [vmem:[#allocation269_spill] sm:$0xff] %v4371_v27  ;;  %v4395_v27 = vld [vmem:[%s3526_s16 + $0x8] sm:$0xf0] }
 0x14d   : > { %5106 = vst [vmem:[#allocation270_spill] sm:$0xff] %v4374_v28  ;;  %v4401_v28 = vld [vmem:[%s3526_s16 + $0x10] sm:$0xf0] }
 0x14e   : > { %5107 = vst [vmem:[#allocation271_spill] sm:$0xff] %v4377_v29  ;;  %v4404_v29 = vld [vmem:[%s3526_s16 + $0x18] sm:$0xf] }
 0x14f   : > { %5108 = vst [vmem:[#allocation272_spill] sm:$0xff] %v4380_v33  ;;  %v4410_v33 = vld [vmem:[%s3526_s16 + $0x20] sm:$0xf] }
 0x150   : > { %5109 = vst [vmem:[#allocation273_spill] sm:$0xff] %v4383_v17  ;;  %v4413_v17 = vld [vmem:[%s3526_s16 + $0x20] sm:$0xf0] }
 0x151   : > { %5110 = vst [vmem:[#allocation274_spill] sm:$0xff] %v4386_v14  ;;  %v4419_v14 = vld [vmem:[%s3526_s16 + $0x28] sm:$0xf0] }
 0x152   : > { %5111 = vst [vmem:[#allocation275_spill] sm:$0xff] %v4389_v15  ;;  %v4422_v15 = vld [vmem:[%s3526_s16 + $0x30] sm:$0xf] }
 0x153   : > { %5112 = vst [vmem:[#allocation276_spill] sm:$0xff] %v4392_v26  ;;  %v4425_v26 = vld [vmem:[%s3526_s16 + $0x30] sm:$0xf0] }
 0x154   : > { %5113 = vst [vmem:[#allocation277_spill] sm:$0xff] %v4395_v27  ;;  %v4428_v27 = vld [vmem:[%s3526_s16 + $0x38] sm:$0xf] }
 0x155   : > { %5114 = vst [vmem:[#allocation278_spill] sm:$0xff] %v4398_v40  ;;  %v4431_v40 = vld [vmem:[%s3526_s16 + $0x38] sm:$0xf0] }
 0x156   : > { %5115 = vst [vmem:[#allocation279_spill] sm:$0xff] %v4401_v28 }
 0x157   : > { %5116 = vst [vmem:[#allocation280_spill] sm:$0xff] %v4404_v29 }
 0x158   : > { %5117 = vst [vmem:[#allocation281_spill] sm:$0xff] %v4407_v52 }
 0x159   : > { %5118 = vst [vmem:[#allocation282_spill] sm:$0xff] %v4410_v33 }
 0x15a   : > { %5119 = vst [vmem:[#allocation283_spill] sm:$0xff] %v4413_v17 }
 0x15b   : > { %5120 = vst [vmem:[#allocation284_spill] sm:$0xff] %v4416_v53 }
 0x15c   : > { %5121 = vst [vmem:[#allocation285_spill] sm:$0xff] %v4419_v14 }
 0x15d LB: >> { %s2174_s30 = sshll.u32 %s3327_s24, 3  ;;  %v5122_v13 = vld [vmem:[#allocation173_spill] sm:$0xff]  ;;  %v5123_v4 = vld [vmem:[#allocation184_spill] sm:$0xff]  ;;  %v2519_v29 = vor.u32 %v4074_v59, %v4110_v45  ;;  %v5124_v19 = vld [vmem:[#allocation175_spill] sm:$0xff]  ;;  %v2471_v53 = vor.u32 %v4002_v32, %v4038_v25  ;;  %vm1398_vm4 = vcmask 1043456   ;;  %vm1382_vm5 = vcmask 64512   ;;  %s3327_s24 = sphi %s4433_s24, %s682_s24  }
 0x15e   : >> { %s4439_s17 = scalar_lea.vmem [#allocation13], %s2174_s30  ;;  %v2515_v52 = vor.u32 %v5123_v4, %v5122_v13  ;;  %v5125_v16 = vld [vmem:[#allocation185_spill] sm:$0xff]  ;;  %v5126_v22 = vld [vmem:[#allocation174_spill] sm:$0xff]  ;;  %v5129_v3 = vld [vmem:[#allocation164_spill] sm:$0xff]  ;;  %s682_s24 = sadd.s32 1, %s3327_s24  }
 0x15f   : >> { %v4442_v28 = vld [vmem:[%s4439_s17] sm:$0xff]  ;;  %v2523_v17 = vor.u32 %v5125_v16, %v5124_v19  ;;  %v2527_v33 = vor.u32 %v5126_v22, %v4116_v43  ;;  %1222 = vmatpush.bf16.msra.mxu1 %v2519_v29  ;;  %v5128_v21 = vld [vmem:[#allocation153_spill] sm:$0xff]  ;;  %v5130_v2 = vld [vmem:[#allocation163_spill] sm:$0xff]  ;;  %p679_p2 = scmp.ge.s32.totalorder %s682_s24, 2  }
 0x160   : >> { %686 = vadd.xlane.f32.xlu0 %v4442_v28  ;;  %1209 = vmatpush.bf16.msra.mxu0 %v2515_v52  ;;  %v5127_v11 = vld [vmem:[#allocation162_spill] sm:$0xff]  ;;  %v2475_v4 = vor.u32 %v5129_v3, %v5128_v21  ;;  %v2479_v13 = vor.u32 %v4008_v57, %v5130_v2  ;;  %v2419_v52 = vor.u32 %v3969_v48, %v3933_v36  ;;  %v5132_v12 = vld [vmem:[#allocation135_spill] sm:$0xff]  ;;  %v5133_v9 = vld [vmem:[#allocation144_spill] sm:$0xff]  ;;  %v690_v2 = vlaneseq  ;;  %p2954_p3 = scmp.eq.s32.totalorder (%p679_p2), %s3450_s14, 1  ;;  %s1981_s27 = sshll.u32 (%p679_p2), %s4836_s6, 4  ;;  %s1982_s27 = int_to_ptr.hbm [resolvable:$true] %s1981_s27 }
 0x161   : >> { %v2467_v14 = vor.u32 %v5127_v11, %v4005_v56  ;;  %1235 = vmatpush.bf16.msra.mxu2 %v2523_v17  ;;  %1248 = vmatpush.bf16.msra.mxu3 %v2527_v33  ;;  %v5131_v5 = vld [vmem:[#allocation134_spill] sm:$0xff]  ;;  %v2427_v17 = vor.u32 %v3975_v47, %v5132_v12  ;;  %v2431_v33 = vor.u32 %v3936_v37, %v5133_v9  ;;  %v5134_v18 = vld [vmem:[#allocation116_spill] sm:$0xff]  ;;  %v5135_v20 = vld [vmem:[#allocation117_spill] sm:$0xff]  ;;  %s3337_s18 = smov (%p679_p2), [#allocation13]   ;;  %s3338_s21 = smov (%p679_p2), 128  }
 0x162   : >> { %v2423_v29 = vor.u32 %v5131_v5, %v3966_v58  ;;  %v5136_v23 = vld [vmem:[#allocation107_spill] sm:$0xff]  ;;  %v5137_v10 = vld [vmem:[#allocation106_spill] sm:$0xff]  ;;  %v5138_v7 = vld [vmem:[#allocation88_spill] sm:$0xff]  ;;  %v691_v3 = vand.u32 127, %v690_v2  ;;  %s1979_s19 = sshll.u32 (%p679_p2), %s3337_s18, 4  ;;  %s3339_s23 = smov (%p679_p2), 8   ;;  %s1980_s19 = int_to_ptr.vmem [resolvable:$true] %s1979_s19 }
 0x163   : >> { %1223 = vmatpush.bf16.msra.mxu1 %v2471_v53  ;;  %v2375_v53 = vor.u32 %v5134_v18, %v3894_v42  ;;  %v5139_v8 = vld [vmem:[#allocation87_spill] sm:$0xff]  ;;  %v5140_v1 = vld [vmem:[#allocation78_spill] sm:$0xff]  ;;  %v5141_v6 = vld [vmem:[#allocation89_spill] sm:$0xff] }
 0x164   : >> { %1210 = vmatpush.bf16.msra.mxu0 %v2467_v14  ;;  %v2371_v14 = vor.u32 %v3897_v54, %v3861_v30  ;;  %v5142_v0 = vld [vmem:[#allocation77_spill] sm:$0xff]  ;;  %vm692_vm0 = vcmp.lt.s32.totalorder %v691_v3, 32  ;;  %v5148_v3 = vld [vmem:[#allocation46_spill] sm:$0xff]  ;;  %v5157_v16 = vld [vmem:[#allocation176_spill] sm:$0xff] }
 0x165   : >> { %1236 = vmatpush.bf16.msra.mxu2 %v2475_v4  ;;  %1249 = vmatpush.bf16.msra.mxu3 %v2479_v13  ;;  %v2379_v4 = vor.u32 %v3903_v44, %v5135_v20  ;;  %v2383_v13 = vor.u32 %v3864_v31, %v3900_v55  ;;  %v5156_v12 = vld [vmem:[#allocation186_spill] sm:$0xff]  ;;  %v5160_v20 = vld [vmem:[#allocation188_spill] sm:$0xff] }
 0x166   : >> { %v2535_v18 = vor.u32 %v5157_v16, %v5156_v12  ;;  %v5166_v16 = vld [vmem:[#allocation157_spill] sm:$0xff] }
 0x167   : >> { %1224 = vmatpush.bf16.msra.mxu1 %v2423_v29  ;;  %v2327_v29 = vor.u32 %v3786_v60, %v3822_v34 }
 0x168   : >> { %1211 = vmatpush.bf16.msra.mxu0 %v2419_v52  ;;  %v2323_v52 = vor.u32 %v3825_v35, %v3789_v61 }
 0x169   : >> { %1237 = vmatpush.bf16.msra.mxu2 %v2427_v17  ;;  %1250 = vmatpush.bf16.msra.mxu3 %v2431_v33  ;;  %v2331_v17 = vor.u32 %v5136_v23, %v3795_v46  ;;  %v2335_v33 = vor.u32 %v3792_v49, %v5137_v10  ;;  %v5287_v23 = vld [vmem:[#allocation24_spill] sm:$0xff] }
 0x16b   : >> { %1225 = vmatpush.bf16.msra.mxu1 %v2375_v53  ;;  %v2279_v53 = vor.u32 %v3714_v62, %v5139_v8 }
 0x16c   : >> { %1212 = vmatpush.bf16.msra.mxu0 %v2371_v14  ;;  %v2275_v14 = vor.u32 %v5138_v7, %v3717_v63  ;;  %v5144_v7 = vld [vmem:[#allocation67_spill] sm:$0xff] }
 0x16d   : >> { %1238 = vmatpush.bf16.msra.mxu2 %v2379_v4  ;;  %1251 = vmatpush.bf16.msra.mxu3 %v2383_v13  ;;  %v2283_v4 = vor.u32 %v3759_v24, %v5140_v1  ;;  %v2287_v13 = vor.u32 %v5142_v0, %v5141_v6  ;;  %v5145_v1 = vld [vmem:[#allocation58_spill] sm:$0xff]  ;;  %v5150_v0 = vld [vmem:[#allocation37_spill] sm:$0xff]  ;;  %v5152_v6 = vld [vmem:[#allocation48_spill] sm:$0xff] }
 0x16e   : >> { %v2239_v8 = vor.u32 %v5145_v1, %v5144_v7  ;;  %v5147_v7 = vld [vmem:[#allocation47_spill] sm:$0xff]  ;;  %v5149_v1 = vld [vmem:[#allocation34_spill] sm:$0xff] }
 0x16f   : >> { %1226 = vmatpush.bf16.msra.mxu1 %v2327_v29  ;;  %v2231_v29 = vor.u32 %v3642_v38, %v3678_v50 }
 0x170   : >> { %1213 = vmatpush.bf16.msra.mxu0 %v2323_v52  ;;  %v2227_v52 = vor.u32 %v3681_v51, %v3645_v39 }
 0x171   : >> { %1239 = vmatpush.bf16.msra.mxu2 %v2331_v17  ;;  %1252 = vmatpush.bf16.msra.mxu3 %v2335_v33  ;;  %v5143_v17 = vld [vmem:[#allocation68_spill] sm:$0xff] }
 0x172   : >> { %v2235_v33 = vor.u32 %v5143_v17, %v3651_v41  ;;  %v5146_v17 = vld [vmem:[#allocation35_spill] sm:$0xff] }
 0x173   : >> { %1227 = vmatpush.bf16.msra.mxu1 %v2279_v53 }
 0x174   : >> { %1214 = vmatpush.bf16.msra.mxu0 %v2275_v14  ;;  %v3336_v14 = vmov 0.0  }
 0x175   : >> { %1240 = vmatpush.bf16.msra.mxu2 %v2283_v4  ;;  %1253 = vmatpush.bf16.msra.mxu3 %v2287_v13  ;;  %v4504_v53 = vsel %vm692_vm0, 1.0, %v3336_v14  ;;  %v5153_v14 = vld [vmem:[#allocation36_spill] sm:$0xff] }
 0x176   : >> { %v2191_v10 = vor.u32 %v5153_v14, %v5152_v6  ;;  %v5162_v6 = vld [vmem:[#allocation155_spill] sm:$0xff]  ;;  %v5167_v14 = vld [vmem:[#allocation168_spill] sm:$0xff] }
 0x177   : >> { %1228 = vmatpush.bf16.msra.mxu1 %v2231_v29 }
 0x178   : >> { %1215 = vmatpush.bf16.msra.mxu0 %v2227_v52  ;;  %v5151_v52 = vld [vmem:[#allocation49_spill] sm:$0xff] }
 0x179   : >> { %1241 = vmatpush.bf16.msra.mxu2 %v2235_v33  ;;  %1254 = vmatpush.bf16.msra.mxu3 %v2239_v8  ;;  %v2187_v29 = vor.u32 %v5151_v52, %v5150_v0  ;;  %v5154_v33 = vld [vmem:[#allocation177_spill] sm:$0xff]  ;;  %v5155_v8 = vld [vmem:[#allocation187_spill] sm:$0xff]  ;;  %v5163_v0 = vld [vmem:[#allocation166_spill] sm:$0xff] }
 0x17a   : >> { %v2531_v11 = vor.u32 %v5155_v8, %v5154_v33  ;;  %v5165_v52 = vld [vmem:[#allocation154_spill] sm:$0xff]  ;;  %v2491_v33 = vor.u32 %v5167_v14, %v5166_v16  ;;  %v5168_v8 = vld [vmem:[#allocation167_spill] sm:$0xff] }
 0x17b   : >> { %v5181_v16 = vld [vmem:[#allocation118_spill] sm:$0xff] }
 0x17d   : >> { %1242 = vmatpush.bf16.msra.mxu2 %v2187_v29  ;;  %1255 = vmatpush.bf16.msra.mxu3 %v2191_v10  ;;  %v5170_v10 = vld [vmem:[#allocation137_spill] sm:$0xff]  ;;  %v5174_v29 = vld [vmem:[#allocation139_spill] sm:$0xff] }
 0x1d3   : >> { %v687_v5 = vpop.xlane.xlu0 %686 }
 0x1d4   : >> { %v688_v9 = vmul.f32 0.03125, %v687_v5  ;;  %v2179_v5 = vor.u32 %v5147_v7, %v5146_v17  ;;  %v5161_v17 = vld [vmem:[#allocation178_spill] sm:$0xff] }
 0x1d5   : >> { %v2543_v7 = vor.u32 %v5161_v17, %v5160_v20 }
 0x1d6   : >> { %v4502_v2 = vsub.f32 %v4442_v28, %v688_v9  ;;  %v2183_v9 = vor.u32 %v5149_v1, %v5148_v3  ;;  %1216 = vmatpush.bf16.msra.mxu0 %v2179_v5  ;;  %v2483_v3 = vor.u32 %v5163_v0, %v5162_v6  ;;  %v5164_v1 = vld [vmem:[#allocation165_spill] sm:$0xff]  ;;  %v5173_v5 = vld [vmem:[#allocation136_spill] sm:$0xff]  ;;  %v5177_v6 = vld [vmem:[#allocation138_spill] sm:$0xff] }
 0x1d7   : >> { %1300 = vmatpush.bf16.msrb.mxu3 %v2543_v7  ;;  %v2487_v12 = vor.u32 %v5165_v52, %v5164_v1  ;;  %v5176_v7 = vld [vmem:[#allocation147_spill] sm:$0xff] }
 0x1d8   : >> { %v695_v4 = vmul.f32 %v4502_v2, %v4502_v2  ;;  %1229 = vmatpush.bf16.msra.mxu1 %v2183_v9  ;;  %v2447_v0 = vor.u32 %v5177_v6, %v5176_v7  ;;  %v5179_v1 = vld [vmem:[#allocation127_spill] sm:$0xff] }
 0x1d9   : >> { %v5191_v7 = vld [vmem:[#allocation111_spill] sm:$0xff] }
 0x1da   : >> { %v696_v13 = vmul.f32 %v4504_v53, %v695_v4  ;;  %v5158_v4 = vld [vmem:[#allocation179_spill] sm:$0xff]  ;;  %1261 = vmatpush.bf16.msrb.mxu0 %v2531_v11  ;;  %v5171_v11 = vld [vmem:[#allocation146_spill] sm:$0xff] }
 0x1dc   : >> { %697 = vadd.xlane.f32.xlu0 %v696_v13  ;;  %v5159_v13 = vld [vmem:[#allocation189_spill] sm:$0xff]  ;;  %1274 = vmatpush.bf16.msrb.mxu1 %v2535_v18  ;;  %v2435_v18 = vor.u32 %v5171_v11, %v5170_v10  ;;  %v5185_v10 = vld [vmem:[#allocation120_spill] sm:$0xff] }
 0x1dd   : >> { %v2539_v19 = vor.u32 %v5159_v13, %v5158_v4  ;;  %v5169_v4 = vld [vmem:[#allocation156_spill] sm:$0xff] }
 0x1de   : >> { %v2495_v20 = vor.u32 %v5169_v4, %v5168_v8  ;;  %1262 = vmatpush.bf16.msrb.mxu0 %v2483_v3  ;;  %v5175_v13 = vld [vmem:[#allocation148_spill] sm:$0xff]  ;;  %v5178_v3 = vld [vmem:[#allocation119_spill] sm:$0xff]  ;;  %v5183_v8 = vld [vmem:[#allocation129_spill] sm:$0xff] }
 0x1df   : >> { %1287 = vmatpush.bf16.msrb.mxu2 %v2539_v19  ;;  %v5172_v19 = vld [vmem:[#allocation145_spill] sm:$0xff]  ;;  %v2443_v17 = vor.u32 %v5175_v13, %v5174_v29  ;;  %v2387_v52 = vor.u32 %v5179_v1, %v5178_v3  ;;  %v5189_v29 = vld [vmem:[#allocation98_spill] sm:$0xff]  ;;  %v5193_v3 = vld [vmem:[#allocation100_spill] sm:$0xff] }
 0x1e0   : >> { %1275 = vmatpush.bf16.msrb.mxu1 %v2487_v12  ;;  %1301 = vmatpush.bf16.msrb.mxu3 %v2495_v20  ;;  %v2439_v9 = vor.u32 %v5173_v5, %v5172_v19  ;;  %v5180_v12 = vld [vmem:[#allocation126_spill] sm:$0xff]  ;;  %v5184_v20 = vld [vmem:[#allocation128_spill] sm:$0xff]  ;;  %v5187_v19 = vld [vmem:[#allocation109_spill] sm:$0xff] }
 0x1e1   : >> { %v2391_v14 = vor.u32 %v5181_v16, %v5180_v12  ;;  %v2399_v11 = vor.u32 %v5185_v10, %v5184_v20  ;;  %v5195_v12 = vld [vmem:[#allocation91_spill] sm:$0xff]  ;;  %v5199_v20 = vld [vmem:[#allocation93_spill] sm:$0xff] }
 0x1e2   : >> { %1263 = vmatpush.bf16.msrb.mxu0 %v2435_v18  ;;  %v5186_v18 = vld [vmem:[#allocation99_spill] sm:$0xff] }
 0x1e3   : >> { %1288 = vmatpush.bf16.msrb.mxu2 %v2491_v33  ;;  %v5182_v33 = vld [vmem:[#allocation121_spill] sm:$0xff]  ;;  %v2339_v5 = vor.u32 %v5187_v19, %v5186_v18 }
 0x1e4   : >> { %1276 = vmatpush.bf16.msrb.mxu1 %v2439_v9  ;;  %1302 = vmatpush.bf16.msrb.mxu3 %v2447_v0  ;;  %v2395_v4 = vor.u32 %v5183_v8, %v5182_v33  ;;  %v5188_v9 = vld [vmem:[#allocation108_spill] sm:$0xff]  ;;  %v5192_v0 = vld [vmem:[#allocation110_spill] sm:$0xff]  ;;  %v5197_v33 = vld [vmem:[#allocation79_spill] sm:$0xff] }
 0x1e5   : >> { %v2343_v13 = vor.u32 %v5189_v29, %v5188_v9  ;;  %v2351_v1 = vor.u32 %v5193_v3, %v5192_v0  ;;  %v5201_v18 = vld [vmem:[#allocation81_spill] sm:$0xff]  ;;  %v5203_v9 = vld [vmem:[#allocation70_spill] sm:$0xff]  ;;  %v5207_v0 = vld [vmem:[#allocation72_spill] sm:$0xff] }
 0x1e6   : >> { %1264 = vmatpush.bf16.msrb.mxu0 %v2387_v52  ;;  %v5194_v52 = vld [vmem:[#allocation80_spill] sm:$0xff] }
 0x1e7   : >> { %1289 = vmatpush.bf16.msrb.mxu2 %v2443_v17  ;;  %v5190_v17 = vld [vmem:[#allocation101_spill] sm:$0xff]  ;;  %v2291_v16 = vor.u32 %v5195_v12, %v5194_v52 }
 0x1e8   : >> { %1277 = vmatpush.bf16.msrb.mxu1 %v2391_v14  ;;  %1303 = vmatpush.bf16.msrb.mxu3 %v2399_v11  ;;  %v2347_v6 = vor.u32 %v5191_v7, %v5190_v17  ;;  %v5196_v14 = vld [vmem:[#allocation90_spill] sm:$0xff]  ;;  %v5200_v11 = vld [vmem:[#allocation92_spill] sm:$0xff]  ;;  %v5205_v17 = vld [vmem:[#allocation59_spill] sm:$0xff] }
 0x1e9   : >> { %v2295_v8 = vor.u32 %v5197_v33, %v5196_v14  ;;  %v2303_v19 = vor.u32 %v5201_v18, %v5200_v11  ;;  %v5209_v52 = vld [vmem:[#allocation61_spill] sm:$0xff]  ;;  %v5211_v14 = vld [vmem:[#allocation51_spill] sm:$0xff] }
 0x1ea   : >> { %1265 = vmatpush.bf16.msrb.mxu0 %v2339_v5  ;;  %v5202_v5 = vld [vmem:[#allocation60_spill] sm:$0xff]  ;;  %v5215_v11 = vld [vmem:[#allocation53_spill] sm:$0xff] }
 0x1eb   : >> { %1290 = vmatpush.bf16.msrb.mxu2 %v2395_v4  ;;  %v5198_v4 = vld [vmem:[#allocation82_spill] sm:$0xff]  ;;  %v2243_v29 = vor.u32 %v5203_v9, %v5202_v5  ;;  %v5217_v5 = vld [vmem:[#allocation40_spill] sm:$0xff] }
 0x1ec   : >> { %1278 = vmatpush.bf16.msrb.mxu1 %v2343_v13  ;;  %1304 = vmatpush.bf16.msrb.mxu3 %v2351_v1  ;;  %v2299_v10 = vor.u32 %v5199_v20, %v5198_v4  ;;  %v5204_v13 = vld [vmem:[#allocation69_spill] sm:$0xff]  ;;  %v5208_v1 = vld [vmem:[#allocation71_spill] sm:$0xff]  ;;  %v5213_v4 = vld [vmem:[#allocation38_spill] sm:$0xff] }
 0x1ed   : >> { %v2247_v7 = vor.u32 %v5205_v17, %v5204_v13  ;;  %v2255_v12 = vor.u32 %v5209_v52, %v5208_v1 }
 0x1ee   : >> { %1266 = vmatpush.bf16.msrb.mxu0 %v2291_v16  ;;  %v5210_v16 = vld [vmem:[#allocation39_spill] sm:$0xff] }
 0x1ef   : >> { %1291 = vmatpush.bf16.msrb.mxu2 %v2347_v6  ;;  %v5206_v6 = vld [vmem:[#allocation62_spill] sm:$0xff]  ;;  %v2195_v33 = vor.u32 %v5211_v14, %v5210_v16 }
 0x1f0   : >> { %1279 = vmatpush.bf16.msrb.mxu1 %v2295_v8  ;;  %1305 = vmatpush.bf16.msrb.mxu3 %v2303_v19  ;;  %v2251_v3 = vor.u32 %v5207_v0, %v5206_v6  ;;  %v5212_v8 = vld [vmem:[#allocation50_spill] sm:$0xff]  ;;  %v5216_v19 = vld [vmem:[#allocation52_spill] sm:$0xff] }
 0x1f1   : >> { %v2199_v20 = vor.u32 %v5213_v4, %v5212_v8  ;;  %v2207_v9 = vor.u32 %v5217_v5, %v5216_v19  ;;  %v5221_v5 = vld [vmem:[#allocation190_spill] sm:$0xff] }
 0x1f2   : >> { %1267 = vmatpush.bf16.msrb.mxu0 %v2243_v29 }
 0x1f3   : >> { %1292 = vmatpush.bf16.msrb.mxu2 %v2299_v10  ;;  %v5214_v10 = vld [vmem:[#allocation41_spill] sm:$0xff] }
 0x1f4   : >> { %1280 = vmatpush.bf16.msrb.mxu1 %v2247_v7  ;;  %1306 = vmatpush.bf16.msrb.mxu3 %v2255_v12  ;;  %v2203_v18 = vor.u32 %v5215_v11, %v5214_v10  ;;  %v5218_v12 = vld [vmem:[#allocation22_spill] sm:$0xff]  ;;  %v5219_v11 = vld [vmem:[#allocation181_spill] sm:$0xff] }
 0x1f5   : >> { %v712_v16 = vperm.slane %v5218_v12, 0 }
 0x1f6   : >> { %1268 = vmatpush.bf16.msrb.mxu0 %v2195_v33  ;;  %v714_v33 = vperm.slane %v5218_v12, 1 }
 0x1f7   : >> { %1293 = vmatpush.bf16.msrb.mxu2 %v2251_v3 }
 0x1f8   : >> { %1281 = vmatpush.bf16.msrb.mxu1 %v2199_v20  ;;  %1307 = vmatpush.bf16.msrb.mxu3 %v2207_v9  ;;  %v5222_v9 = vld [vmem:[#allocation180_spill] sm:$0xff] }
 0x1fb   : >> { %1294 = vmatpush.bf16.msrb.mxu2 %v2203_v18  ;;  %v5220_v18 = vld [vmem:[#allocation191_spill] sm:$0xff] }
 0x1fc   : >> { %v2547_v19 = vor.u32 %v5220_v18, %v5219_v11  ;;  %v5233_v11 = vld [vmem:[#allocation171_spill] sm:$0xff]  ;;  %v5234_v18 = vld [vmem:[#allocation160_spill] sm:$0xff] }
 0x24f   : >> { %v698_v13 = vpop.xlane.xlu0 %697 }
 0x250   : >> { %v699_v17 = vmul.f32 0.03125, %v698_v13  ;;  %v2551_v13 = vor.u32 %v5222_v9, %v5221_v5  ;;  %v2511_v5 = vor.u32 %v5234_v18, %v5233_v11  ;;  %v5235_v9 = vld [vmem:[#allocation141_spill] sm:$0xff] }
 0x251   : >> { %v5247_v18 = vld [vmem:[#allocation125_spill] sm:$0xff] }
 0x252   : >> { %v700_v29 = vadd.f32 1e-12, %v699_v17  ;;  %v5223_v17 = vld [vmem:[#allocation183_spill] sm:$0xff] }
 0x254   : >> { %3023 = vrsqrt.f32 %v700_v29  ;;  %vm707_vm2 = vweird.f32 %v700_v29 }
 0x25a   : >> { %v3024_v7 = vpop.eup %3023 }
 0x25b   : >> { %v702_v6 = vmul.f32 %v3024_v7, %v700_v29  ;;  %vm708_vm1 = vweird.f32 %v3024_v7  ;;  %v5224_v29 = vld [vmem:[#allocation193_spill] sm:$0xff] }
 0x25c   : >> { %vm709_vm3 = vmor %vm707_vm2, %vm708_vm1 }
 0x25d   : >> { %v703_v0 = vmul.f32 %v3024_v7, %v702_v6  ;;  %v2555_v6 = vor.u32 %v5224_v29, %v5223_v17  ;;  %v5236_v17 = vld [vmem:[#allocation150_spill] sm:$0xff]  ;;  %v5238_v29 = vld [vmem:[#allocation140_spill] sm:$0xff] }
 0x25f   : >> { %v704_v3 = vmul.f32 0.5, %v703_v0  ;;  %v5225_v0 = vld [vmem:[#allocation192_spill] sm:$0xff] }
 0x261   : >> { %v705_v1 = vsub.f32 1.5, %v704_v3  ;;  %v5226_v3 = vld [vmem:[#allocation182_spill] sm:$0xff] }
 0x263   : >> { %v706_v52 = vmul.f32 %v3024_v7, %v705_v1  ;;  %v5228_v1 = vld [vmem:[#allocation170_spill] sm:$0xff] }
 0x265   : >> { %v710_v14 = vsel %vm709_vm3, %v3024_v7, %v706_v52  ;;  %v2559_v7 = vor.u32 %v5226_v3, %v5225_v0  ;;  %v5239_v3 = vld [vmem:[#allocation143_spill] sm:$0xff] }
 0x266   : >> { %v711_v8 = vmul.f32 %v710_v14, %v4502_v2  ;;  %v5227_v2 = vld [vmem:[#allocation159_spill] sm:$0xff]  ;;  %v5230_v14 = vld [vmem:[#allocation158_spill] sm:$0xff] }
 0x267   : >> { %v2499_v52 = vor.u32 %v5228_v1, %v5227_v2  ;;  %v5240_v2 = vld [vmem:[#allocation152_spill] sm:$0xff]  ;;  %v5242_v1 = vld [vmem:[#allocation142_spill] sm:$0xff] }
 0x268   : >> { %v713_v4 = vmul.f32 %v712_v16, %v711_v8  ;;  %v5229_v16 = vld [vmem:[#allocation169_spill] sm:$0xff] }
 0x269   : >> { %v5231_v8 = vld [vmem:[#allocation161_spill] sm:$0xff] }
 0x26a   : >> { %v715_v20 = vadd.f32 %v714_v33, %v713_v4  ;;  %v2503_v33 = vor.u32 %v5230_v14, %v5229_v16  ;;  %v5232_v4 = vld [vmem:[#allocation172_spill] sm:$0xff]  ;;  %v5243_v14 = vld [vmem:[#allocation123_spill] sm:$0xff] }
 0x26c   : >> { %v4584_v10 = vpack.c.bf16 %v715_v20, %v715_v20  ;;  %v2507_v20 = vor.u32 %v5232_v4, %v5231_v8  ;;  %v5244_v8 = vld [vmem:[#allocation131_spill] sm:$0xff]  ;;  %v5246_v4 = vld [vmem:[#allocation122_spill] sm:$0xff] }
 0x26e   : >> { %1217 = vmatmul.bf16.vlgmr.msra.gmra.mxu0 %v4584_v10  ;;  %1230 = vmatmul.bf16.vlgmr.msra.gmra.mxu1 %v4584_v10 }
 0x26f   : >> { %1243 = vmatmul.bf16.vlgmr.msra.gmra.mxu2 %v4584_v10  ;;  %1256 = vmatmul.bf16.vlgmr.msra.gmra.mxu3 %v4584_v10 }
 0x270   : >> { %1313 = vmatpush.bf16.msra.mxu0 %v2547_v19  ;;  %1326 = vmatpush.bf16.msra.mxu1 %v2551_v13  ;;  %v2451_v19 = vor.u32 %v5236_v17, %v5235_v9  ;;  %v5237_v13 = vld [vmem:[#allocation149_spill] sm:$0xff]  ;;  %v5250_v17 = vld [vmem:[#allocation124_spill] sm:$0xff] }
 0x271   : >> { %1339 = vmatpush.bf16.msra.mxu2 %v2555_v6  ;;  %1352 = vmatpush.bf16.msra.mxu3 %v2559_v7  ;;  %v2455_v0 = vor.u32 %v5238_v29, %v5237_v13  ;;  %v2459_v6 = vor.u32 %v5240_v2, %v5239_v3  ;;  %v5241_v7 = vld [vmem:[#allocation151_spill] sm:$0xff]  ;;  %v5248_v9 = vld [vmem:[#allocation133_spill] sm:$0xff]  ;;  %v5254_v2 = vld [vmem:[#allocation102_spill] sm:$0xff] }
 0x272   : >> { %v2463_v16 = vor.u32 %v5242_v1, %v5241_v7  ;;  %v5251_v29 = vld [vmem:[#allocation103_spill] sm:$0xff]  ;;  %v5252_v3 = vld [vmem:[#allocation113_spill] sm:$0xff] }
 0x273   : >> { %v5255_v1 = vld [vmem:[#allocation105_spill] sm:$0xff] }
 0x274   : >> { %1314 = vmatpush.bf16.msra.mxu0 %v2499_v52  ;;  %1327 = vmatpush.bf16.msra.mxu1 %v2503_v33  ;;  %v2403_v52 = vor.u32 %v5244_v8, %v5243_v14  ;;  %v5245_v33 = vld [vmem:[#allocation130_spill] sm:$0xff]  ;;  %v5256_v14 = vld [vmem:[#allocation115_spill] sm:$0xff]  ;;  %v5258_v8 = vld [vmem:[#allocation104_spill] sm:$0xff] }
 0x275   : >> { %1340 = vmatpush.bf16.msra.mxu2 %v2507_v20  ;;  %1353 = vmatpush.bf16.msra.mxu3 %v2511_v5  ;;  %v2407_v11 = vor.u32 %v5246_v4, %v5245_v33  ;;  %v2411_v20 = vor.u32 %v5248_v9, %v5247_v18  ;;  %v5249_v5 = vld [vmem:[#allocation132_spill] sm:$0xff]  ;;  %v5260_v4 = vld [vmem:[#allocation95_spill] sm:$0xff]  ;;  %v5261_v18 = vld [vmem:[#allocation94_spill] sm:$0xff] }
 0x276   : >> { %v2415_v13 = vor.u32 %v5250_v17, %v5249_v5  ;;  %v5262_v9 = vld [vmem:[#allocation83_spill] sm:$0xff]  ;;  %v5263_v5 = vld [vmem:[#allocation86_spill] sm:$0xff]  ;;  %v5264_v17 = vld [vmem:[#allocation97_spill] sm:$0xff] }
 0x278   : >> { %1315 = vmatpush.bf16.msra.mxu0 %v2451_v19  ;;  %1328 = vmatpush.bf16.msra.mxu1 %v2455_v0  ;;  %v2355_v19 = vor.u32 %v5252_v3, %v5251_v29  ;;  %v5253_v0 = vld [vmem:[#allocation112_spill] sm:$0xff]  ;;  %v5266_v3 = vld [vmem:[#allocation85_spill] sm:$0xff] }
 0x279   : >> { %1341 = vmatpush.bf16.msra.mxu2 %v2459_v6  ;;  %1354 = vmatpush.bf16.msra.mxu3 %v2463_v16  ;;  %v2359_v7 = vor.u32 %v5254_v2, %v5253_v0  ;;  %v2363_v6 = vor.u32 %v5256_v14, %v5255_v1  ;;  %v5257_v16 = vld [vmem:[#allocation114_spill] sm:$0xff]  ;;  %v5265_v29 = vld [vmem:[#allocation96_spill] sm:$0xff]  ;;  %v5270_v14 = vld [vmem:[#allocation63_spill] sm:$0xff] }
 0x27a   : >> { %v2367_v33 = vor.u32 %v5258_v8, %v5257_v16  ;;  %v2319_v0 = vor.u32 %v5266_v3, %v5265_v29  ;;  %v5267_v2 = vld [vmem:[#allocation64_spill] sm:$0xff]  ;;  %v5268_v1 = vld [vmem:[#allocation74_spill] sm:$0xff]  ;;  %v5279_v3 = vld [vmem:[#allocation45_spill] sm:$0xff] }
 0x27b   : >> { %v5271_v8 = vld [vmem:[#allocation66_spill] sm:$0xff] }
 0x27c   : >> { %1316 = vmatpush.bf16.msra.mxu0 %v2403_v52  ;;  %1329 = vmatpush.bf16.msra.mxu1 %v2407_v11  ;;  %v5259_v52 = vld [vmem:[#allocation84_spill] sm:$0xff] }
 0x27d   : >> { %1342 = vmatpush.bf16.msra.mxu2 %v2411_v20  ;;  %1355 = vmatpush.bf16.msra.mxu3 %v2415_v13  ;;  %v2307_v11 = vor.u32 %v5260_v4, %v5259_v52  ;;  %v2311_v20 = vor.u32 %v5262_v9, %v5261_v18  ;;  %v2315_v13 = vor.u32 %v5264_v17, %v5263_v5  ;;  %v5272_v52 = vld [vmem:[#allocation76_spill] sm:$0xff]  ;;  %v5274_v4 = vld [vmem:[#allocation65_spill] sm:$0xff]  ;;  %v5275_v9 = vld [vmem:[#allocation43_spill] sm:$0xff] }
 0x27e   : >> { %1269 = vmatmul.bf16.vlgmr.msrb.gmra.mxu0 %v4584_v10  ;;  %1282 = vmatmul.bf16.vlgmr.msrb.gmra.mxu1 %v4584_v10  ;;  %v5276_v5 = vld [vmem:[#allocation55_spill] sm:$0xff]  ;;  %v5278_v17 = vld [vmem:[#allocation42_spill] sm:$0xff] }
 0x27f   : >> { %1295 = vmatmul.bf16.vlgmr.msrb.gmra.mxu2 %v4584_v10  ;;  %1308 = vmatmul.bf16.vlgmr.msrb.gmra.mxu3 %v4584_v10 }
 0x280   : >> { %1317 = vmatpush.bf16.msra.mxu0 %v2355_v19  ;;  %1330 = vmatpush.bf16.msra.mxu1 %v2359_v7  ;;  %v2259_v19 = vor.u32 %v5268_v1, %v5267_v2  ;;  %v5269_v7 = vld [vmem:[#allocation73_spill] sm:$0xff]  ;;  %v5282_v1 = vld [vmem:[#allocation44_spill] sm:$0xff] }
 0x281   : >> { %1343 = vmatpush.bf16.msra.mxu2 %v2363_v6  ;;  %1356 = vmatpush.bf16.msra.mxu3 %v2367_v33  ;;  %v2263_v16 = vor.u32 %v5270_v14, %v5269_v7  ;;  %v2267_v6 = vor.u32 %v5272_v52, %v5271_v8  ;;  %v5273_v33 = vld [vmem:[#allocation75_spill] sm:$0xff]  ;;  %v5280_v2 = vld [vmem:[#allocation57_spill] sm:$0xff] }
 0x282   : >> { %v2271_v18 = vor.u32 %v5274_v4, %v5273_v33  ;;  %v5283_v33 = vld [vmem:[#allocation26_spill] sm:$0xff] }
 0x283   : >> { %v721_v4 = vperm.slane %v5283_v33, 2 }
 0x284   : >> { %1318 = vmatpush.bf16.msra.mxu0 %v2307_v11  ;;  %1331 = vmatpush.bf16.msra.mxu1 %v2311_v20  ;;  %v2211_v11 = vor.u32 %v5276_v5, %v5275_v9  ;;  %v5277_v20 = vld [vmem:[#allocation54_spill] sm:$0xff] }
 0x285   : >> { %1344 = vmatpush.bf16.msra.mxu2 %v2315_v13  ;;  %1357 = vmatpush.bf16.msra.mxu3 %v2319_v0  ;;  %v2215_v29 = vor.u32 %v5278_v17, %v5277_v20  ;;  %v2219_v13 = vor.u32 %v5280_v2, %v5279_v3  ;;  %v5281_v0 = vld [vmem:[#allocation56_spill] sm:$0xff]  ;;  %v717_v2 = vperm.slane %v5218_v12, 2 }
 0x286   : >> { %v2223_v7 = vor.u32 %v5282_v1, %v5281_v0  ;;  %v5285_v0 = vld [vmem:[#allocation28_spill] sm:$0xff] }
 0x287   : >> { %v723_v1 = vperm.slane %v5285_v0, 2 }
 0x288   : >> { %1319 = vmatpush.bf16.msra.mxu0 %v2259_v19  ;;  %1332 = vmatpush.bf16.msra.mxu1 %v2263_v16 }
 0x289   : >> { %1345 = vmatpush.bf16.msra.mxu2 %v2267_v6  ;;  %1358 = vmatpush.bf16.msra.mxu3 %v2271_v18  ;;  %v5284_v18 = vld [vmem:[#allocation27_spill] sm:$0xff] }
 0x28a   : >> { %v722_v9 = vperm.slane %v5284_v18, 2 }
 0x28c   : >> { %1320 = vmatpush.bf16.msra.mxu0 %v2211_v11  ;;  %1333 = vmatpush.bf16.msra.mxu1 %v2215_v29 }
 0x28d   : >> { %1346 = vmatpush.bf16.msra.mxu2 %v2219_v13  ;;  %1359 = vmatpush.bf16.msra.mxu3 %v2223_v7  ;;  %v5286_v7 = vld [vmem:[#allocation29_spill] sm:$0xff] }
 0x28e   : >> { %v724_v21 = vperm.slane %v5286_v7, 2 }
 0x28f   : >> { %1321 = vmatmul.bf16.vlgmr.msra.gmra.mxu0 %v4584_v10  ;;  %1334 = vmatmul.bf16.vlgmr.msra.gmra.mxu1 %v4584_v10 }
 0x290   : >> { %1347 = vmatmul.bf16.vlgmr.msra.gmra.mxu2 %v4584_v10  ;;  %1360 = vmatmul.bf16.vlgmr.msra.gmra.mxu3 %v4584_v10 }
 0x2eb   : >> { %v1218_v19 = vpop.f32.mrf.mxu0  ;;  %v1231_v14 = vpop.f32.mrf.mxu1 }
 0x2f2   : >> { %v1244_v16 = vpop.f32.mrf.mxu2  ;;  %v4662_v8 = vpop.f32.mrf.mxu3 }
 0x2f3   : >> { %v1220_v52 = vpop.f32.mrf.mxu0  ;;  %v1233_v6 = vpop.f32.mrf.mxu1 }
 0x2f4   : >> { %v1219_v52 = vadd.f32 %v1218_v19, %v717_v2 }
 0x2fa   : >> { %v1246_v5 = vpop.f32.mrf.mxu2  ;;  %v1259_v11 = vpop.f32.mrf.mxu3 }
 0x2fb   : >> { %v1270_v20 = vpop.f32.mrf.mxu0  ;;  %v1283_v17 = vpop.f32.mrf.mxu1 }
 0x2fc   : >> { %v1271_v29 = vadd.f32 %v1270_v20, %v721_v4  ;;  %v1284_v3 = vadd.f32 %v1283_v17, %v722_v9  ;;  %v719_v4 = vperm.slane %v5287_v23, 2  ;;  %v1365_v9 = vpack.c.bf16 %v1219_v52, %v1219_v52 }
 0x2fe   : >> { %v1366_v10 = vpack.c.bf16 %v1271_v29, %v1271_v29  ;;  %v1416_v13 = vpack.c.bf16 %v1284_v3, %v1284_v3  ;;  %v1245_v29 = vadd.f32 %v1244_v16, %v719_v4  ;;  %v5288_v3 = vld [vmem:[#allocation30_spill] sm:$0xff] }
 0x2ff   : >> { %v725_v0 = vperm.slane %v5288_v3, 2 }
 0x300   : >> { %1375 = vmatpush.bf16.xpose.msrb.mxu2 %v1366_v10  ;;  %v5289_v10 = vld [vmem:[#allocation31_spill] sm:$0xff]  ;;  %v1463_v7 = vpack.c.bf16 %v1245_v29, %v1245_v29 }
 0x301   : >> { %v726_v19 = vperm.slane %v5289_v10, 2 }
 0x302   : >> { %v1296_v6 = vpop.f32.mrf.mxu2  ;;  %v1309_v33 = vpop.f32.mrf.mxu3 }
 0x303   : >> { %v1297_v18 = vadd.f32 %v1296_v6, %v723_v1  ;;  %v1310_v5 = vadd.f32 %v1309_v33, %v724_v21  ;;  %v1272_v11 = vpop.f32.mrf.mxu0  ;;  %v1285_v22 = vpop.f32.mrf.mxu1  ;;  %v5290_v6 = vld [vmem:[#allocation23_spill] sm:$0xff] }
 0x304   : >> { %v718_v22 = vperm.slane %v5290_v6, 2  ;;  %v5292_v11 = vld [vmem:[#allocation33_spill] sm:$0xff] }
 0x305   : >> { %v1464_v20 = vpack.c.bf16 %v1297_v18, %v1297_v18  ;;  %v1512_v17 = vpack.c.bf16 %v1310_v5, %v1310_v5  ;;  %v5291_v5 = vld [vmem:[#allocation32_spill] sm:$0xff]  ;;  %v728_v4 = vperm.slane %v5292_v11, 2 }
 0x306   : >> { %v727_v16 = vperm.slane %v5291_v5, 2 }
 0x307   : >> { %1473 = vmatpush.bf16.xpose.msrb.mxu0 %v1464_v20  ;;  %1376 = vmatmul.bf16.vlgmr.msrb.gmra.mxu2 %v1365_v9  ;;  %v1232_v9 = vadd.f32 %v1231_v14, %v718_v22 }
 0x308   : >> { %1425 = vmatpush.bf16.xpose.msra.mxu2 %v1416_v13 }
 0x30a   : >> { %v1298_v2 = vpop.f32.mrf.mxu2  ;;  %v1311_v13 = vpop.f32.mrf.mxu3 }
 0x30b   : >> { %v1415_v13 = vpack.c.bf16 %v1232_v9, %v1232_v9 }
 0x30c   : >> { %v1322_v1 = vpop.f32.mrf.mxu0  ;;  %v1335_v21 = vpop.f32.mrf.mxu1 }
 0x30d   : >> { %v1323_v33 = vadd.f32 %v1322_v1, %v725_v0  ;;  %v1336_v23 = vadd.f32 %v1335_v21, %v726_v19 }
 0x30e   : >> { %1474 = vmatmul.bf16.vlgmr.msrb.gmra.mxu0 %v1463_v7 }
 0x30f   : >> { %v1367_v52 = vpack.c.bf16 %v1323_v33, %v1323_v33  ;;  %v1417_v18 = vpack.c.bf16 %v1336_v23, %v1336_v23  ;;  %v5293_v33 = vld [vmem:[#allocation25_spill] sm:$0xff] }
 0x310   : >> { %1521 = vmatpush.bf16.xpose.msrb.mxu2 %v1512_v17  ;;  %v720_v23 = vperm.slane %v5293_v33, 2 }
 0x311   : >> { %v1400_v20 = vsel %vm1398_vm4, %v1367_v52, 0  ;;  %v1448_v17 = vsel %vm1398_vm4, %v1417_v18, 0 }
 0x312   : >> { %1409 = vmatpush.bf16.msrb.mxu3 %v1400_v20  ;;  %v1258_v52 = vadd.f32 %v4662_v8, %v720_v23 }
 0x313   : >> { %v1348_v29 = vpop.f32.mrf.mxu2  ;;  %v1361_v3 = vpop.f32.mrf.mxu3 }
 0x314   : >> { %v1349_v10 = vadd.f32 %v1348_v29, %v727_v16  ;;  %v1362_v0 = vadd.f32 %v1361_v3, %v728_v4  ;;  %v1324_v19 = vpop.f32.mrf.mxu0  ;;  %v1337_v2 = vpop.f32.mrf.mxu1  ;;  %v1511_v18 = vpack.c.bf16 %v1258_v52, %v1258_v52 }
 0x316   : >> { %1457 = vmatpush.bf16.msra.mxu3 %v1448_v17  ;;  %v1465_v7 = vpack.c.bf16 %v1349_v10, %v1349_v10  ;;  %v1513_v1 = vpack.c.bf16 %v1362_v0, %v1362_v0 }
 0x317   : >> { %1426 = vmatmul.bf16.vlgmr.msra.gmra.mxu2 %v1415_v13 }
 0x318   : >> { %v1496_v21 = vsel %vm1398_vm4, %v1465_v7, 0  ;;  %v4679_v14 = vsel %vm1398_vm4, %v1513_v1, 0 }
 0x319   : >> { %1505 = vmatpush.bf16.msrb.mxu1 %v1496_v21 }
 0x31b   : >> { %v1350_v6 = vpop.f32.mrf.mxu2  ;;  %v1363_v22 = vpop.f32.mrf.mxu3 }
 0x327   : >> { %1522 = vmatmul.bf16.vlgmr.msrb.gmra.mxu2 %v1511_v18 }
 0x38a   : >> { %v1377_v5 = vpop.f32.mrf.mxu2 }
 0x38b   : >> { %v1381_v16 = vmul.f32 0.35355338, %v1377_v5  ;;  %v1475_v11 = vpop.f32.mrf.mxu0 }
 0x38c   : >> { %v1479_v2 = vmul.f32 0.35355338, %v1475_v11 }
 0x38d   : >> { %v1383_v4 = vsel %vm1382_vm5, %v1381_v16, -inf }
 0x38e   : >> { %1384 = vmax.xlane.f32.xlu1 %v1383_v4  ;;  %v1480_v7 = vsel %vm1382_vm5, %v1479_v2, -inf }
 0x392   : >> { %v1379_v9 = vpop.f32.mrf.mxu2 }
 0x393   : >> { %v1477_v20 = vpop.f32.mrf.mxu0 }
 0x39a   : >> { %v1427_v17 = vpop.f32.mrf.mxu2 }
 0x39b   : >> { %v1431_v29 = vmul.f32 0.35355338, %v1427_v17 }
 0x39d   : >> { %v1432_v3 = vsel %vm1382_vm5, %v1431_v29, -inf }
 0x39e   : >> { %1433 = vmax.xlane.f32.xlu1 %v1432_v3 }
 0x3a2   : >> { %v1429_v10 = vpop.f32.mrf.mxu2 }
 0x3aa   : >> { %v1523_v0 = vpop.f32.mrf.mxu2 }
 0x3ab   : >> { %v1527_v19 = vmul.f32 0.35355338, %v1523_v0 }
 0x3ad   : >> { %v1528_v8 = vsel %vm1382_vm5, %v1527_v19, -inf }
 0x3ae   : >> { %1529 = vmax.xlane.f32.xlu2 %v1528_v8 }
 0x3b2   : >> { %v1525_v13 = vpop.f32.mrf.mxu2 }
 0x3b6   : >> { %1481 = vmax.xlane.f32.xlu2 %v1480_v7 }
 0x401   : >> { %v1385_v1 = vpop.xlane.xlu1 %1384 }
 0x402   : >> { %v1386_v21 = vsub.f32 %v1381_v16, %v1385_v1 }
 0x404   : >> { %v1387_v6 = vmul.f32 1.442695, %v1386_v21 }
 0x406   : >> { %3025 = vpow2.f32 %v1387_v6  ;;  %v5295_v6 = vld [vmem:[#allocation209_spill] sm:$0xff] }
 0x40c   : >> { %v3026_v22 = vpop.eup %3025 }
 0x40d   : >> { %v1389_v33 = vsel %vm1382_vm5, %v3026_v22, 0.0 }
 0x40e   : >> { %1390 = vadd.xlane.f32.xlu0 %v1389_v33 }
 0x411   : >> { %v1434_v23 = vpop.xlane.xlu1 %1433 }
 0x412   : >> { %v1435_v52 = vsub.f32 %v1431_v29, %v1434_v23  ;;  %v5296_v23 = vld [vmem:[#allocation224_spill] sm:$0xff] }
 0x414   : >> { %v1436_v18 = vmul.f32 1.442695, %v1435_v52  ;;  %v5297_v52 = vld [vmem:[#allocation225_spill] sm:$0xff] }
 0x416   : >> { %3027 = vpow2.f32 %v1436_v18  ;;  %v2627_v18 = vor.u32 %v5297_v52, %v5296_v23  ;;  %v5309_v23 = vld [vmem:[#allocation201_spill] sm:$0xff] }
 0x418   : >> { %1769 = vmatpush.bf16.msra.mxu1 %v2627_v18  ;;  %v5310_v18 = vld [vmem:[#allocation198_spill] sm:$0xff] }
 0x41c   : >> { %v3028_v5 = vpop.eup %3027 }
 0x41d   : >> { %v1438_v4 = vsel %vm1382_vm5, %v3028_v5, 0.0 }
 0x41e   : >> { %1439 = vadd.xlane.f32.xlu1 %v1438_v4  ;;  %v5298_v4 = vld [vmem:[#allocation206_spill] sm:$0xff] }
 0x421   : >> { %v1530_v11 = vpop.xlane.xlu2 %1529 }
 0x422   : >> { %v1531_v9 = vsub.f32 %v1527_v19, %v1530_v11  ;;  %v5299_v11 = vld [vmem:[#allocation207_spill] sm:$0xff] }
 0x424   : >> { %v1532_v20 = vmul.f32 1.442695, %v1531_v9  ;;  %v2591_v9 = vor.u32 %v5299_v11, %v5298_v4  ;;  %v5311_v4 = vld [vmem:[#allocation199_spill] sm:$0xff] }
 0x425   : >> { %v2575_v11 = vor.u32 %v5311_v4, %v5310_v18  ;;  %v5322_v4 = vld [vmem:[#allocation240_spill] sm:$0xff] }
 0x426   : >> { %3029 = vpow2.f32 %v1532_v20 }
 0x429   : >> { %v1482_v17 = vpop.xlane.xlu2 %1481 }
 0x42a   : >> { %v1483_v16 = vsub.f32 %v1479_v2, %v1482_v17  ;;  %v5294_v2 = vld [vmem:[#allocation208_spill] sm:$0xff]  ;;  %v5301_v17 = vld [vmem:[#allocation223_spill] sm:$0xff] }
 0x42b   : >> { %v2595_v33 = vor.u32 %v5295_v6, %v5294_v2  ;;  %v5307_v2 = vld [vmem:[#allocation203_spill] sm:$0xff] }
 0x42c   : >> { %v3030_v3 = vpop.eup %3029  ;;  %v1484_v10 = vmul.f32 1.442695, %v1483_v16 }
 0x42d   : >> { %v1534_v0 = vsel %vm1382_vm5, %v3030_v3, 0.0  ;;  %1756 = vmatpush.bf16.msra.mxu0 %v2595_v33 }
 0x42e   : >> { %3031 = vpow2.f32 %v1484_v10  ;;  %1535 = vadd.xlane.f32.xlu2 %v1534_v0 }
 0x431   : >> { %1757 = vmatpush.bf16.msra.mxu0 %v2591_v9 }
 0x434   : >> { %v3032_v8 = vpop.eup %3031 }
 0x435   : >> { %v1486_v29 = vsel %vm1382_vm5, %v3032_v8, 0.0 }
 0x436   : >> { %1487 = vadd.xlane.f32.xlu0 %v1486_v29  ;;  %v5303_v29 = vld [vmem:[#allocation205_spill] sm:$0xff] }
 0x481   : >> { %v1391_v13 = vpop.xlane.xlu0 %1390 }
 0x482   : >> { %3033 = vrcp.f32 %v1391_v13 }
 0x488   : >> { %v3034_v7 = vpop.eup %3033 }
 0x489   : >> { %v1393_v1 = vmul.f32 %v3034_v7, %v3026_v22  ;;  %v5300_v22 = vld [vmem:[#allocation222_spill] sm:$0xff]  ;;  %v5304_v7 = vld [vmem:[#allocation220_spill] sm:$0xff] }
 0x48a   : >> { %v2623_v16 = vor.u32 %v5301_v17, %v5300_v22 }
 0x48b   : >> { %v1394_v21 = vpack.c.bf16 %v1393_v1, %v1393_v1  ;;  %v5305_v1 = vld [vmem:[#allocation221_spill] sm:$0xff] }
 0x48c   : >> { %1770 = vmatpush.bf16.msra.mxu1 %v2623_v16  ;;  %v5312_v16 = vld [vmem:[#allocation196_spill] sm:$0xff] }
 0x48d   : >> { %2560 = vmatmul.msk.bf16.vlgmr.msrb.gmra.mxu3 %vm1382_vm5, %v1394_v21  ;;  %v2619_v21 = vor.u32 %v5305_v1, %v5304_v7  ;;  %v5314_v7 = vld [vmem:[#allocation194_spill] sm:$0xff]  ;;  %v5315_v1 = vld [vmem:[#allocation195_spill] sm:$0xff] }
 0x48e   : >> { %1553 = vmatpush.bf16.msrb.mxu3 %v4679_v14  ;;  %v5302_v14 = vld [vmem:[#allocation204_spill] sm:$0xff] }
 0x48f   : >> { %v2587_v13 = vor.u32 %v5303_v29, %v5302_v14 }
 0x490   : >> { %1771 = vmatpush.bf16.msra.mxu1 %v2619_v21  ;;  %v2567_v21 = vor.u32 %v5315_v1, %v5314_v7  ;;  %v5331_v7 = vld [vmem:[#allocation213_spill] sm:$0xff] }
 0x491   : >> { %v1440_v19 = vpop.xlane.xlu1 %1439  ;;  %1758 = vmatpush.bf16.msra.mxu0 %v2587_v13 }
 0x492   : >> { %3035 = vrcp.f32 %v1440_v19  ;;  %v5306_v19 = vld [vmem:[#allocation202_spill] sm:$0xff] }
 0x493   : >> { %v2583_v6 = vor.u32 %v5307_v2, %v5306_v19  ;;  %v5316_v19 = vld [vmem:[#allocation218_spill] sm:$0xff] }
 0x495   : >> { %1759 = vmatpush.bf16.msra.mxu0 %v2583_v6  ;;  %v5318_v6 = vld [vmem:[#allocation216_spill] sm:$0xff] }
 0x498   : >> { %v3036_v20 = vpop.eup %3035 }
 0x499   : >> { %v1442_v10 = vmul.f32 %v3036_v20, %v3028_v5  ;;  %v5308_v5 = vld [vmem:[#allocation200_spill] sm:$0xff] }
 0x49a   : >> { %v2579_v52 = vor.u32 %v5309_v23, %v5308_v5  ;;  %v5320_v23 = vld [vmem:[#allocation256_spill] sm:$0xff] }
 0x49b   : >> { %v1443_v0 = vpack.c.bf16 %v1442_v10, %v1442_v10  ;;  %v5313_v10 = vld [vmem:[#allocation197_spill] sm:$0xff] }
 0x49c   : >> { %1760 = vmatpush.bf16.msra.mxu0 %v2579_v52  ;;  %v5321_v52 = vld [vmem:[#allocation257_spill] sm:$0xff] }
 0x49d   : >> { %2561 = vmatmul.msk.bf16.vlgmr.msra.gmra.mxu3 %vm1382_vm5, %v1443_v0  ;;  %v2571_v0 = vor.u32 %v5313_v10, %v5312_v16  ;;  %v2691_v18 = vor.u32 %v5321_v52, %v5320_v23  ;;  %v5327_v16 = vld [vmem:[#allocation255_spill] sm:$0xff] }
 0x49e   : >> { %v5337_v23 = vld [vmem:[#allocation211_spill] sm:$0xff] }
 0x49f   : >> { %1795 = vmatpush.bf16.msra.mxu3 %v2691_v18  ;;  %v5338_v18 = vld [vmem:[#allocation250_spill] sm:$0xff] }
 0x4a0   : >> { %1761 = vmatpush.bf16.msra.mxu0 %v2575_v11  ;;  %v5323_v11 = vld [vmem:[#allocation241_spill] sm:$0xff] }
 0x4a1   : >> { %v1536_v33 = vpop.xlane.xlu2 %1535 }
 0x4a2   : >> { %3037 = vrcp.f32 %v1536_v33  ;;  %v5319_v33 = vld [vmem:[#allocation217_spill] sm:$0xff] }
 0x4a3   : >> { %v2611_v5 = vor.u32 %v5319_v33, %v5318_v6  ;;  %v5335_v6 = vld [vmem:[#allocation237_spill] sm:$0xff] }
 0x4a4   : >> { %1762 = vmatpush.bf16.msra.mxu0 %v2571_v0  ;;  %v5328_v0 = vld [vmem:[#allocation238_spill] sm:$0xff] }
 0x4a8   : >> { %v3038_v9 = vpop.eup %3037  ;;  %1763 = vmatpush.bf16.msra.mxu0 %v2567_v21  ;;  %v5332_v21 = vld [vmem:[#allocation252_spill] sm:$0xff] }
 0x4a9   : >> { %v1538_v20 = vmul.f32 %v3038_v9, %v3030_v3  ;;  %v1488_v22 = vpop.xlane.xlu0 %1487  ;;  %v5317_v3 = vld [vmem:[#allocation219_spill] sm:$0xff]  ;;  %v5324_v9 = vld [vmem:[#allocation214_spill] sm:$0xff] }
 0x4aa   : >> { %3039 = vrcp.f32 %v1488_v22  ;;  %v2615_v2 = vor.u32 %v5317_v3, %v5316_v19  ;;  %v5333_v19 = vld [vmem:[#allocation253_spill] sm:$0xff] }
 0x4ab   : >> { %v1539_v17 = vpack.c.bf16 %v1538_v20, %v1538_v20  ;;  %v5325_v20 = vld [vmem:[#allocation215_spill] sm:$0xff]  ;;  %v2683_v3 = vor.u32 %v5333_v19, %v5332_v21 }
 0x4ac   : >> { %1772 = vmatpush.bf16.msra.mxu1 %v2615_v2  ;;  %v2607_v22 = vor.u32 %v5325_v20, %v5324_v9  ;;  %v5334_v2 = vld [vmem:[#allocation236_spill] sm:$0xff]  ;;  %v5341_v9 = vld [vmem:[#allocation235_spill] sm:$0xff] }
 0x4ad   : >> { %2563 = vmatmul.msk.bf16.vlgmr.msrb.gmra.mxu3 %vm1382_vm5, %v1539_v17  ;;  %v5326_v17 = vld [vmem:[#allocation254_spill] sm:$0xff]  ;;  %v2651_v33 = vor.u32 %v5335_v6, %v5334_v2  ;;  %v5349_v21 = vld [vmem:[#allocation231_spill] sm:$0xff]  ;;  %v5351_v2 = vld [vmem:[#allocation245_spill] sm:$0xff] }
 0x4ae   : >> { %v2687_v10 = vor.u32 %v5327_v16, %v5326_v17  ;;  %v5343_v17 = vld [vmem:[#allocation249_spill] sm:$0xff] }
 0x4b0   : >> { %v3040_v14 = vpop.eup %3039  ;;  %1773 = vmatpush.bf16.msra.mxu1 %v2611_v5  ;;  %1796 = vmatpush.bf16.msra.mxu3 %v2687_v10  ;;  %v5336_v5 = vld [vmem:[#allocation210_spill] sm:$0xff]  ;;  %v5344_v10 = vld [vmem:[#allocation232_spill] sm:$0xff] }
 0x4b1   : >> { %v1490_v29 = vmul.f32 %v3040_v14, %v3032_v8  ;;  %v2659_v8 = vor.u32 %v5323_v11, %v5322_v4  ;;  %v5329_v14 = vld [vmem:[#allocation239_spill] sm:$0xff]  ;;  %v2599_v52 = vor.u32 %v5337_v23, %v5336_v5  ;;  %v5353_v5 = vld [vmem:[#allocation229_spill] sm:$0xff] }
 0x4b2   : >> { %v5339_v4 = vld [vmem:[#allocation251_spill] sm:$0xff] }
 0x4b3   : >> { %v1491_v13 = vpack.c.bf16 %v1490_v29, %v1490_v29  ;;  %1782 = vmatpush.bf16.msra.mxu2 %v2659_v8  ;;  %v2655_v29 = vor.u32 %v5329_v14, %v5328_v0  ;;  %v2679_v11 = vor.u32 %v5339_v4, %v5338_v18  ;;  %v5340_v8 = vld [vmem:[#allocation234_spill] sm:$0xff]  ;;  %v5345_v0 = vld [vmem:[#allocation233_spill] sm:$0xff]  ;;  %v5355_v4 = vld [vmem:[#allocation243_spill] sm:$0xff] }
 0x4b4   : >> { %1774 = vmatpush.bf16.msra.mxu1 %v2607_v22  ;;  %1797 = vmatpush.bf16.msra.mxu3 %v2683_v3  ;;  %v2647_v20 = vor.u32 %v5341_v9, %v5340_v8  ;;  %v5342_v22 = vld [vmem:[#allocation248_spill] sm:$0xff]  ;;  %v2643_v14 = vor.u32 %v5345_v0, %v5344_v10  ;;  %v5354_v18 = vld [vmem:[#allocation242_spill] sm:$0xff] }
 0x4b5   : >> { %2562 = vmatmul.msk.bf16.vlgmr.msrb.gmra.mxu1 %vm1382_vm5, %v1491_v13  ;;  %v5330_v13 = vld [vmem:[#allocation212_spill] sm:$0xff]  ;;  %v2675_v16 = vor.u32 %v5343_v17, %v5342_v22  ;;  %v5356_v9 = vld [vmem:[#allocation226_spill] sm:$0xff] }
 0x4b6   : >> { %v2603_v1 = vor.u32 %v5331_v7, %v5330_v13  ;;  %v5347_v13 = vld [vmem:[#allocation247_spill] sm:$0xff]  ;;  %v5350_v3 = vld [vmem:[#allocation244_spill] sm:$0xff] }
 0x4b7   : >> { %1783 = vmatpush.bf16.msra.mxu2 %v2655_v29  ;;  %v5346_v29 = vld [vmem:[#allocation246_spill] sm:$0xff]  ;;  %v2667_v6 = vor.u32 %v5351_v2, %v5350_v3 }
 0x4b8   : >> { %1775 = vmatpush.bf16.msra.mxu1 %v2603_v1  ;;  %1798 = vmatpush.bf16.msra.mxu3 %v2679_v11  ;;  %v2671_v7 = vor.u32 %v5347_v13, %v5346_v29  ;;  %v5348_v1 = vld [vmem:[#allocation230_spill] sm:$0xff]  ;;  %v2663_v11 = vor.u32 %v5355_v4, %v5354_v18 }
 0x4b9   : >> { %v2639_v19 = vor.u32 %v5349_v21, %v5348_v1 }
 0x4bb   : >> { %1784 = vmatpush.bf16.msra.mxu2 %v2651_v33  ;;  %v5352_v33 = vld [vmem:[#allocation228_spill] sm:$0xff] }
 0x4bc   : >> { %1776 = vmatpush.bf16.msra.mxu1 %v2599_v52  ;;  %1799 = vmatpush.bf16.msra.mxu3 %v2675_v16  ;;  %v2635_v23 = vor.u32 %v5353_v5, %v5352_v33  ;;  %v1563_v33 = vperm.slane %v5218_v12, 3 }
 0x4bf   : >> { %1785 = vmatpush.bf16.msra.mxu2 %v2647_v20  ;;  %v5357_v20 = vld [vmem:[#allocation227_spill] sm:$0xff] }
 0x4c0   : >> { %1800 = vmatpush.bf16.msra.mxu3 %v2671_v7  ;;  %v2631_v22 = vor.u32 %v5357_v20, %v5356_v9 }
 0x4c3   : >> { %1786 = vmatpush.bf16.msra.mxu2 %v2643_v14 }
 0x4c4   : >> { %1801 = vmatpush.bf16.msra.mxu3 %v2667_v6 }
 0x4c7   : >> { %1787 = vmatpush.bf16.msra.mxu2 %v2639_v19 }
 0x4c8   : >> { %1802 = vmatpush.bf16.msra.mxu3 %v2663_v11 }
 0x4cb   : >> { %1788 = vmatpush.bf16.msra.mxu2 %v2635_v23 }
 0x4cf   : >> { %1789 = vmatpush.bf16.msra.mxu2 %v2631_v22  ;;  %v5358_v22 = vld [vmem:[#allocation272_spill] sm:$0xff] }
 0x510   : >> { %v1411_v52 = vpop.f32.mrf.mxu3 }
 0x511   : >> { %v1559_v8 = vpack.c.bf16 %v1411_v52, %v1411_v52 }
 0x513   : >> { %1764 = vmatmul.bf16.vlgmr.msra.gmra.mxu0 %v1559_v8 }
 0x518   : >> { %v1413_v17 = vpop.f32.mrf.mxu3 }
 0x519   : >> { %v5359_v17 = vld [vmem:[#allocation273_spill] sm:$0xff] }
 0x520   : >> { %v1459_v16 = vpop.f32.mrf.mxu3 }
 0x521   : >> { %v1560_v10 = vpack.c.bf16 %v1459_v16, %v1459_v16  ;;  %v2723_v16 = vor.u32 %v5359_v17, %v5358_v22  ;;  %v5372_v22 = vld [vmem:[#allocation258_spill] sm:$0xff]  ;;  %v5373_v17 = vld [vmem:[#allocation259_spill] sm:$0xff] }
 0x523   : >> { %1777 = vmatmul.bf16.vlgmr.msra.gmra.mxu1 %v1560_v10  ;;  %1884 = vmatpush.bf16.msrb.mxu0 %v2723_v16  ;;  %v2695_v16 = vor.u32 %v5373_v17, %v5372_v22  ;;  %v5377_v22 = vld [vmem:[#allocation283_spill] sm:$0xff] }
 0x528   : >> { %v1461_v0 = vpop.f32.mrf.mxu3 }
 0x530   : >> { %v1555_v14 = vpop.f32.mrf.mxu3 }
 0x531   : >> { %v1562_v29 = vpack.c.bf16 %v1555_v14, %v1555_v14 }
 0x532   : >> { %v1507_v13 = vpop.f32.mrf.mxu1 }
 0x533   : >> { %v1561_v7 = vpack.c.bf16 %v1507_v13, %v1507_v13  ;;  %1803 = vmatmul.bf16.vlgmr.msra.gmra.mxu3 %v1562_v29 }
 0x535   : >> { %1790 = vmatmul.bf16.vlgmr.msra.gmra.mxu2 %v1561_v7  ;;  %v5360_v7 = vld [vmem:[#allocation270_spill] sm:$0xff] }
 0x538   : >> { %v1557_v1 = vpop.f32.mrf.mxu3 }
 0x539   : >> { %v5361_v1 = vld [vmem:[#allocation271_spill] sm:$0xff] }
 0x53a   : >> { %v1509_v21 = vpop.f32.mrf.mxu1 }
 0x53b   : >> { %v5362_v21 = vld [vmem:[#allocation268_spill] sm:$0xff] }
 0x590   : >> { %v1765_v19 = vpop.f32.mrf.mxu0 }
 0x591   : >> { %v1766_v5 = vadd.f32 %v1765_v19, %v1563_v33  ;;  %v5363_v19 = vld [vmem:[#allocation269_spill] sm:$0xff] }
 0x598   : >> { %v1767_v3 = vpop.f32.mrf.mxu0 }
 0x599   : >> { %v2715_v3 = vor.u32 %v5363_v19, %v5362_v21 }
 0x5a0   : >> { %v1778_v2 = vpop.f32.mrf.mxu1 }
 0x5a1   : >> { %v1779_v52 = vadd.f32 %v1778_v2, %v1766_v5  ;;  %v5364_v2 = vld [vmem:[#allocation266_spill] sm:$0xff]  ;;  %v5366_v5 = vld [vmem:[#allocation264_spill] sm:$0xff] }
 0x5a8   : >> { %v1780_v6 = vpop.f32.mrf.mxu1 }
 0x5a9   : >> { %v5365_v6 = vld [vmem:[#allocation267_spill] sm:$0xff] }
 0x5aa   : >> { %v2711_v33 = vor.u32 %v5365_v6, %v5364_v2  ;;  %v1830_v6 = vperm.slane %v5218_v12, 4 }
 0x5b6   : >> { %v1804_v23 = vpop.f32.mrf.mxu3 }
 0x5b8   : >> { %v1791_v18 = vpop.f32.mrf.mxu2 }
 0x5b9   : >> { %v1792_v4 = vadd.f32 %v1791_v18, %v1779_v52  ;;  %v5368_v18 = vld [vmem:[#allocation262_spill] sm:$0xff] }
 0x5bb   : >> { %v1805_v11 = vadd.f32 %v1804_v23, %v1792_v4  ;;  %v5367_v23 = vld [vmem:[#allocation265_spill] sm:$0xff]  ;;  %v5369_v4 = vld [vmem:[#allocation263_spill] sm:$0xff] }
 0x5bc   : >> { %v2707_v52 = vor.u32 %v5367_v23, %v5366_v5  ;;  %v1832_v23 = vperm.slane %v5218_v12, 5 }
 0x5bd   : >> { %v4762_v8 = vadd.f32 %v1805_v11, %v4442_v28  ;;  %v2719_v28 = vor.u32 %v5361_v1, %v5360_v7  ;;  %v5370_v11 = vld [vmem:[#allocation260_spill] sm:$0xff] }
 0x5be   : >> { %v1806_v9 = vpop.f32.mrf.mxu3 }
 0x5bf   : >> { %1809 = vadd.xlane.f32.xlu1 %v4762_v8  ;;  %1885 = vmatpush.bf16.msrb.mxu0 %v2719_v28  ;;  %v5371_v9 = vld [vmem:[#allocation261_spill] sm:$0xff] }
 0x5c0   : >> { %v1793_v20 = vpop.f32.mrf.mxu2 }
 0x5c1   : >> { %v2699_v20 = vor.u32 %v5371_v9, %v5370_v11  ;;  %v5375_v11 = vld [vmem:[#allocation285_spill] sm:$0xff] }
 0x5c3   : >> { %1886 = vmatpush.bf16.msrb.mxu0 %v2715_v3 }
 0x5c7   : >> { %1887 = vmatpush.bf16.msrb.mxu0 %v2711_v33 }
 0x5cb   : >> { %1888 = vmatpush.bf16.msrb.mxu0 %v2707_v52 }
 0x632   : >> { %v1810_v10 = vpop.xlane.xlu1 %1809 }
 0x633   : >> { %v1811_v0 = vmul.f32 0.03125, %v1810_v10  ;;  %v2755_v10 = vor.u32 %v4431_v40, %v4428_v27 }
 0x635   : >> { %v1812_v14 = vsub.f32 %v4762_v8, %v1811_v0  ;;  %1956 = vmatpush.bf16.msrb.mxu1 %v2755_v10  ;;  %v5379_v10 = vld [vmem:[#allocation281_spill] sm:$0xff] }
 0x637   : >> { %v1813_v29 = vmul.f32 %v1812_v14, %v1812_v14 }
 0x639   : >> { %v1814_v13 = vmul.f32 %v4504_v53, %v1813_v29  ;;  %v2703_v53 = vor.u32 %v5369_v4, %v5368_v18 }
 0x63b   : >> { %1815 = vadd.xlane.f32.xlu2 %v1814_v13  ;;  %1889 = vmatpush.bf16.msrb.mxu0 %v2703_v53  ;;  %v2751_v13 = vor.u32 %v4425_v26, %v4422_v15  ;;  %v5374_v53 = vld [vmem:[#allocation284_spill] sm:$0xff] }
 0x63c   : >> { %v2747_v9 = vor.u32 %v5375_v11, %v5374_v53 }
 0x63d   : >> { %1957 = vmatpush.bf16.msrb.mxu1 %v2751_v13 }
 0x63f   : >> { %1890 = vmatpush.bf16.msrb.mxu0 %v2699_v20  ;;  %v5376_v20 = vld [vmem:[#allocation282_spill] sm:$0xff] }
 0x640   : >> { %v2743_v17 = vor.u32 %v5377_v22, %v5376_v20 }
 0x641   : >> { %1958 = vmatpush.bf16.msrb.mxu1 %v2747_v9 }
 0x643   : >> { %1891 = vmatpush.bf16.msrb.mxu0 %v2695_v16  ;;  %v5378_v16 = vld [vmem:[#allocation280_spill] sm:$0xff] }
 0x645   : >> { %1959 = vmatpush.bf16.msrb.mxu1 %v2743_v17 }
 0x6ae   : >> { %v1816_v0 = vpop.xlane.xlu2 %1815 }
 0x6af   : >> { %v1817_v29 = vmul.f32 0.03125, %v1816_v0  ;;  %v2739_v0 = vor.u32 %v5379_v10, %v5378_v16  ;;  %v1907_v16 = vperm.slane %v5218_v12, 7 }
 0x6b1   : >> { %v1818_v7 = vadd.f32 1e-12, %v1817_v29  ;;  %1960 = vmatpush.bf16.msrb.mxu1 %v2739_v0  ;;  %v5380_v29 = vld [vmem:[#allocation278_spill] sm:$0xff] }
 0x6b3   : >> { %3041 = vrsqrt.f32 %v1818_v7  ;;  %vm1825_vm7 = vweird.f32 %v1818_v7 }
 0x6b9   : >> { %v3042_v1 = vpop.eup %3041 }
 0x6ba   : >> { %v1820_v28 = vmul.f32 %v3042_v1, %v1818_v7  ;;  %vm1826_vm6 = vweird.f32 %v3042_v1  ;;  %v5382_v7 = vld [vmem:[#allocation276_spill] sm:$0xff] }
 0x6bb   : >> { %vm1827_vm8 = vmor %vm1825_vm7, %vm1826_vm6 }
 0x6bc   : >> { %v1821_v21 = vmul.f32 %v3042_v1, %v1820_v28 }
 0x6be   : >> { %v1822_v19 = vmul.f32 0.5, %v1821_v21  ;;  %v5384_v21 = vld [vmem:[#allocation274_spill] sm:$0xff] }
 0x6c0   : >> { %v1823_v3 = vsub.f32 1.5, %v1822_v19  ;;  %v5385_v19 = vld [vmem:[#allocation275_spill] sm:$0xff] }
 0x6c2   : >> { %v1824_v2 = vmul.f32 %v3042_v1, %v1823_v3  ;;  %v2727_v3 = vor.u32 %v5385_v19, %v5384_v21 }
 0x6c4   : >> { %v1828_v33 = vsel %vm1827_vm8, %v3042_v1, %v1824_v2  ;;  %v5383_v1 = vld [vmem:[#allocation277_spill] sm:$0xff]  ;;  %v1835_v2 = vperm.slane %v5218_v12, 6 }
 0x6c5   : >> { %v1829_v5 = vmul.f32 %v1828_v33, %v1812_v14  ;;  %v5381_v14 = vld [vmem:[#allocation279_spill] sm:$0xff]  ;;  %v2731_v28 = vor.u32 %v5383_v1, %v5382_v7 }
 0x6c6   : >> { %v2735_v13 = vor.u32 %v5381_v14, %v5380_v29 }
 0x6c7   : >> { %v1831_v52 = vmul.f32 %v1830_v6, %v1829_v5 }
 0x6c8   : >> { %1961 = vmatpush.bf16.msrb.mxu1 %v2735_v13 }
 0x6c9   : >> { %v1833_v18 = vadd.f32 %v1832_v23, %v1831_v52 }
 0x6cb   : >> { %v1834_v4 = vpack.c.bf16 %v1833_v18, %v1833_v18 }
 0x6cc   : >> { %1962 = vmatpush.bf16.msrb.mxu1 %v2731_v28 }
 0x6cd   : >> { %1892 = vmatmul.bf16.vlgmr.msrb.gmra.mxu0 %v1834_v4 }
 0x6d0   : >> { %1963 = vmatpush.bf16.msrb.mxu1 %v2727_v3 }
 0x74a   : >> { %v1893_v6 = vpop.f32.mrf.mxu0 }
 0x74b   : >> { %v1894_v33 = vadd.f32 %v1893_v6, %v1835_v2 }
 0x74d   : >> { %v1899_v5 = vmul.f32 0.044715, %v1894_v33  ;;  %v1898_v52 = vmul.f32 0.7978846, %v1894_v33  ;;  %v1897_v9 = vmul.f32 0.5, %v1894_v33 }
 0x74f   : >> { %v1900_v23 = vmul.f32 %v1899_v5, %v1894_v33 }
 0x751   : >> { %v1901_v18 = vadd.f32 1.0, %v1900_v23 }
 0x752   : >> { %v1895_v4 = vpop.f32.mrf.mxu0 }
 0x753   : >> { %v1902_v53 = vmul.f32 %v1901_v18, %v1898_v52 }
 0x755   : >> { %3043 = vtanh.f32 %v1902_v53 }
 0x75b   : >> { %v3044_v11 = vpop.eup %3043 }
 0x75c   : >> { %v1904_v20 = vadd.f32 1.0, %v3044_v11 }
 0x75e   : >> { %v1905_v22 = vmul.f32 %v1904_v20, %v1897_v9 }
 0x760   : >> { %v1906_v17 = vpack.c.bf16 %v1905_v22, %v1905_v22 }
 0x762   : >> { %1964 = vmatmul.bf16.vlgmr.msrb.gmra.mxu1 %v1906_v17 }
 0x7df   : >> { %v1965_v10 = vpop.f32.mrf.mxu1 }
 0x7e0   : >> { %v1966_v0 = vadd.f32 %v1965_v10, %v1907_v16 }
 0x7e2   : >> { %v1969_v29 = vadd.f32 %v1966_v0, %v4762_v8 }
 0x7e4   : >> { %1970 = vst [vmem:[%s4439_s17] sm:$0xff] %v1969_v29 }
 0x7e7   : >> { %v1967_v14 = vpop.f32.mrf.mxu1  ;;  %681 = sbr.rel (!%p679_p2) target bundleno = 349 (0x15d), region = 148 }
 0x7ec   : > { %2928 = dma.vmem_to_hbm [thread:$0]  (%p2954_p3), %s1980_s19, 256, %s1982_s27, [#allocation4], %s3338_s21, %s3338_s21, %s3339_s23  }
 0x7ed   : > { %3298 = dma.done.wait (%p2954_p3), [#allocation4], 256  }
 0x7ee   : > { %3300 = vsyncadd (%p2954_p3), [#allocation4], 4294967040 }
 0x7ef PF: > { %s27_s26 = sadd.s32 1, %s3323_s26   ;;  %s5386_s9 = sld [smem:[#allocation19_spill]] }
 0x7f0   : > { %p24_p4 = scmp.ge.s32.totalorder %s27_s26, 4   ;;  %s5387_s23 = sld [smem:[#allocation21_spill]] }
 0x7f1   : > { %s5388_s14 = sld [smem:[#allocation20_spill]]  ;;  %s5389_s21 = smov %s3307_s22 }
 0x7f2   : > { %s5391_s24 = smov %s3319_s25 }
 0x7f3   :  { %26 = sbr.rel (!%p24_p4) target bundleno = 14 (0xe), region = 159 }
 0x7f5   : > { %s5390_s22 = smov %s5386_s9 }
 0x7f7   : > { %s5392_s25 = smov %s5388_s14 }
 0x7f8   :  { %1998 = vsyncpa [#allocation3], 1 }
 0x7f9   :  { %2000 = vsyncpa [#allocation3 + $0x1], 1 }
 0x7fa   :  { %2001 = vsyncpa [#allocation6], 1 }
 0x7fb   :  { %2003 = vsyncpa [#allocation6 + $0x1], 1 }
 0x7fc   :  { %2004 = vsyncpa [#allocation9], 1 }
 0x7fd   :  { %2006 = vsyncpa [#allocation9 + $0x1], 1 }
 0x7fe   :  { %2007 = vsyncpa [#allocation12], 1 }
 0x7ff   :  { %2009 = vsyncpa [#allocation12 + $0x1], 1 }
 0x800   :  { %2010 = vsyncpa [#allocation4], 1 }
 0x801   :  { %2012 = vsyncpa [#allocation4 + $0x1], 1 }

</bundles_post_ra>
